<compile_context>
chip_gen: v6e
topology: v6e:2x2x1
jax: 0.10.0
libtpu: 0.0.40
codegen_flags: <defaults>
</compile_context>

<pallas_src>
import numpy as np
import jax
import jax.numpy as jnp
from jax.experimental import pallas as pl
from jax.experimental.pallas import tpu as pltpu


# ----------------------------------------------------------------------------
# Pallas kernel: full AR rollout; one timestep per grid iteration.
# ----------------------------------------------------------------------------
def _build_fno_ar_kernel(n_layers):
    def kernel(*refs):
        it = iter(refs)
        field0_ref = next(it)                 # (B, S)     field of the t=0 frame
        c0_ref = next(it)                     # (B, S*W0)  coords @ fc0_w[1:] + fc0_b (flattened)
        w0f_ref = next(it)                    # (S, S*W0)  fc0 field column, block-diag over space
        layer_refs = [(next(it), next(it)) for _ in range(n_layers)]   # fused (W, b) per layer
        w1_ref = next(it); b1_ref = next(it)  # fc1 block-diag + bias
        w2_ref = next(it); b2_ref = next(it)  # fc2 block-diag + bias
        o_ref = next(it)                      # (1, B, S)  this timestep's prediction
        field_sc = next(it)                   # (B, S)     VMEM carry across grid steps

        @pl.when(pl.program_id(0) == 0)
        def _():
            field_sc[...] = field0_ref[...]

        field = field_sc[...]                                              # (B, S)
        # fc0 (lift): field contribution via block-diag matmul + precomputed coord/bias slab.
        h = jnp.dot(field, w0f_ref[...],
                    preferred_element_type=jnp.float32) + c0_ref[...]      # (B, S*W0)

        # Fourier layers: each is one dense fused (spectral + 1x1 conv + bias) matmul.
        for li, (w_ref, b_ref) in enumerate(layer_refs):
            h = jnp.dot(h, w_ref[...],
                        preferred_element_type=jnp.float32) + b_ref[...]
            if li != n_layers - 1:
                h = jnp.maximum(h, 0.0)                                    # relu

        # fc1 + relu, fc2 (block-diagonal over space, stays in the flattened layout).
        h = jnp.maximum(
            jnp.dot(h, w1_ref[...], preferred_element_type=jnp.float32) + b1_ref[...], 0.0)
        y = jnp.dot(h, w2_ref[...],
                    preferred_element_type=jnp.float32) + b2_ref[...]      # (B, S) (out_dim == 1)

        o_ref[0] = y.astype(o_ref.dtype)
        field_sc[...] = y                     # autoregressive carry to the next timestep

    return kernel


# ----------------------------------------------------------------------------
# Host-side parameter fusion (float64, done once).
# ----------------------------------------------------------------------------
def build_fused_params(params, S):
    """Fold SpectralConv1d + Conv1d(1x1) (+ Linear layers) into dense operators
    on the row-major-flattened (spatial, channel) activation vector."""
    f64 = np.float64
    eye = np.eye(S, dtype=f64)
    s_idx = np.arange(S, dtype=f64)

    fc0_w = np.asarray(params['fc0_w'], f64)                   # (in_dim, W0)
    width0 = fc0_w.shape[1]

    fused = {}
    # fc0 split: field column -> block-diag matmul; remaining columns + bias are
    # static across the rollout and folded into a precomputed slab (wrapper).
    fused['w0_field'] = jnp.asarray(
        np.einsum('st,w->stw', eye, fc0_w[0]).reshape(S, S * width0).astype(np.float32))
    fused['fc0_w_rest'] = jnp.asarray(np.asarray(params['fc0_w'])[1:], jnp.float32)   # (in_dim-1, W0)
    fused['fc0_b'] = jnp.asarray(np.asarray(params['fc0_b']).reshape(-1), jnp.float32)  # (W0,)

    layers_fused = []
    for lp in params['layers']:
        wr = np.asarray(lp['wr'], f64)                         # (M, Cin, Cout)
        wi = np.asarray(lp['wi'], f64)
        cw = np.asarray(lp['cw'], f64)                         # (Cin, Cout)
        cb = np.asarray(lp['cb'], f64).reshape(-1)             # (Cout,)
        M, Cin, Cout = wr.shape
        assert M <= S // 2 + 1, "modes must be <= S//2 + 1 (number of rfft bins)"

        ang = 2.0 * np.pi * np.outer(np.arange(M, dtype=f64), s_idx) / S   # (M, S)
        Dr = np.cos(ang)                                       # forward rfft basis (real)
        Di = -np.sin(ang)                                      # forward rfft basis (imag)
        fac = np.full((M,), 2.0, f64)
        fac[0] = 1.0
        if S % 2 == 0 and M - 1 == S // 2:
            fac[M - 1] = 1.0                                   # Nyquist bin not doubled
        Ic = (np.cos(ang) * fac[:, None] / S).T                # (S, M) inverse basis (real)
        Is = (-np.sin(ang) * fac[:, None] / S).T               # (S, M) inverse basis (imag)

        # Full spectral operator K[(s,c),(t,o)] = iDFT . complex-mix . rDFT
        K = (np.einsum('tm,ms,mco->scto', Ic, Dr, wr)
             - np.einsum('tm,ms,mco->scto', Ic, Di, wi)
             + np.einsum('tm,ms,mco->scto', Is, Dr, wi)
             + np.einsum('tm,ms,mco->scto', Is, Di, wr))
        # + 1x1 Conv1d as a spatial block-diagonal.
        K = K + np.einsum('st,co->scto', eye, cw)

        W = jnp.asarray(K.reshape(S * Cin, S * Cout).astype(np.float32))
        b = jnp.asarray(
            np.broadcast_to(cb[None, :], (S, Cout)).reshape(1, S * Cout).astype(np.float32))
        layers_fused.append((W, b))
    fused['layers'] = layers_fused

    fc1_w = np.asarray(params['fc1_w'], f64); fc1_b = np.asarray(params['fc1_b'], f64).reshape(-1)
    fc2_w = np.asarray(params['fc2_w'], f64); fc2_b = np.asarray(params['fc2_b'], f64).reshape(-1)
    fused['w1'] = jnp.asarray(
        np.einsum('st,cf->sctf', eye, fc1_w)
        .reshape(S * fc1_w.shape[0], S * fc1_w.shape[1]).astype(np.float32))
    fused['b1'] = jnp.asarray(
        np.broadcast_to(fc1_b[None, :], (S, fc1_w.shape[1])).reshape(1, -1).astype(np.float32))
    fused['w2'] = jnp.asarray(
        np.einsum('st,fo->sfto', eye, fc2_w)
        .reshape(S * fc2_w.shape[0], S * fc2_w.shape[1]).astype(np.float32))
    fused['b2'] = jnp.asarray(
        np.broadcast_to(fc2_b[None, :], (S, fc2_w.shape[1])).reshape(1, -1).astype(np.float32))
    return fused


# ----------------------------------------------------------------------------
# Parameter init (matches torch layer shapes; spectral weights stored (M,Cin,Cout)).
# ----------------------------------------------------------------------------
def init_fno_params(key, modes, width=32, layers=None, fc_dim=128, in_dim=2, out_dim=1):
    if layers is None:
        layers = [width] * 5
    n_layers = len(layers) - 1
    assert len(modes) == n_layers

    def uni(k, shape, bound):
        return jax.random.uniform(k, shape, jnp.float32, -bound, bound)

    keys = iter(jax.random.split(key, 6 + 4 * n_layers))
    p = {}
    p['fc0_w'] = uni(next(keys), (in_dim, layers[0]), 1.0 / np.sqrt(in_dim))
    p['fc0_b'] = uni(next(keys), (1, layers[0]), 1.0 / np.sqrt(in_dim))
    lps = []
    for li in range(n_layers):
        cin, cout, M = layers[li], layers[li + 1], modes[li]
        scale = 1.0 / (cin * cout)
        lps.append({
            'wr': scale * jax.random.uniform(next(keys), (M, cin, cout), jnp.float32),
            'wi': scale * jax.random.uniform(next(keys), (M, cin, cout), jnp.float32),
            'cw': uni(next(keys), (cin, cout), 1.0 / np.sqrt(cin)),
            'cb': uni(next(keys), (1, cout), 1.0 / np.sqrt(cin)),
        })
    p['layers'] = lps
    p['fc1_w'] = uni(next(keys), (layers[-1], fc_dim), 1.0 / np.sqrt(layers[-1]))
    p['fc1_b'] = uni(next(keys), (1, fc_dim), 1.0 / np.sqrt(layers[-1]))
    p['fc2_w'] = uni(next(keys), (fc_dim, out_dim), 1.0 / np.sqrt(fc_dim))
    p['fc2_b'] = uni(next(keys), (1, out_dim), 1.0 / np.sqrt(fc_dim))
    return p


# ----------------------------------------------------------------------------
# Wrapper: FNO1dAR.forward — one pallas_call for the whole rollout.
# ----------------------------------------------------------------------------
def _const_spec(a):
    nd = a.ndim
    return pl.BlockSpec(a.shape, lambda t, _nd=nd: (0,) * _nd)


def fno1d_ar_forward(x, fused):
    """x: (B, T, S, in_dim) -> (B, T, S, 1)."""
    B, T, S, in_dim = x.shape
    n_layers = len(fused['layers'])
    width0 = fused['w0_field'].shape[1] // S
    out_dim = fused['w2'].shape[1] // S
    assert out_dim == 1, "autoregressive rollout requires out_dim == 1"

    pred0 = x[:, 0:1, :, 0:1]
    if T == 1:
        return pred0

    field0 = x[:, 0, :, 0]                                     # (B, S)
    coords = x[:, 0, :, 1:]                                    # (B, S, in_dim-1), static
    # Coordinates' fc0 contribution + fc0 bias, precomputed once, flattened lane-dense.
    c0 = (jnp.einsum('bsc,cw->bsw', coords, fused['fc0_w_rest'])
          + fused['fc0_b']).reshape(B, S * width0)

    inputs = [field0, c0, fused['w0_field']]
    for (W, b) in fused['layers']:
        inputs += [W, b]
    inputs += [fused['w1'], fused['b1'], fused['w2'], fused['b2']]

    in_specs = [_const_spec(a) for a in inputs]                # constant -> resident in VMEM
    out_spec = pl.BlockSpec((1, B, S), lambda t: (t, 0, 0))

    weight_mats = [fused['w0_field']] + [W for W, _ in fused['layers']] + [fused['w1'], fused['w2']]
    flops = 2 * B * (T - 1) * sum(int(w.shape[0]) * int(w.shape[1]) for w in weight_mats)
    bytes_accessed = (sum(int(np.prod(a.shape)) * 4 for a in inputs)
                      + (T - 1) * B * S * 4)
    cost = pl.CostEstimate(flops=flops, transcendentals=0, bytes_accessed=bytes_accessed)

    out = pl.pallas_call(
        _build_fno_ar_kernel(n_layers),
        out_shape=jax.ShapeDtypeStruct((T - 1, B, S), jnp.float32),
        grid=(T - 1,),
        in_specs=in_specs,
        out_specs=out_spec,
        scratch_shapes=[pltpu.VMEM((B, S), jnp.float32)],      # AR field carry
        compiler_params=pltpu.CompilerParams(
            dimension_semantics=("arbitrary",),                # sequential time dependence
            vmem_limit_bytes=48 * 1024 * 1024),
        cost_estimate=cost,
    )(*inputs)

    rest = jnp.transpose(out, (1, 0, 2))[..., None]            # (B, T-1, S, 1)
    return jnp.concatenate([pred0, rest], axis=1)


# ----------------------------------------------------------------------------
# Pure NumPy (float64) reference of the torch module, for validation.
# ----------------------------------------------------------------------------
def fno1d_ar_reference(x, params):
    x = np.asarray(x, np.float64)
    B, T, S, _ = x.shape
    fc0_w = np.asarray(params['fc0_w'], np.float64); fc0_b = np.asarray(params['fc0_b'], np.float64)
    fc1_w = np.asarray(params['fc1_w'], np.float64); fc1_b = np.asarray(params['fc1_b'], np.float64)
    fc2_w = np.asarray(params['fc2_w'], np.float64); fc2_b = np.asarray(params['fc2_b'], np.float64)
    n_layers = len(params['layers'])

    preds = [x[:, 0:1, :, 0:1]]
    frame = x[:, 0]
    coords = x[:, 0, :, 1:]
    for _ in range(T - 1):
        h = frame @ fc0_w + fc0_b                              # (B, S, W0)
        h = np.transpose(h, (0, 2, 1))                         # (B, C, S)
        for li, lp in enumerate(params['layers']):
            wr = np.asarray(lp['wr'], np.float64); wi = np.asarray(lp['wi'], np.float64)
            cw = np.asarray(lp['cw'], np.float64); cb = np.asarray(lp['cb'], np.float64)
            M = wr.shape[0]; Cout = cw.shape[1]
            Xf = np.fft.rfft(h, axis=-1)                       # (B, Cin, S//2+1)
            Wc = wr + 1j * wi                                  # (M, Cin, Cout)
            out_ft = np.zeros((B, Cout, S // 2 + 1), dtype=np.complex128)
            out_ft[:, :, :M] = np.einsum('bim,mio->bom', Xf[:, :, :M], Wc)
            x1 = np.fft.irfft(out_ft, n=S, axis=-1)            # (B, Cout, S)
            x2 = np.einsum('bis,io->bos', h, cw) + cb.reshape(1, Cout, 1)
            h = x1 + x2
            if li != n_layers - 1:
                h = np.maximum(h, 0.0)
        h = np.transpose(h, (0, 2, 1))                         # (B, S, C)
        h = np.maximum(h @ fc1_w + fc1_b, 0.0)
        y = h @ fc2_w + fc2_b                                  # (B, S, 1)
        preds.append(y[:, None])
        frame = np.concatenate([y, coords], axis=-1)
    return np.concatenate(preds, axis=1)                       # (B, T, S, 1)


if __name__ == "__main__":
    B, T, S = 2, 4, 16
    in_dim, out_dim = 2, 1
    width, fc_dim = 32, 64
    modes = [8, 8, 8, 8]                 # 4 Fourier layers (layers = [width]*5)

    key = jax.random.PRNGKey(0)
    kx, kp = jax.random.split(key)
    x = jax.random.normal(kx, (B, T, S, in_dim), dtype=jnp.float32)

    params = init_fno_params(kp, modes, width=width, fc_dim=fc_dim,
                             in_dim=in_dim, out_dim=out_dim)
    fused = build_fused_params(params, S)

    fwd = jax.jit(fno1d_ar_forward)
    y = jax.block_until_ready(fwd(x, fused))
    assert y.shape == (B, T, S, 1), y.shape
    assert bool(jnp.all(jnp.isfinite(y)))

    # Structural correctness check against a float64 NumPy reference of the torch
    # module.  Tolerance is loose because TPU f32 matmuls may run at bf16-input
    # MXU precision; structural bugs would produce O(1) relative errors.
    y_ref = fno1d_ar_reference(np.asarray(x), params)
    err = float(np.max(np.abs(np.asarray(y, np.float64) - y_ref)))
    scale = float(np.max(np.abs(y_ref))) + 1e-8
    assert err / scale < 5e-2, (err, scale)

    print("KERNEL_OK")
</pallas_src>

<mosaic_0001>
module attributes {stable_mosaic.version = 11 : i64} {
  func.func @kernel(%arg0: i32, %arg1: memref<2x16xf32, #tpu.memory_space<vmem>>, %arg2: memref<2x512xf32, #tpu.memory_space<vmem>>, %arg3: memref<16x512xf32, #tpu.memory_space<vmem>>, %arg4: memref<512x512xf32, #tpu.memory_space<vmem>>, %arg5: memref<1x512xf32, #tpu.memory_space<vmem>>, %arg6: memref<512x512xf32, #tpu.memory_space<vmem>>, %arg7: memref<1x512xf32, #tpu.memory_space<vmem>>, %arg8: memref<512x512xf32, #tpu.memory_space<vmem>>, %arg9: memref<1x512xf32, #tpu.memory_space<vmem>>, %arg10: memref<512x512xf32, #tpu.memory_space<vmem>>, %arg11: memref<1x512xf32, #tpu.memory_space<vmem>>, %arg12: memref<512x1024xf32, #tpu.memory_space<vmem>>, %arg13: memref<1x1024xf32, #tpu.memory_space<vmem>>, %arg14: memref<1024x16xf32, #tpu.memory_space<vmem>>, %arg15: memref<1x16xf32, #tpu.memory_space<vmem>>, %arg16: memref<1x2x16xf32, #tpu.memory_space<vmem>>, %arg17: memref<2x16xf32, #tpu.memory_space<vmem>>) attributes {dimension_semantics = [#tpu.dimension_semantics<arbitrary>], iteration_bounds = array<i64: 3>, scalar_prefetch = 0 : i64, scratch_operands = 1 : i64, tpu.core_type = #tpu.core_type<tc>, window_params = [{pipeline_mode = #tpu.pipeline_mode<synchronous>, transform_indices = @transform_0, window_bounds = array<i64: 2, 16>}, {pipeline_mode = #tpu.pipeline_mode<synchronous>, transform_indices = @transform_1, window_bounds = array<i64: 2, 512>}, {pipeline_mode = #tpu.pipeline_mode<synchronous>, transform_indices = @transform_2, window_bounds = array<i64: 16, 512>}, {pipeline_mode = #tpu.pipeline_mode<synchronous>, transform_indices = @transform_3, window_bounds = array<i64: 512, 512>}, {pipeline_mode = #tpu.pipeline_mode<synchronous>, transform_indices = @transform_4, window_bounds = array<i64: 1, 512>}, {pipeline_mode = #tpu.pipeline_mode<synchronous>, transform_indices = @transform_5, window_bounds = array<i64: 512, 512>}, {pipeline_mode = #tpu.pipeline_mode<synchronous>, transform_indices = @transform_6, window_bounds = array<i64: 1, 512>}, {pipeline_mode = #tpu.pipeline_mode<synchronous>, transform_indices = @transform_7, window_bounds = array<i64: 512, 512>}, {pipeline_mode = #tpu.pipeline_mode<synchronous>, transform_indices = @transform_8, window_bounds = array<i64: 1, 512>}, {pipeline_mode = #tpu.pipeline_mode<synchronous>, transform_indices = @transform_9, window_bounds = array<i64: 512, 512>}, {pipeline_mode = #tpu.pipeline_mode<synchronous>, transform_indices = @transform_10, window_bounds = array<i64: 1, 512>}, {pipeline_mode = #tpu.pipeline_mode<synchronous>, transform_indices = @transform_11, window_bounds = array<i64: 512, 1024>}, {pipeline_mode = #tpu.pipeline_mode<synchronous>, transform_indices = @transform_12, window_bounds = array<i64: 1, 1024>}, {pipeline_mode = #tpu.pipeline_mode<synchronous>, transform_indices = @transform_13, window_bounds = array<i64: 1024, 16>}, {pipeline_mode = #tpu.pipeline_mode<synchronous>, transform_indices = @transform_14, window_bounds = array<i64: 1, 16>}, {transform_indices = @transform_15, window_bounds = array<i64: 1, 2, 16>}]} {
    %c0_i32 = arith.constant 0 : i32
    %0 = arith.cmpi eq, %arg0, %c0_i32 : i32
    %1 = arith.extui %0 : i1 to i32
    %c0_i32_0 = arith.constant 0 : i32
    %2 = arith.cmpi ne, %1, %c0_i32_0 : i32
    scf.if %2 {
      %c0_45 = arith.constant 0 : index
      %c0_46 = arith.constant 0 : index
      %50 = vector.load %arg1[%c0_45, %c0_46] : memref<2x16xf32, #tpu.memory_space<vmem>>, vector<2x16xf32>
      %c0_47 = arith.constant 0 : index
      %c0_48 = arith.constant 0 : index
      %51 = vector.load %arg17[%c0_47, %c0_48] : memref<2x16xf32, #tpu.memory_space<vmem>>, vector<2x16xf32>
      tpu.vector_store %arg17[%c0_47, %c0_48], %50 {strides = array<i32>} : memref<2x16xf32, #tpu.memory_space<vmem>>, vector<2x16xf32>,
    } else {
    }
    %c0 = arith.constant 0 : index
    %c0_1 = arith.constant 0 : index
    %3 = vector.load %arg17[%c0, %c0_1] : memref<2x16xf32, #tpu.memory_space<vmem>>, vector<2x16xf32>
    %c0_2 = arith.constant 0 : index
    %c0_3 = arith.constant 0 : index
    %4 = vector.load %arg3[%c0_2, %c0_3] : memref<16x512xf32, #tpu.memory_space<vmem>>, vector<16x512xf32>
    %cst = arith.constant dense<0.000000e+00> : vector<2x512xf32>
    %5 = tpu.matmul %3, %4, %cst {dimension_numbers = #tpu.dot_dimension_numbers<[1], [0], [0], [1], [0, 0, 1, 1], [], []>} : vector<2x16xf32>, vector<16x512xf32>, vector<2x512xf32> -> vector<2x512xf32>
    %c0_4 = arith.constant 0 : index
    %c0_5 = arith.constant 0 : index
    %6 = vector.load %arg2[%c0_4, %c0_5] : memref<2x512xf32, #tpu.memory_space<vmem>>, vector<2x512xf32>
    %7 = arith.addf %5, %6 : vector<2x512xf32>
    %c0_6 = arith.constant 0 : index
    %c0_7 = arith.constant 0 : index
    %8 = vector.load %arg4[%c0_6, %c0_7] : memref<512x512xf32, #tpu.memory_space<vmem>>, vector<512x512xf32>
    %cst_8 = arith.constant dense<0.000000e+00> : vector<2x512xf32>
    %9 = tpu.matmul %7, %8, %cst_8 {dimension_numbers = #tpu.dot_dimension_numbers<[1], [0], [0], [1], [0, 0, 1, 1], [], []>} : vector<2x512xf32>, vector<512x512xf32>, vector<2x512xf32> -> vector<2x512xf32>
    %c0_9 = arith.constant 0 : index
    %c0_10 = arith.constant 0 : index
    %10 = vector.load %arg5[%c0_9, %c0_10] : memref<1x512xf32, #tpu.memory_space<vmem>>, vector<1x512xf32>
    %11 = vector.broadcast %10 : vector<1x512xf32> to vector<2x512xf32>
    %12 = arith.addf %9, %11 : vector<2x512xf32>
    %cst_11 = arith.constant 0.000000e+00 : f32
    %13 = vector.broadcast %cst_11 : f32 to vector<2x512xf32>
    %14 = arith.maximumf %12, %13 : vector<2x512xf32>
    %c0_12 = arith.constant 0 : index
    %c0_13 = arith.constant 0 : index
    %15 = vector.load %arg6[%c0_12, %c0_13] : memref<512x512xf32, #tpu.memory_space<vmem>>, vector<512x512xf32>
    %cst_14 = arith.constant dense<0.000000e+00> : vector<2x512xf32>
    %16 = tpu.matmul %14, %15, %cst_14 {dimension_numbers = #tpu.dot_dimension_numbers<[1], [0], [0], [1], [0, 0, 1, 1], [], []>} : vector<2x512xf32>, vector<512x512xf32>, vector<2x512xf32> -> vector<2x512xf32>
    %c0_15 = arith.constant 0 : index
    %c0_16 = arith.constant 0 : index
    %17 = vector.load %arg7[%c0_15, %c0_16] : memref<1x512xf32, #tpu.memory_space<vmem>>, vector<1x512xf32>
    %18 = vector.broadcast %17 : vector<1x512xf32> to vector<2x512xf32>
    %19 = arith.addf %16, %18 : vector<2x512xf32>
    %cst_17 = arith.constant 0.000000e+00 : f32
    %20 = vector.broadcast %cst_17 : f32 to vector<2x512xf32>
    %21 = arith.maximumf %19, %20 : vector<2x512xf32>
    %c0_18 = arith.constant 0 : index
    %c0_19 = arith.constant 0 : index
    %22 = vector.load %arg8[%c0_18, %c0_19] : memref<512x512xf32, #tpu.memory_space<vmem>>, vector<512x512xf32>
    %cst_20 = arith.constant dense<0.000000e+00> : vector<2x512xf32>
    %23 = tpu.matmul %21, %22, %cst_20 {dimension_numbers = #tpu.dot_dimension_numbers<[1], [0], [0], [1], [0, 0, 1, 1], [], []>} : vector<2x512xf32>, vector<512x512xf32>, vector<2x512xf32> -> vector<2x512xf32>
    %c0_21 = arith.constant 0 : index
    %c0_22 = arith.constant 0 : index
    %24 = vector.load %arg9[%c0_21, %c0_22] : memref<1x512xf32, #tpu.memory_space<vmem>>, vector<1x512xf32>
    %25 = vector.broadcast %24 : vector<1x512xf32> to vector<2x512xf32>
    %26 = arith.addf %23, %25 : vector<2x512xf32>
    %cst_23 = arith.constant 0.000000e+00 : f32
    %27 = vector.broadcast %cst_23 : f32 to vector<2x512xf32>
    %28 = arith.maximumf %26, %27 : vector<2x512xf32>
    %c0_24 = arith.constant 0 : index
    %c0_25 = arith.constant 0 : index
    %29 = vector.load %arg10[%c0_24, %c0_25] : memref<512x512xf32, #tpu.memory_space<vmem>>, vector<512x512xf32>
    %cst_26 = arith.constant dense<0.000000e+00> : vector<2x512xf32>
    %30 = tpu.matmul %28, %29, %cst_26 {dimension_numbers = #tpu.dot_dimension_numbers<[1], [0], [0], [1], [0, 0, 1, 1], [], []>} : vector<2x512xf32>, vector<512x512xf32>, vector<2x512xf32> -> vector<2x512xf32>
    %c0_27 = arith.constant 0 : index
    %c0_28 = arith.constant 0 : index
    %31 = vector.load %arg11[%c0_27, %c0_28] : memref<1x512xf32, #tpu.memory_space<vmem>>, vector<1x512xf32>
    %32 = vector.broadcast %31 : vector<1x512xf32> to vector<2x512xf32>
    %33 = arith.addf %30, %32 : vector<2x512xf32>
    %c0_29 = arith.constant 0 : index
    %c0_30 = arith.constant 0 : index
    %34 = vector.load %arg12[%c0_29, %c0_30] : memref<512x1024xf32, #tpu.memory_space<vmem>>, vector<512x1024xf32>
    %cst_31 = arith.constant dense<0.000000e+00> : vector<2x1024xf32>
    %35 = tpu.matmul %33, %34, %cst_31 {dimension_numbers = #tpu.dot_dimension_numbers<[1], [0], [0], [1], [0, 0, 1, 1], [], []>} : vector<2x512xf32>, vector<512x1024xf32>, vector<2x1024xf32> -> vector<2x1024xf32>
    %c0_32 = arith.constant 0 : index
    %c0_33 = arith.constant 0 : index
    %36 = vector.load %arg13[%c0_32, %c0_33] : memref<1x1024xf32, #tpu.memory_space<vmem>>, vector<1x1024xf32>
    %37 = vector.broadcast %36 : vector<1x1024xf32> to vector<2x1024xf32>
    %38 = arith.addf %35, %37 : vector<2x1024xf32>
    %cst_34 = arith.constant 0.000000e+00 : f32
    %39 = vector.broadcast %cst_34 : f32 to vector<2x1024xf32>
    %40 = arith.maximumf %38, %39 : vector<2x1024xf32>
    %c0_35 = arith.constant 0 : index
    %c0_36 = arith.constant 0 : index
    %41 = vector.load %arg14[%c0_35, %c0_36] : memref<1024x16xf32, #tpu.memory_space<vmem>>, vector<1024x16xf32>
    %cst_37 = arith.constant dense<0.000000e+00> : vector<2x16xf32>
    %42 = tpu.matmul %40, %41, %cst_37 {dimension_numbers = #tpu.dot_dimension_numbers<[1], [0], [0], [1], [0, 0, 1, 1], [], []>} : vector<2x1024xf32>, vector<1024x16xf32>, vector<2x16xf32> -> vector<2x16xf32>
    %c0_38 = arith.constant 0 : index
    %c0_39 = arith.constant 0 : index
    %43 = vector.load %arg15[%c0_38, %c0_39] : memref<1x16xf32, #tpu.memory_space<vmem>>, vector<1x16xf32>
    %44 = vector.broadcast %43 : vector<1x16xf32> to vector<2x16xf32>
    %45 = arith.addf %42, %44 : vector<2x16xf32>
    %c0_40 = arith.constant 0 : index
    %c0_41 = arith.constant 0 : index
    %c0_42 = arith.constant 0 : index
    %46 = vector.load %arg16[%c0_40, %c0_41, %c0_42] : memref<1x2x16xf32, #tpu.memory_space<vmem>>, vector<1x2x16xf32>
    %47 = vector.shape_cast %46 : vector<1x2x16xf32> to vector<2x16xf32>
    %48 = vector.shape_cast %45 : vector<2x16xf32> to vector<1x2x16xf32>
    tpu.vector_store %arg16[%c0_40, %c0_41, %c0_42], %48 {strides = array<i32>} : memref<1x2x16xf32, #tpu.memory_space<vmem>>, vector<1x2x16xf32>,
    %c0_43 = arith.constant 0 : index
    %c0_44 = arith.constant 0 : index
    %49 = vector.load %arg17[%c0_43, %c0_44] : memref<2x16xf32, #tpu.memory_space<vmem>>, vector<2x16xf32>
    tpu.vector_store %arg17[%c0_43, %c0_44], %45 {strides = array<i32>} : memref<2x16xf32, #tpu.memory_space<vmem>>, vector<2x16xf32>,
    return
  }
  func.func @transform_0(%arg0: i32) -> (i32, i32) {
    %c0_i32 = arith.constant 0 : i32
    %c0_i32_0 = arith.constant 0 : i32
    %c0_i32_1 = arith.constant 0 : i32
    return %c0_i32, %c0_i32_0 : i32, i32
  }
  func.func @transform_1(%arg0: i32) -> (i32, i32) {
    %c0_i32 = arith.constant 0 : i32
    %c0_i32_0 = arith.constant 0 : i32
    %c0_i32_1 = arith.constant 0 : i32
    return %c0_i32, %c0_i32_0 : i32, i32
  }
  func.func @transform_2(%arg0: i32) -> (i32, i32) {
    %c0_i32 = arith.constant 0 : i32
    %c0_i32_0 = arith.constant 0 : i32
    %c0_i32_1 = arith.constant 0 : i32
    return %c0_i32, %c0_i32_0 : i32, i32
  }
  func.func @transform_3(%arg0: i32) -> (i32, i32) {
    %c0_i32 = arith.constant 0 : i32
    %c0_i32_0 = arith.constant 0 : i32
    %c0_i32_1 = arith.constant 0 : i32
    return %c0_i32, %c0_i32_0 : i32, i32
  }
  func.func @transform_4(%arg0: i32) -> (i32, i32) {
    %c0_i32 = arith.constant 0 : i32
    %c0_i32_0 = arith.constant 0 : i32
    %c0_i32_1 = arith.constant 0 : i32
    return %c0_i32, %c0_i32_0 : i32, i32
  }
  func.func @transform_5(%arg0: i32) -> (i32, i32) {
    %c0_i32 = arith.constant 0 : i32
    %c0_i32_0 = arith.constant 0 : i32
    %c0_i32_1 = arith.constant 0 : i32
    return %c0_i32, %c0_i32_0 : i32, i32
  }
  func.func @transform_6(%arg0: i32) -> (i32, i32) {
    %c0_i32 = arith.constant 0 : i32
    %c0_i32_0 = arith.constant 0 : i32
    %c0_i32_1 = arith.constant 0 : i32
    return %c0_i32, %c0_i32_0 : i32, i32
  }
  func.func @transform_7(%arg0: i32) -> (i32, i32) {
    %c0_i32 = arith.constant 0 : i32
    %c0_i32_0 = arith.constant 0 : i32
    %c0_i32_1 = arith.constant 0 : i32
    return %c0_i32, %c0_i32_0 : i32, i32
  }
  func.func @transform_8(%arg0: i32) -> (i32, i32) {
    %c0_i32 = arith.constant 0 : i32
    %c0_i32_0 = arith.constant 0 : i32
    %c0_i32_1 = arith.constant 0 : i32
    return %c0_i32, %c0_i32_0 : i32, i32
  }
  func.func @transform_9(%arg0: i32) -> (i32, i32) {
    %c0_i32 = arith.constant 0 : i32
    %c0_i32_0 = arith.constant 0 : i32
    %c0_i32_1 = arith.constant 0 : i32
    return %c0_i32, %c0_i32_0 : i32, i32
  }
  func.func @transform_10(%arg0: i32) -> (i32, i32) {
    %c0_i32 = arith.constant 0 : i32
    %c0_i32_0 = arith.constant 0 : i32
    %c0_i32_1 = arith.constant 0 : i32
    return %c0_i32, %c0_i32_0 : i32, i32
  }
  func.func @transform_11(%arg0: i32) -> (i32, i32) {
    %c0_i32 = arith.constant 0 : i32
    %c0_i32_0 = arith.constant 0 : i32
    %c0_i32_1 = arith.constant 0 : i32
    return %c0_i32, %c0_i32_0 : i32, i32
  }
  func.func @transform_12(%arg0: i32) -> (i32, i32) {
    %c0_i32 = arith.constant 0 : i32
    %c0_i32_0 = arith.constant 0 : i32
    %c0_i32_1 = arith.constant 0 : i32
    return %c0_i32, %c0_i32_0 : i32, i32
  }
  func.func @transform_13(%arg0: i32) -> (i32, i32) {
    %c0_i32 = arith.constant 0 : i32
    %c0_i32_0 = arith.constant 0 : i32
    %c0_i32_1 = arith.constant 0 : i32
    return %c0_i32, %c0_i32_0 : i32, i32
  }
  func.func @transform_14(%arg0: i32) -> (i32, i32) {
    %c0_i32 = arith.constant 0 : i32
    %c0_i32_0 = arith.constant 0 : i32
    %c0_i32_1 = arith.constant 0 : i32
    return %c0_i32, %c0_i32_0 : i32, i32
  }
  func.func @transform_15(%arg0: i32) -> (i32, i32, i32) {
    %c0_i32 = arith.constant 0 : i32
    %c0_i32_0 = arith.constant 0 : i32
    %c0_i32_1 = arith.constant 0 : i32
    return %arg0, %c0_i32, %c0_i32_0 : i32, i32, i32
  }
}

</mosaic_0001>

<bundles_post_ra>
// kernel: fno1d_ar_forward.1
= control target key start
LH: loop header
LB: loop body
LE: loop exit
PB: predicated region body
PF: predicated region fallthrough
CT: control target
= control target key end

     0   :  { %s6270_s0 = inlined_call_operand.vmem [shape: f32[2,16], index: 0, kind: input, shape index: {}]   ;;  %s6271_s1 = inlined_call_operand.vmem [shape: f32[2,512], index: 1, kind: input, shape index: {}]   ;;  %s6272_s2 = inlined_call_operand.hbm [shape: f32[16,512], index: 2, kind: input, shape index: {}]   ;;  %s6273_s3 = inlined_call_operand.hbm [shape: f32[512,512], index: 3, kind: input, shape index: {}]   ;;  %s6274_s4 = inlined_call_operand.hbm [shape: f32[1,512], index: 4, kind: input, shape index: {}]   ;;  %s6275_s5 = inlined_call_operand.hbm [shape: f32[512,512], index: 5, kind: input, shape index: {}]   ;;  %s6276_s6 = inlined_call_operand.hbm [shape: f32[1,512], index: 6, kind: input, shape index: {}]   ;;  %s6277_s7 = inlined_call_operand.hbm [shape: f32[512,512], index: 7, kind: input, shape index: {}]   ;;  %s6278_s8 = inlined_call_operand.hbm [shape: f32[1,512], index: 8, kind: input, shape index: {}]   ;;  %s6279_s9 = inlined_call_operand.hbm [shape: f32[512,512], index: 9, kind: input, shape index: {}]   ;;  %s6280_s10 = inlined_call_operand.hbm [shape: f32[1,512], index: 10, kind: input, shape index: {}]   ;;  %s6281_s11 = inlined_call_operand.hbm [shape: f32[512,1024], index: 11, kind: input, shape index: {}]   ;;  %s6282_s12 = inlined_call_operand.hbm [shape: f32[1,1024], index: 12, kind: input, shape index: {}]   ;;  %s6283_s13 = inlined_call_operand.vmem [shape: f32[1024,16], index: 13, kind: input, shape index: {}]   ;;  %s6284_s14 = inlined_call_operand.hbm [shape: f32[1,16], index: 14, kind: input, shape index: {}]   ;;  %s6285_s15 = inlined_call_operand.vmem [shape: f32[3,2,16], index: 15, kind: output, shape index: {}]  }
   0x1   :  { %6290 = sst [smem:[#allocation29_spill]] %s6273_s3 }
   0x2   :  { %20 = vsyncpa [#allocation4], 0 }
   0x3   :  { %21 = vsyncpa [#allocation6], 0 }
   0x4   :  { %22 = vsyncpa [#allocation9], 0 }
   0x5   :  { %23 = vsyncpa [#allocation12], 0 }
   0x6   :  { %24 = vsyncpa [#allocation15], 0 }
   0x7   :  { %25 = vsyncpa [#allocation18], 0 }
   0x8   :  { %26 = vsyncpa [#allocation21], 0  ;;  %s5544_s18 = smov 0  }
   0x9 LB: > { %s5550_s19 = sadd.s32 4294967295, %s5444_s18   ;;  %p4789_p0 = scmp.ge.s32.totalorder %s5444_s18, 1  ;;  %s5444_s18 = sphi %s5544_s18, %s32_s18  }
   0xa   : > { %p378_p1 = scmp.lt.s32.totalorder %s5444_s18, 4  ;;  %p6288_p3 = scmp.eq.s32.totalorder %s5550_s19, 0 }
   0xb   : > { %s5446_s21 = smov [#allocation5]   ;;  %s5447_s23 = smov [#allocation8]  }
   0xc   : > { %p5556_p4 = pnand %p4789_p0, %p378_p1  ;;  %s409_s22 = sshll.u32 %s5446_s21, 4  ;;  %s410_s22 = int_to_ptr.vmem [resolvable:$true] %s409_s22 }
   0xd   : > { %s433_s24 = sshll.u32 %s5447_s23, 4  ;;  %s5448_s26 = smov [#allocation11]   ;;  %s5562_s24 = int_to_ptr.vmem [resolvable:$true] %s433_s24 }
   0xe   : > { %s6291_s20 = scalar_select %p5556_p4, 1, 0 }
   0xf   : > { %p5010_p5 = pneg %p5556_p4  ;;  %s457_s27 = sshll.u32 %s5448_s26, 4  ;;  %s5570_s27 = int_to_ptr.vmem [resolvable:$true] %s457_s27 }
  0x10   : > { %s5449_s28 = smov [#allocation14]   ;;  %s5109_s16 = scalar_lea.vmem %s410_s22, 32768 }
  0x11   : > { %p5566_p6 = pnand %p6288_p3, %p5010_p5  ;;  %s5572_s29 = sshll.u32 %s5449_s28, 4  ;;  %s482_s29 = int_to_ptr.vmem [resolvable:$true] %s5572_s29 }
  0x12   : > { %p5110_p8 = scmp.ne.s32.totalorder %s410_s22, %s5109_s16  ;;  %p5117_p11 = scmp.lt.s32.totalorder %s410_s22, %s410_s22 }
  0x13   : > { %p5576_p7 = pneg %p5566_p6  ;;  %p5118_p12 = scmp.lt.s32.totalorder %s5109_s16, %s5109_s16 }
  0x15   : > { %p5112_p9 = pnand %p5110_p8, %p5576_p7  ;;  %p5119_p13 = por %p5118_p12, %p5117_p11 }
  0x17   : > { %p5113_p10 = pneg %p5112_p9 }
  0x19   : > { %p5120_p0 = pnand %p5119_p13, %p5113_p10 }
  0x1b   : > { %5123 = shalt.err (!%p5120_p0)
}
  0x1c   : > { %s6286_s17 = smov 512   ;;  %s6287_s21 = smov 32  }
  0x1d   : > { %s6294_s3 = sld [smem:[#allocation29_spill]]  ;;  %s5135_s28 = scalar_lea.vmem %s5562_s24, 32768 }
  0x1e   : > { %p5136_p1 = scmp.ne.s32.totalorder %s5562_s24, %s5135_s28  ;;  %p5143_p9 = scmp.lt.s32.totalorder %s5562_s24, %s5562_s24 }
  0x1f   : > { %p5144_p10 = scmp.lt.s32.totalorder %s5135_s28, %s5135_s28 }
  0x20   : > { %p5138_p5 = pnand %p5136_p1, %p5576_p7 }
  0x21   : > { %p5145_p11 = por %p5144_p10, %p5143_p9 }
  0x22   : > { %p5139_p8 = pneg %p5138_p5 }
  0x23   : > { %5016 = dma.hbm_to_vmem [thread:$0]  (!%p5566_p6), %s6294_s3, 32768, %s410_s22, [#allocation6], %s6286_s17, %s6286_s17, %s6287_s21  }
  0x24   : > { %p5146_p12 = pnand %p5145_p11, %p5139_p8 }
  0x26   : > { %5149 = shalt.err (!%p5146_p12)
}
  0x27   : > { %5022 = dma.hbm_to_vmem [thread:$0]  (!%p5566_p6), %s6275_s5, 32768, %s5562_s24, [#allocation9], %s6286_s17, %s6286_s17, %s6287_s21  }
  0x28   : > { %s5161_s22 = scalar_lea.vmem %s5570_s27, 32768  ;;  %p5169_p5 = scmp.lt.s32.totalorder %s5570_s27, %s5570_s27 }
  0x29   : > { %p5162_p13 = scmp.ne.s32.totalorder %s5570_s27, %s5161_s22  ;;  %p5170_p8 = scmp.lt.s32.totalorder %s5161_s22, %s5161_s22 }
  0x2b   : > { %p5164_p0 = pnand %p5162_p13, %p5576_p7  ;;  %p5171_p9 = por %p5170_p8, %p5169_p5 }
  0x2d   : > { %p5165_p1 = pneg %p5164_p0 }
  0x2f   : > { %p5172_p10 = pnand %p5171_p9, %p5165_p1 }
  0x31   : > { %5175 = shalt.err (!%p5172_p10)
}
  0x32   : > { %5028 = dma.hbm_to_vmem [thread:$0]  (!%p5566_p6), %s6277_s7, 32768, %s5570_s27, [#allocation12], %s6286_s17, %s6286_s17, %s6287_s21  }
  0x33   : > { %s5187_s24 = scalar_lea.vmem %s482_s29, 32768  ;;  %p5195_p0 = scmp.lt.s32.totalorder %s482_s29, %s482_s29 }
  0x34   : > { %p5188_p11 = scmp.ne.s32.totalorder %s482_s29, %s5187_s24  ;;  %p5196_p1 = scmp.lt.s32.totalorder %s5187_s24, %s5187_s24 }
  0x36   : > { %p5190_p12 = pnand %p5188_p11, %p5576_p7  ;;  %p5197_p5 = por %p5196_p1, %p5195_p0 }
  0x38   : > { %p5191_p13 = pneg %p5190_p12 }
  0x3a   : > { %p5198_p8 = pnand %p5197_p5, %p5191_p13 }
  0x3c   : > { %5201 = shalt.err (!%p5198_p8)
}
  0x3d   : > { %5034 = dma.hbm_to_vmem [thread:$0]  (!%p5566_p6), %s6279_s9, 32768, %s482_s29, [#allocation15], %s6286_s17, %s6286_s17, %s6287_s21  }
  0x3e   : > { %s5452_s27 = smov [#allocation17]  }
  0x3f   : > { %s505_s22 = sshll.u32 %s5452_s27, 4  ;;  %s506_s22 = int_to_ptr.vmem [resolvable:$true] %s505_s22 }
  0x40   : > { %s5213_s26 = scalar_lea.vmem %s506_s22, 65536  ;;  %p5221_p12 = scmp.lt.s32.totalorder %s506_s22, %s506_s22 }
  0x41   : > { %p5214_p9 = scmp.ne.s32.totalorder %s506_s22, %s5213_s26  ;;  %p5222_p13 = scmp.lt.s32.totalorder %s5213_s26, %s5213_s26 }
  0x43   : > { %p5216_p10 = pnand %p5214_p9, %p5576_p7  ;;  %p5223_p0 = por %p5222_p13, %p5221_p12 }
  0x45   : > { %p5217_p11 = pneg %p5216_p10 }
  0x47   : > { %p5224_p1 = pnand %p5223_p0, %p5217_p11 }
  0x49   : > { %5227 = shalt.err (!%p5224_p1)
}
  0x4a   : > { %s5453_s28 = smov 1024   ;;  %s5454_s24 = smov 64  }
  0x4b   : > { %5040 = dma.hbm_to_vmem [thread:$0]  (!%p5566_p6), %s6281_s11, 65536, %s506_s22, [#allocation18], %s5453_s28, %s5453_s28, %s5454_s24  }
  0x4c   : > { %s5455_s23 = smov [#allocation3]   ;;  %s5456_s17 = smov [#allocation7]  }
  0x4d   : > { %s396_s27 = sshll.u32 %s5455_s23, 4  ;;  %s423_s21 = sshll.u32 %s5456_s17, 4  ;;  %s397_s27 = int_to_ptr.vmem [resolvable:$true] %s396_s27  ;;  %s424_s21 = int_to_ptr.vmem [resolvable:$true] %s423_s21 }
  0x4e   : > { %s5239_s3 = scalar_lea.vmem %s397_s27, 1024  ;;  %p5247_p10 = scmp.lt.s32.totalorder %s397_s27, %s397_s27 }
  0x4f   : > { %p5240_p5 = scmp.ne.s32.totalorder %s397_s27, %s5239_s3  ;;  %p5248_p11 = scmp.lt.s32.totalorder %s5239_s3, %s5239_s3 }
  0x51   : > { %p5242_p8 = pnand %p5240_p5, %p5576_p7  ;;  %p5249_p12 = por %p5248_p11, %p5247_p10 }
  0x53   : > { %p5243_p9 = pneg %p5242_p8 }
  0x55   : > { %p5250_p13 = pnand %p5249_p12, %p5243_p9 }
  0x57   : > { %5253 = shalt.err (!%p5250_p13)
}
  0x58   : > { %s6295_s26 = smov 32   ;;  %s6296_s22 = smov 512  }
  0x59   : > { %5013 = dma.hbm_to_vmem [thread:$0]  (!%p5566_p6), %s6272_s2, 1024, %s397_s27, [#allocation4], %s6296_s22, %s6296_s22, %s6295_s26  }
  0x5a   : > { %s5265_s17 = scalar_lea.vmem %s424_s21, 64  ;;  %p5273_p8 = scmp.lt.s32.totalorder %s424_s21, %s424_s21 }
  0x5b   : > { %p5266_p0 = scmp.ne.s32.totalorder %s424_s21, %s5265_s17  ;;  %p5274_p2 = scmp.lt.s32.totalorder %s5265_s17, %s5265_s17 }
  0x5d   : > { %p5268_p1 = pnand %p5266_p0, %p5576_p7  ;;  %p5275_p10 = por %p5274_p2, %p5273_p8 }
  0x5f   : > { %p5269_p5 = pneg %p5268_p1 }
  0x61   : > { %p5276_p9 = pnand %p5275_p10, %p5269_p5 }
  0x63   : > { %5279 = shalt.err (!%p5276_p9)
}
  0x64   : > { %5019 = dma.hbm_to_vmem [thread:$0]  (!%p5566_p6), %s6274_s4, 64, %s424_s21, [#allocation6]  }
  0x65   : > { %s5457_s29 = smov [#allocation10]   ;;  %s5458_s27 = smov [#allocation13]  }
  0x66   : > { %s447_s23 = sshll.u32 %s5457_s29, 4  ;;  %s471_s26 = sshll.u32 %s5458_s27, 4  ;;  %s448_s23 = int_to_ptr.vmem [resolvable:$true] %s447_s23  ;;  %s472_s26 = int_to_ptr.vmem [resolvable:$true] %s471_s26 }
  0x67   : > { %s5291_s22 = scalar_lea.vmem %s448_s23, 64  ;;  %p5299_p13 = scmp.lt.s32.totalorder %s448_s23, %s448_s23 }
  0x68   : > { %p5292_p11 = scmp.ne.s32.totalorder %s448_s23, %s5291_s22  ;;  %p5300_p0 = scmp.lt.s32.totalorder %s5291_s22, %s5291_s22 }
  0x6a   : > { %p5294_p12 = pnand %p5292_p11, %p5576_p7  ;;  %p5301_p1 = por %p5300_p0, %p5299_p13 }
  0x6c   : > { %p5295_p2 = pneg %p5294_p12 }
  0x6e   : > { %p5302_p5 = pnand %p5301_p1, %p5295_p2 }
  0x70   : > { %5305 = shalt.err (!%p5302_p5)
}
  0x71   : > { %5025 = dma.hbm_to_vmem [thread:$0]  (!%p5566_p6), %s6276_s6, 64, %s448_s23, [#allocation9]  }
  0x72   : > { %s5317_s24 = scalar_lea.vmem %s472_s26, 64  ;;  %p5325_p3 = scmp.lt.s32.totalorder %s472_s26, %s472_s26 }
  0x73   : > { %p5318_p8 = scmp.ne.s32.totalorder %s472_s26, %s5317_s24  ;;  %p5326_p11 = scmp.lt.s32.totalorder %s5317_s24, %s5317_s24 }
  0x75   : > { %p5320_p10 = pnand %p5318_p8, %p5576_p7  ;;  %p5327_p12 = por %p5326_p11, %p5325_p3 }
  0x77   : > { %p5321_p9 = pneg %p5320_p10 }
  0x79   : > { %p5328_p4 = pnand %p5327_p12, %p5321_p9 }
  0x7b   : > { %5331 = shalt.err (!%p5328_p4)
}
  0x7c   : > { %5031 = dma.hbm_to_vmem [thread:$0]  (!%p5566_p6), %s6278_s8, 64, %s472_s26, [#allocation12]  }
  0x7d   : > { %s5459_s16 = smov [#allocation16]   ;;  %s5460_s23 = smov [#allocation19]  }
  0x7e   : > { %s495_s29 = sshll.u32 %s5459_s16, 4  ;;  %s519_s27 = sshll.u32 %s5460_s23, 4  ;;  %s496_s29 = int_to_ptr.vmem [resolvable:$true] %s495_s29  ;;  %s520_s27 = int_to_ptr.vmem [resolvable:$true] %s519_s27 }
  0x7f   : > { %s5343_s22 = scalar_lea.vmem %s496_s29, 64  ;;  %p5351_p0 = scmp.lt.s32.totalorder %s496_s29, %s496_s29 }
  0x80   : > { %p5344_p2 = scmp.ne.s32.totalorder %s496_s29, %s5343_s22  ;;  %p5352_p4 = scmp.lt.s32.totalorder %s5343_s22, %s5343_s22 }
  0x82   : > { %p5346_p13 = pnand %p5344_p2, %p5576_p7  ;;  %p5353_p1 = por %p5352_p4, %p5351_p0 }
  0x84   : > { %p5347_p3 = pneg %p5346_p13 }
  0x86   : > { %p5354_p5 = pnand %p5353_p1, %p5347_p3 }
  0x88   : > { %5357 = shalt.err (!%p5354_p5)
}
  0x89   : > { %5037 = dma.hbm_to_vmem [thread:$0]  (!%p5566_p6), %s6280_s10, 64, %s496_s29, [#allocation15]  }
  0x8a   : > { %s5369_s21 = scalar_lea.vmem %s520_s27, 128  ;;  %p5377_p11 = scmp.lt.s32.totalorder %s520_s27, %s520_s27 }
  0x8b   : > { %p5370_p8 = scmp.ne.s32.totalorder %s520_s27, %s5369_s21  ;;  %p5378_p12 = scmp.lt.s32.totalorder %s5369_s21, %s5369_s21 }
  0x8d   : > { %p5372_p10 = pnand %p5370_p8, %p5576_p7  ;;  %p5379_p2 = por %p5378_p12, %p5377_p11 }
  0x8f   : > { %p5373_p9 = pneg %p5372_p10 }
  0x91   : > { %p5380_p13 = pnand %p5379_p2, %p5373_p9 }
  0x93   : > { %5383 = shalt.err (!%p5380_p13)
}
  0x94   : > { %5043 = dma.hbm_to_vmem [thread:$0]  (!%p5566_p6), %s6282_s12, 128, %s520_s27, [#allocation18]  }
  0x95   : > { %s5461_s3 = smov [#allocation20]  }
  0x96   : > { %s533_s16 = sshll.u32 %s5461_s3, 4  ;;  %s534_s16 = int_to_ptr.vmem [resolvable:$true] %s533_s16 }
  0x97   : > { %s5395_s29 = scalar_lea.vmem %s534_s16, 16  ;;  %s5402_s23 = scalar_lea.vmem %s534_s16, 32 }
  0x98   : > { %p5396_p3 = scmp.ne.s32.totalorder %s534_s16, %s5395_s29  ;;  %p5403_p1 = scmp.lt.s32.totalorder %s534_s16, %s534_s16 }
  0x99   : > { %p5404_p5 = scmp.lt.s32.totalorder %s5402_s23, %s5395_s29 }
  0x9a   : > { %p5398_p0 = pnand %p5396_p3, %p5576_p7 }
  0x9b   : > { %p5405_p8 = por %p5404_p5, %p5403_p1 }
  0x9c   : > { %p5399_p4 = pneg %p5398_p0 }
  0x9e   : > { %p5406_p10 = pnand %p5405_p8, %p5399_p4 }
  0xa0   : > { %5409 = shalt.err (!%p5406_p10)
}
  0xa1   : > { %5046 = dma.hbm_to_vmem [thread:$0]  (!%p5566_p6), %s6284_s14, 16, %s534_s16, [#allocation21]  }
  0xa2   : > { %p6297_p9 = scmp.ne.s32.totalorder %s6291_s20, 0 }
  0xa3   : > { %p6298_p11 = scmp.eq.s32.totalorder (!%p6297_p9), %s5550_s19, 0 }
  0xa4   : > { %546 = sbr.rel (%p6297_p9) target bundleno = 2057 (0x809), region = 80 }
  0xa9   : > { %5415 = dma.done.wait (%p6298_p11), [#allocation4], 1024   ;;  %p6299_p7 = pmov %p6298_p11 }
  0xab   : > { %5417 = vsyncadd (%p6299_p7), [#allocation4], 4294966272  ;;  %p6300_p12 = pmov %p6299_p7 }
  0xac   : > { %p6301_p2 = pmov %p6299_p7 }
  0xad   : > { %5419 = dma.done.wait (%p6300_p12), [#allocation6], 32832  }
  0xae   : > { %5421 = vsyncadd (%p6301_p2), [#allocation6], 4294934464  ;;  %p6302_p13 = pmov %p6301_p2 }
  0xaf   : > { %p6303_p6 = pmov %p6301_p2 }
  0xb0   : > { %5423 = dma.done.wait (%p6302_p13), [#allocation9], 32832  }
  0xb1   : > { %5425 = vsyncadd (%p6303_p6), [#allocation9], 4294934464  ;;  %p6304_p3 = pmov %p6301_p2 }
  0xb2   : > { %p6305_p0 = pmov %p6301_p2 }
  0xb3   : > { %5427 = dma.done.wait (%p6304_p3), [#allocation12], 32832  }
  0xb4   : > { %5429 = vsyncadd (%p6305_p0), [#allocation12], 4294934464  ;;  %p6306_p4 = pmov %p6305_p0 }
  0xb5   : > { %p6307_p1 = pmov %p6305_p0 }
  0xb6   : > { %5431 = dma.done.wait (%p6306_p4), [#allocation15], 32832  }
  0xb7   : > { %5433 = vsyncadd (%p6307_p1), [#allocation15], 4294934464  ;;  %p6308_p5 = pmov %p6305_p0 }
  0xb8   : > { %p6309_p8 = pmov %p6305_p0 }
  0xb9   : > { %5435 = dma.done.wait (%p6308_p5), [#allocation18], 65664  }
  0xba   : > { %5437 = vsyncadd (%p6309_p8), [#allocation18], 4294901632  ;;  %p6310_p10 = pmov %p6305_p0 }
  0xbb   : > { %p6311_p9 = pmov %p6305_p0 }
  0xbc   : > { %5439 = dma.done.wait (%p6310_p10), [#allocation21], 16  }
  0xbd   : > { %5441 = vsyncadd (%p6311_p9), [#allocation21], 4294967280  ;;  %p632_p11 = scmp.lt.s32.totalorder %s5550_s19, 2  ;;  %p6312_p7 = scmp.ne.s32.totalorder %s5550_s19, 0 }
  0xbf   : > { %s633_s20 = scalar_select %p632_p11, %s5550_s19, 2 }
  0xc0   : > { %639 = sbr.rel (%p6312_p7) target bundleno = 199 (0xc7), region = 132 }
  0xc1   : > { %s4815_s25 = sshll.u32 %s633_s20, 1 }
  0xc2   : > { %s5725_s26 = scalar_lea.vmem %s6285_s15, %s4815_s25 }
  0xc5   : > { %v640_v0 = vld [vmem:[%s6270_s0] sm:$0x3]  ;;  %vm641_vm0 = vcmask 123904  }
  0xc6   : > { %642 = vst.msk [vmem:[#allocation2] sm:$0x3] %vm641_vm0, %v640_v0 }
  0xc7 PF: > { %v649_v1 = vld [vmem:[#allocation3 + $0x28] sm:$0xff]  ;;  %v651_v2 = vld [vmem:[#allocation3 + $0x38] sm:$0xff]  ;;  %v648_v3 = vld [vmem:[#allocation3 + $0x20] sm:$0xff]  ;;  %vm675_vm1 = vcmask 130048   ;;  %v5462_v10 = vmov 0.0   ;;  %vm4626_vm2 = vcmask 123904  }
  0xc8   : > { %707 = vmatprep.subr.mxu0 %v649_v1  ;;  %778 = vmatprep.subr.mxu1 %v651_v2  ;;  %v650_v4 = vld [vmem:[#allocation3 + $0x30] sm:$0xff]  ;;  %v645_v5 = vld [vmem:[#allocation3 + $0x8] sm:$0xff]  ;;  %v647_v6 = vld [vmem:[#allocation3 + $0x18] sm:$0xff] }
  0xc9   : > { %708 = vmatpush1.msra.mxu0 %v648_v3  ;;  %779 = vmatpush1.msra.mxu1 %v650_v4  ;;  %v644_v7 = vld [vmem:[#allocation3] sm:$0xff]  ;;  %v646_v8 = vld [vmem:[#allocation3 + $0x10] sm:$0xff]  ;;  %v882_v11 = vld [vmem:[#allocation5 + $0x1e8] sm:$0xff] }
  0xca   : > { %709 = vmatprep.subr.mxu0 %v645_v5  ;;  %780 = vmatprep.subr.mxu1 %v647_v6  ;;  %v1010_v12 = vld [vmem:[#allocation5 + $0x5e8] sm:$0xff]  ;;  %v881_v13 = vld [vmem:[#allocation5 + $0x1e0] sm:$0xff] }
  0xcb   : > { %710 = vmatpush1.msra.mxu0 %v644_v7  ;;  %743 = vmatprep.mubr.f32.mxu0 %v5462_v10  ;;  %v1009_v14 = vld [vmem:[#allocation5 + $0x5e0] sm:$0xff]  ;;  %v878_v15 = vld [vmem:[#allocation5 + $0x1c8] sm:$0xff] }
  0xcc   : > { %781 = vmatpush1.msra.mxu1 %v646_v8  ;;  %814 = vmatprep.mubr.f32.mxu1 %v5462_v10  ;;  %v1006_v16 = vld [vmem:[#allocation5 + $0x5c8] sm:$0xff]  ;;  %v877_v17 = vld [vmem:[#allocation5 + $0x1c0] sm:$0xff] }
  0xcd   : > { %v643_v9 = vld [vmem:[#allocation2] sm:$0x3]  ;;  %1099 = vmatprep.subr.mxu0 %v882_v11  ;;  %1170 = vmatprep.subr.mxu1 %v1010_v12  ;;  %v1005_v18 = vld [vmem:[#allocation5 + $0x5c0] sm:$0xff]  ;;  %v874_v19 = vld [vmem:[#allocation5 + $0x1a8] sm:$0xff] }
  0xce   : > { %4817 = vmatmul.mubr.msk.f32.vlgmr.msra.gmra.mxu0 %vm675_vm1, %v643_v9  ;;  %4818 = vmatmul.mubr.msk.f32.vlgmr.msra.gmra.mxu1 %vm675_vm1, %v643_v9  ;;  %v1002_v20 = vld [vmem:[#allocation5 + $0x5a8] sm:$0xff]  ;;  %v873_v21 = vld [vmem:[#allocation5 + $0x1a0] sm:$0xff] }
  0xcf   : > { %1100 = vmatpush1.msra.mxu0 %v881_v13  ;;  %1171 = vmatpush1.msra.mxu1 %v1009_v14  ;;  %v1001_v22 = vld [vmem:[#allocation5 + $0x5a0] sm:$0xff]  ;;  %v870_v23 = vld [vmem:[#allocation5 + $0x188] sm:$0xff] }
  0xd0   : > { %1101 = vmatprep.subr.mxu0 %v878_v15  ;;  %1172 = vmatprep.subr.mxu1 %v1006_v16  ;;  %v998_v24 = vld [vmem:[#allocation5 + $0x588] sm:$0xff]  ;;  %v869_v25 = vld [vmem:[#allocation5 + $0x180] sm:$0xff] }
  0xd1   : > { %1102 = vmatpush1.msra.mxu0 %v877_v17  ;;  %1173 = vmatpush1.msra.mxu1 %v1005_v18  ;;  %v997_v26 = vld [vmem:[#allocation5 + $0x580] sm:$0xff]  ;;  %v866_v27 = vld [vmem:[#allocation5 + $0x168] sm:$0xff] }
  0xd2   : > { %1103 = vmatprep.subr.mxu0 %v874_v19  ;;  %1174 = vmatprep.subr.mxu1 %v1002_v20  ;;  %v994_v28 = vld [vmem:[#allocation5 + $0x568] sm:$0xff]  ;;  %v865_v29 = vld [vmem:[#allocation5 + $0x160] sm:$0xff] }
  0xd3   : > { %1104 = vmatpush1.msra.mxu0 %v873_v21  ;;  %1175 = vmatpush1.msra.mxu1 %v1001_v22  ;;  %v993_v30 = vld [vmem:[#allocation5 + $0x560] sm:$0xff]  ;;  %v862_v31 = vld [vmem:[#allocation5 + $0x148] sm:$0xff] }
  0xd4   : > { %1105 = vmatprep.subr.mxu0 %v870_v23  ;;  %1176 = vmatprep.subr.mxu1 %v998_v24  ;;  %v990_v32 = vld [vmem:[#allocation5 + $0x548] sm:$0xff]  ;;  %v861_v33 = vld [vmem:[#allocation5 + $0x140] sm:$0xff] }
  0xd5   : > { %1106 = vmatpush1.msra.mxu0 %v869_v25  ;;  %1177 = vmatpush1.msra.mxu1 %v997_v26  ;;  %v989_v34 = vld [vmem:[#allocation5 + $0x540] sm:$0xff]  ;;  %v858_v35 = vld [vmem:[#allocation5 + $0x128] sm:$0xff] }
  0xd6   : > { %1107 = vmatprep.subr.mxu0 %v866_v27  ;;  %1178 = vmatprep.subr.mxu1 %v994_v28  ;;  %v986_v36 = vld [vmem:[#allocation5 + $0x528] sm:$0xff]  ;;  %v857_v37 = vld [vmem:[#allocation5 + $0x120] sm:$0xff] }
  0xd7   : > { %1108 = vmatpush1.msra.mxu0 %v865_v29  ;;  %1179 = vmatpush1.msra.mxu1 %v993_v30  ;;  %v985_v38 = vld [vmem:[#allocation5 + $0x520] sm:$0xff]  ;;  %v854_v39 = vld [vmem:[#allocation5 + $0x108] sm:$0xff] }
  0xd8   : > { %1109 = vmatprep.subr.mxu0 %v862_v31  ;;  %1180 = vmatprep.subr.mxu1 %v990_v32  ;;  %v982_v40 = vld [vmem:[#allocation5 + $0x508] sm:$0xff]  ;;  %v853_v41 = vld [vmem:[#allocation5 + $0x100] sm:$0xff] }
  0xd9   : > { %1110 = vmatpush1.msra.mxu0 %v861_v33  ;;  %1181 = vmatpush1.msra.mxu1 %v989_v34  ;;  %v981_v42 = vld [vmem:[#allocation5 + $0x500] sm:$0xff]  ;;  %v850_v43 = vld [vmem:[#allocation5 + $0xe8] sm:$0xff] }
  0xda   : > { %1111 = vmatprep.subr.mxu0 %v858_v35  ;;  %1182 = vmatprep.subr.mxu1 %v986_v36  ;;  %v978_v44 = vld [vmem:[#allocation5 + $0x4e8] sm:$0xff]  ;;  %v849_v45 = vld [vmem:[#allocation5 + $0xe0] sm:$0xff] }
  0xdb   : > { %1112 = vmatpush1.msra.mxu0 %v857_v37  ;;  %1183 = vmatpush1.msra.mxu1 %v985_v38  ;;  %v977_v46 = vld [vmem:[#allocation5 + $0x4e0] sm:$0xff]  ;;  %v846_v47 = vld [vmem:[#allocation5 + $0xc8] sm:$0xff] }
  0xdc   : > { %1113 = vmatprep.subr.mxu0 %v854_v39  ;;  %1184 = vmatprep.subr.mxu1 %v982_v40  ;;  %v974_v48 = vld [vmem:[#allocation5 + $0x4c8] sm:$0xff]  ;;  %v845_v49 = vld [vmem:[#allocation5 + $0xc0] sm:$0xff] }
  0xdd   : > { %1114 = vmatpush1.msra.mxu0 %v853_v41  ;;  %1185 = vmatpush1.msra.mxu1 %v981_v42  ;;  %v973_v50 = vld [vmem:[#allocation5 + $0x4c0] sm:$0xff]  ;;  %v842_v51 = vld [vmem:[#allocation5 + $0xa8] sm:$0xff] }
  0xde   : > { %1115 = vmatprep.subr.mxu0 %v850_v43  ;;  %1186 = vmatprep.subr.mxu1 %v978_v44  ;;  %v970_v52 = vld [vmem:[#allocation5 + $0x4a8] sm:$0xff]  ;;  %v841_v53 = vld [vmem:[#allocation5 + $0xa0] sm:$0xff] }
  0xdf   : > { %1116 = vmatpush1.msra.mxu0 %v849_v45  ;;  %1187 = vmatpush1.msra.mxu1 %v977_v46  ;;  %v969_v54 = vld [vmem:[#allocation5 + $0x4a0] sm:$0xff]  ;;  %v838_v55 = vld [vmem:[#allocation5 + $0x88] sm:$0xff] }
  0xe0   : > { %1117 = vmatprep.subr.mxu0 %v846_v47  ;;  %1188 = vmatprep.subr.mxu1 %v974_v48  ;;  %v966_v56 = vld [vmem:[#allocation5 + $0x488] sm:$0xff]  ;;  %v837_v57 = vld [vmem:[#allocation5 + $0x80] sm:$0xff] }
  0xe1   : > { %1118 = vmatpush1.msra.mxu0 %v845_v49  ;;  %1189 = vmatpush1.msra.mxu1 %v973_v50  ;;  %v965_v58 = vld [vmem:[#allocation5 + $0x480] sm:$0xff]  ;;  %v834_v59 = vld [vmem:[#allocation5 + $0x68] sm:$0xff] }
  0xe2   : > { %1119 = vmatprep.subr.mxu0 %v842_v51  ;;  %1190 = vmatprep.subr.mxu1 %v970_v52  ;;  %v962_v60 = vld [vmem:[#allocation5 + $0x468] sm:$0xff]  ;;  %v833_v61 = vld [vmem:[#allocation5 + $0x60] sm:$0xff] }
  0xe3   : > { %1120 = vmatpush1.msra.mxu0 %v841_v53  ;;  %1191 = vmatpush1.msra.mxu1 %v969_v54  ;;  %v961_v62 = vld [vmem:[#allocation5 + $0x460] sm:$0xff]  ;;  %v830_v63 = vld [vmem:[#allocation5 + $0x48] sm:$0xff] }
  0xe4   : > { %1121 = vmatprep.subr.mxu0 %v838_v55  ;;  %1192 = vmatprep.subr.mxu1 %v966_v56  ;;  %v958_v0 = vld [vmem:[#allocation5 + $0x448] sm:$0xff]  ;;  %v829_v1 = vld [vmem:[#allocation5 + $0x40] sm:$0xff] }
  0xe5   : > { %1122 = vmatpush1.msra.mxu0 %v837_v57  ;;  %1193 = vmatpush1.msra.mxu1 %v965_v58  ;;  %v957_v2 = vld [vmem:[#allocation5 + $0x440] sm:$0xff]  ;;  %v826_v3 = vld [vmem:[#allocation5 + $0x28] sm:$0xff] }
  0xe6   : > { %1123 = vmatprep.subr.mxu0 %v834_v59  ;;  %1194 = vmatprep.subr.mxu1 %v962_v60  ;;  %v954_v4 = vld [vmem:[#allocation5 + $0x428] sm:$0xff]  ;;  %v825_v5 = vld [vmem:[#allocation5 + $0x20] sm:$0xff] }
  0xe7   : > { %1124 = vmatpush1.msra.mxu0 %v833_v61  ;;  %1195 = vmatpush1.msra.mxu1 %v961_v62  ;;  %v953_v6 = vld [vmem:[#allocation5 + $0x420] sm:$0xff]  ;;  %v822_v7 = vld [vmem:[#allocation5 + $0x8] sm:$0xff] }
  0xe8   : > { %1125 = vmatprep.subr.mxu0 %v830_v63  ;;  %1196 = vmatprep.subr.mxu1 %v958_v0  ;;  %v950_v8 = vld [vmem:[#allocation5 + $0x408] sm:$0xff]  ;;  %v821_v9 = vld [vmem:[#allocation5] sm:$0xff] }
  0xe9   : > { %1126 = vmatpush1.msra.mxu0 %v829_v1  ;;  %1197 = vmatpush1.msra.mxu1 %v957_v2  ;;  %v949_v10 = vld [vmem:[#allocation5 + $0x400] sm:$0xff]  ;;  %v946_v11 = vld [vmem:[#allocation5 + $0x3e8] sm:$0xff] }
  0xea   : > { %1127 = vmatprep.subr.mxu0 %v826_v3  ;;  %1198 = vmatprep.subr.mxu1 %v954_v4  ;;  %v1074_v12 = vld [vmem:[#allocation5 + $0x7e8] sm:$0xff]  ;;  %v945_v13 = vld [vmem:[#allocation5 + $0x3e0] sm:$0xff] }
  0xeb   : > { %1128 = vmatpush1.msra.mxu0 %v825_v5  ;;  %1199 = vmatpush1.msra.mxu1 %v953_v6  ;;  %v1073_v14 = vld [vmem:[#allocation5 + $0x7e0] sm:$0xff]  ;;  %v942_v15 = vld [vmem:[#allocation5 + $0x3c8] sm:$0xff] }
  0xec   : > { %1129 = vmatprep.subr.mxu0 %v822_v7  ;;  %1200 = vmatprep.subr.mxu1 %v950_v8  ;;  %v1070_v16 = vld [vmem:[#allocation5 + $0x7c8] sm:$0xff]  ;;  %v941_v17 = vld [vmem:[#allocation5 + $0x3c0] sm:$0xff] }
  0xed   : > { %1130 = vmatpush1.msra.mxu0 %v821_v9  ;;  %1201 = vmatpush1.msra.mxu1 %v949_v10  ;;  %v1069_v18 = vld [vmem:[#allocation5 + $0x7c0] sm:$0xff]  ;;  %v938_v19 = vld [vmem:[#allocation5 + $0x3a8] sm:$0xff] }
  0xee   : > { %1131 = vmatprep.subr.mxu0 %v946_v11  ;;  %1202 = vmatprep.subr.mxu1 %v1074_v12  ;;  %v1066_v20 = vld [vmem:[#allocation5 + $0x7a8] sm:$0xff]  ;;  %v937_v21 = vld [vmem:[#allocation5 + $0x3a0] sm:$0xff]  ;;  %v884_v11 = vld [vmem:[#allocation5 + $0x1f8] sm:$0xff] }
  0xef   : > { %1132 = vmatpush2.msra.mxu0 %v945_v13  ;;  %1203 = vmatpush2.msra.mxu1 %v1073_v14  ;;  %v1065_v22 = vld [vmem:[#allocation5 + $0x7a0] sm:$0xff]  ;;  %v934_v23 = vld [vmem:[#allocation5 + $0x388] sm:$0xff]  ;;  %v1012_v12 = vld [vmem:[#allocation5 + $0x5f8] sm:$0xff]  ;;  %v5463_v13 = vmov 1983009808  }
  0xf0   : > { %1133 = vmatprep.subr.mxu0 %v942_v15  ;;  %1204 = vmatprep.subr.mxu1 %v1070_v16  ;;  %v1062_v24 = vld [vmem:[#allocation5 + $0x788] sm:$0xff]  ;;  %v933_v25 = vld [vmem:[#allocation5 + $0x380] sm:$0xff]  ;;  %v656_v14 = vunpack.c.l.s4 %v5463_v13  ;;  %v658_v15 = vlaneseq  ;;  %v839_v13 = vld [vmem:[#allocation5 + $0x90] sm:$0xff] }
  0xf1   : > { %1134 = vmatpush2.msra.mxu0 %v941_v17  ;;  %1205 = vmatpush2.msra.mxu1 %v1069_v18  ;;  %v1061_v26 = vld [vmem:[#allocation5 + $0x780] sm:$0xff]  ;;  %v930_v27 = vld [vmem:[#allocation5 + $0x368] sm:$0xff] }
  0xf2   : > { %1135 = vmatprep.subr.mxu0 %v938_v19  ;;  %1206 = vmatprep.subr.mxu1 %v1066_v20  ;;  %v1058_v28 = vld [vmem:[#allocation5 + $0x768] sm:$0xff]  ;;  %v929_v29 = vld [vmem:[#allocation5 + $0x360] sm:$0xff]  ;;  %v657_v16 = vunpack.c.0.s8 %v656_v14  ;;  %v5732_v17 = vshrl.u32 %v658_v15, 7  ;;  %v967_v14 = vld [vmem:[#allocation5 + $0x490] sm:$0xff] }
  0xf3   : > { %1136 = vmatpush2.msra.mxu0 %v937_v21  ;;  %1207 = vmatpush2.msra.mxu1 %v1065_v22  ;;  %v1057_v30 = vld [vmem:[#allocation5 + $0x760] sm:$0xff]  ;;  %v926_v31 = vld [vmem:[#allocation5 + $0x348] sm:$0xff]  ;;  %v836_v15 = vld [vmem:[#allocation5 + $0x78] sm:$0xff] }
  0xf4   : > { %1137 = vmatprep.subr.mxu0 %v934_v23  ;;  %1208 = vmatprep.subr.mxu1 %v1062_v24  ;;  %v1054_v32 = vld [vmem:[#allocation5 + $0x748] sm:$0xff]  ;;  %v925_v33 = vld [vmem:[#allocation5 + $0x340] sm:$0xff]  ;;  %v660_v19 = vsub.s32 %v657_v16, %v5732_v17  ;;  %v964_v16 = vld [vmem:[#allocation5 + $0x478] sm:$0xff] }
  0xf5   : > { %1138 = vmatpush2.msra.mxu0 %v933_v25  ;;  %1209 = vmatpush2.msra.mxu1 %v1061_v26  ;;  %v1053_v34 = vld [vmem:[#allocation5 + $0x740] sm:$0xff]  ;;  %v922_v35 = vld [vmem:[#allocation5 + $0x328] sm:$0xff] }
  0xf6   : > { %1139 = vmatprep.subr.mxu0 %v930_v27  ;;  %1210 = vmatprep.subr.mxu1 %v1058_v28  ;;  %v1050_v36 = vld [vmem:[#allocation5 + $0x728] sm:$0xff]  ;;  %v921_v37 = vld [vmem:[#allocation5 + $0x320] sm:$0xff] }
  0xf7   : > { %1140 = vmatpush2.msra.mxu0 %v929_v29  ;;  %1211 = vmatpush2.msra.mxu1 %v1057_v30  ;;  %v1049_v38 = vld [vmem:[#allocation5 + $0x720] sm:$0xff]  ;;  %v918_v39 = vld [vmem:[#allocation5 + $0x308] sm:$0xff] }
  0xf8   : > { %1141 = vmatprep.subr.mxu0 %v926_v31  ;;  %1212 = vmatprep.subr.mxu1 %v1054_v32  ;;  %v1046_v40 = vld [vmem:[#allocation5 + $0x708] sm:$0xff]  ;;  %v917_v41 = vld [vmem:[#allocation5 + $0x300] sm:$0xff] }
  0xf9   : > { %1142 = vmatpush2.msra.mxu0 %v925_v33  ;;  %1213 = vmatpush2.msra.mxu1 %v1053_v34  ;;  %v1045_v42 = vld [vmem:[#allocation5 + $0x700] sm:$0xff]  ;;  %v914_v43 = vld [vmem:[#allocation5 + $0x2e8] sm:$0xff]  ;;  %v883_v33 = vld [vmem:[#allocation5 + $0x1f0] sm:$0xff] }
  0xfa   : > { %1143 = vmatprep.subr.mxu0 %v922_v35  ;;  %1214 = vmatprep.subr.mxu1 %v1050_v36  ;;  %v1042_v44 = vld [vmem:[#allocation5 + $0x6e8] sm:$0xff]  ;;  %v913_v45 = vld [vmem:[#allocation5 + $0x2e0] sm:$0xff]  ;;  %v1011_v34 = vld [vmem:[#allocation5 + $0x5f0] sm:$0xff] }
  0xfb   : > { %1144 = vmatpush2.msra.mxu0 %v921_v37  ;;  %1215 = vmatpush2.msra.mxu1 %v1049_v38  ;;  %v1041_v46 = vld [vmem:[#allocation5 + $0x6e0] sm:$0xff]  ;;  %v910_v47 = vld [vmem:[#allocation5 + $0x2c8] sm:$0xff]  ;;  %v880_v35 = vld [vmem:[#allocation5 + $0x1d8] sm:$0xff] }
  0xfc   : > { %1145 = vmatprep.subr.mxu0 %v918_v39  ;;  %1216 = vmatprep.subr.mxu1 %v1046_v40  ;;  %v1038_v48 = vld [vmem:[#allocation5 + $0x6c8] sm:$0xff]  ;;  %v909_v49 = vld [vmem:[#allocation5 + $0x2c0] sm:$0xff]  ;;  %v1008_v36 = vld [vmem:[#allocation5 + $0x5d8] sm:$0xff] }
  0xfd   : > { %1146 = vmatpush2.msra.mxu0 %v917_v41  ;;  %1217 = vmatpush2.msra.mxu1 %v1045_v42  ;;  %v1037_v50 = vld [vmem:[#allocation5 + $0x6c0] sm:$0xff]  ;;  %v906_v51 = vld [vmem:[#allocation5 + $0x2a8] sm:$0xff]  ;;  %v879_v37 = vld [vmem:[#allocation5 + $0x1d0] sm:$0xff] }
  0xfe   : > { %1147 = vmatprep.subr.mxu0 %v914_v43  ;;  %1218 = vmatprep.subr.mxu1 %v1042_v44  ;;  %v1034_v52 = vld [vmem:[#allocation5 + $0x6a8] sm:$0xff]  ;;  %v905_v53 = vld [vmem:[#allocation5 + $0x2a0] sm:$0xff]  ;;  %v1007_v38 = vld [vmem:[#allocation5 + $0x5d0] sm:$0xff] }
  0xff   : > { %1148 = vmatpush2.msra.mxu0 %v913_v45  ;;  %1219 = vmatpush2.msra.mxu1 %v1041_v46  ;;  %v1033_v54 = vld [vmem:[#allocation5 + $0x6a0] sm:$0xff]  ;;  %v902_v55 = vld [vmem:[#allocation5 + $0x288] sm:$0xff]  ;;  %v876_v39 = vld [vmem:[#allocation5 + $0x1b8] sm:$0xff] }
 0x100   : > { %1149 = vmatprep.subr.mxu0 %v910_v47  ;;  %1220 = vmatprep.subr.mxu1 %v1038_v48  ;;  %v1030_v56 = vld [vmem:[#allocation5 + $0x688] sm:$0xff]  ;;  %v901_v57 = vld [vmem:[#allocation5 + $0x280] sm:$0xff]  ;;  %v1004_v40 = vld [vmem:[#allocation5 + $0x5b8] sm:$0xff] }
 0x101   : > { %1150 = vmatpush2.msra.mxu0 %v909_v49  ;;  %1221 = vmatpush2.msra.mxu1 %v1037_v50  ;;  %v1029_v58 = vld [vmem:[#allocation5 + $0x680] sm:$0xff]  ;;  %v898_v59 = vld [vmem:[#allocation5 + $0x268] sm:$0xff]  ;;  %v875_v41 = vld [vmem:[#allocation5 + $0x1b0] sm:$0xff] }
 0x102   : > { %1151 = vmatprep.subr.mxu0 %v906_v51  ;;  %1222 = vmatprep.subr.mxu1 %v1034_v52  ;;  %v1026_v60 = vld [vmem:[#allocation5 + $0x668] sm:$0xff]  ;;  %v897_v61 = vld [vmem:[#allocation5 + $0x260] sm:$0xff]  ;;  %v1003_v42 = vld [vmem:[#allocation5 + $0x5b0] sm:$0xff] }
 0x103   : > { %1152 = vmatpush2.msra.mxu0 %v905_v53  ;;  %1223 = vmatpush2.msra.mxu1 %v1033_v54  ;;  %v1025_v62 = vld [vmem:[#allocation5 + $0x660] sm:$0xff]  ;;  %v894_v63 = vld [vmem:[#allocation5 + $0x248] sm:$0xff]  ;;  %v872_v43 = vld [vmem:[#allocation5 + $0x198] sm:$0xff] }
 0x104   : > { %1153 = vmatprep.subr.mxu0 %v902_v55  ;;  %1224 = vmatprep.subr.mxu1 %v1030_v56  ;;  %v1022_v0 = vld [vmem:[#allocation5 + $0x648] sm:$0xff]  ;;  %v893_v1 = vld [vmem:[#allocation5 + $0x240] sm:$0xff]  ;;  %v1000_v44 = vld [vmem:[#allocation5 + $0x598] sm:$0xff] }
 0x105   : > { %1154 = vmatpush2.msra.mxu0 %v901_v57  ;;  %1225 = vmatpush2.msra.mxu1 %v1029_v58  ;;  %v1021_v2 = vld [vmem:[#allocation5 + $0x640] sm:$0xff]  ;;  %v890_v3 = vld [vmem:[#allocation5 + $0x228] sm:$0xff]  ;;  %v871_v45 = vld [vmem:[#allocation5 + $0x190] sm:$0xff] }
 0x106   : > { %1155 = vmatprep.subr.mxu0 %v898_v59  ;;  %1226 = vmatprep.subr.mxu1 %v1026_v60  ;;  %v1018_v4 = vld [vmem:[#allocation5 + $0x628] sm:$0xff]  ;;  %v889_v5 = vld [vmem:[#allocation5 + $0x220] sm:$0xff]  ;;  %v999_v46 = vld [vmem:[#allocation5 + $0x590] sm:$0xff] }
 0x107   : > { %1156 = vmatpush2.msra.mxu0 %v897_v61  ;;  %1227 = vmatpush2.msra.mxu1 %v1025_v62  ;;  %v1017_v6 = vld [vmem:[#allocation5 + $0x620] sm:$0xff]  ;;  %v886_v7 = vld [vmem:[#allocation5 + $0x208] sm:$0xff]  ;;  %v868_v47 = vld [vmem:[#allocation5 + $0x178] sm:$0xff] }
 0x108   : > { %1157 = vmatprep.subr.mxu0 %v894_v63  ;;  %1228 = vmatprep.subr.mxu1 %v1022_v0  ;;  %v1014_v8 = vld [vmem:[#allocation5 + $0x608] sm:$0xff]  ;;  %v885_v9 = vld [vmem:[#allocation5 + $0x200] sm:$0xff]  ;;  %v996_v48 = vld [vmem:[#allocation5 + $0x578] sm:$0xff] }
 0x109   : > { %1158 = vmatpush2.msra.mxu0 %v893_v1  ;;  %1229 = vmatpush2.msra.mxu1 %v1021_v2  ;;  %v1013_v10 = vld [vmem:[#allocation5 + $0x600] sm:$0xff]  ;;  %v867_v49 = vld [vmem:[#allocation5 + $0x170] sm:$0xff]  ;;  %v864_v51 = vld [vmem:[#allocation5 + $0x158] sm:$0xff] }
 0x10a   : > { %1159 = vmatprep.subr.mxu0 %v890_v3  ;;  %1230 = vmatprep.subr.mxu1 %v1018_v4  ;;  %v652_v18 = vld [vmem:[%s6271_s1] sm:$0xff]  ;;  %v995_v50 = vld [vmem:[#allocation5 + $0x570] sm:$0xff] }
 0x10b   : > { %1160 = vmatpush2.msra.mxu0 %v889_v5  ;;  %1231 = vmatpush2.msra.mxu1 %v1017_v6  ;;  %v654_v20 = vcombine.high %v652_v18, %v652_v18  ;;  %v661_v21 = vrot.slane %v652_v18, %v660_v19  ;;  %v992_v52 = vld [vmem:[#allocation5 + $0x558] sm:$0xff]  ;;  %v863_v53 = vld [vmem:[#allocation5 + $0x150] sm:$0xff] }
 0x10c   : > { %1161 = vmatprep.subr.mxu0 %v886_v7  ;;  %1232 = vmatprep.subr.mxu1 %v1014_v8  ;;  %v991_v54 = vld [vmem:[#allocation5 + $0x550] sm:$0xff]  ;;  %v860_v55 = vld [vmem:[#allocation5 + $0x138] sm:$0xff] }
 0x10d   : > { %1162 = vmatpush2.msra.mxu0 %v885_v9  ;;  %1233 = vmatpush2.msra.mxu1 %v1013_v10  ;;  %v668_v22 = vrot.slane %v654_v20, %v660_v19  ;;  %v669_v23 = vcombine.high %v661_v21, %v661_v21  ;;  %v988_v56 = vld [vmem:[#allocation5 + $0x538] sm:$0xff]  ;;  %v859_v57 = vld [vmem:[#allocation5 + $0x130] sm:$0xff] }
 0x10e   : > { %1241 = vmatprep.subr.mxu0 %v884_v11  ;;  %1312 = vmatprep.subr.mxu1 %v1012_v12  ;;  %v987_v58 = vld [vmem:[#allocation5 + $0x530] sm:$0xff]  ;;  %v856_v59 = vld [vmem:[#allocation5 + $0x118] sm:$0xff] }
 0x10f   : > { %v670_v24 = vcombine.high %v668_v22, %v668_v22  ;;  %v984_v60 = vld [vmem:[#allocation5 + $0x518] sm:$0xff]  ;;  %v855_v61 = vld [vmem:[#allocation5 + $0x110] sm:$0xff] }
 0x110   : > { %v983_v62 = vld [vmem:[#allocation5 + $0x510] sm:$0xff]  ;;  %v852_v63 = vld [vmem:[#allocation5 + $0xf8] sm:$0xff] }
 0x111   : > { %v980_v0 = vld [vmem:[#allocation5 + $0x4f8] sm:$0xff]  ;;  %v851_v1 = vld [vmem:[#allocation5 + $0xf0] sm:$0xff] }
 0x112   : > { %v979_v2 = vld [vmem:[#allocation5 + $0x4f0] sm:$0xff]  ;;  %v848_v3 = vld [vmem:[#allocation5 + $0xd8] sm:$0xff] }
 0x113   : > { %v976_v4 = vld [vmem:[#allocation5 + $0x4d8] sm:$0xff]  ;;  %v847_v5 = vld [vmem:[#allocation5 + $0xd0] sm:$0xff] }
 0x114   : > { %v975_v6 = vld [vmem:[#allocation5 + $0x4d0] sm:$0xff]  ;;  %v844_v7 = vld [vmem:[#allocation5 + $0xb8] sm:$0xff] }
 0x115   : > { %v972_v8 = vld [vmem:[#allocation5 + $0x4b8] sm:$0xff]  ;;  %v843_v9 = vld [vmem:[#allocation5 + $0xb0] sm:$0xff] }
 0x116   : > { %v971_v10 = vld [vmem:[#allocation5 + $0x4b0] sm:$0xff]  ;;  %v840_v11 = vld [vmem:[#allocation5 + $0x98] sm:$0xff] }
 0x117   : > { %v968_v12 = vld [vmem:[#allocation5 + $0x498] sm:$0xff]  ;;  %v835_v18 = vld [vmem:[#allocation5 + $0x70] sm:$0xff] }
 0x118   : > { %v963_v19 = vld [vmem:[#allocation5 + $0x470] sm:$0xff]  ;;  %v832_v20 = vld [vmem:[#allocation5 + $0x58] sm:$0xff] }
 0x18e   : > { %v745_v25 = vpop.f32.mrf.mxu0  ;;  %v816_v26 = vpop.f32.mrf.mxu1 }
 0x18f   : > { %v5738_v27 = vadd.f32 %v816_v26, %v668_v22  ;;  %v5740_v32 = vadd.f32 %v745_v25, %v661_v21  ;;  %v960_v21 = vld [vmem:[#allocation5 + $0x458] sm:$0xff]  ;;  %v831_v22 = vld [vmem:[#allocation5 + $0x50] sm:$0xff] }
 0x190   : > { %v747_v28 = vpop.f32.mrf.mxu0  ;;  %v818_v29 = vpop.f32.mrf.mxu1  ;;  %v956_v25 = vld [vmem:[#allocation5 + $0x438] sm:$0xff]  ;;  %v827_v26 = vld [vmem:[#allocation5 + $0x30] sm:$0xff] }
 0x191   : > { %v748_v30 = vadd.f32 %v747_v28, %v669_v23  ;;  %v819_v31 = vadd.f32 %v818_v29, %v670_v24  ;;  %v959_v23 = vld [vmem:[#allocation5 + $0x450] sm:$0xff]  ;;  %v828_v24 = vld [vmem:[#allocation5 + $0x38] sm:$0xff] }
 0x192   : > { %v955_v28 = vld [vmem:[#allocation5 + $0x430] sm:$0xff]  ;;  %v824_v29 = vld [vmem:[#allocation5 + $0x18] sm:$0xff] }
 0x193   : > { %1163 = vmatprep.mubr.f32.mxu0 %v748_v30  ;;  %1234 = vmatprep.mubr.f32.mxu1 %v819_v31 }
 0x194   : > { %1164 = vmatmul.mubr.f32.vlgmr.msra.gmra.mxu0 %v5740_v32  ;;  %1235 = vmatmul.mubr.f32.vlgmr.msra.gmra.mxu1 %v5738_v27 }
 0x195   : > { %1242 = vmatpush1.msra.mxu0 %v883_v33  ;;  %1313 = vmatpush1.msra.mxu1 %v1011_v34  ;;  %v951_v33 = vld [vmem:[#allocation5 + $0x410] sm:$0xff]  ;;  %v948_v34 = vld [vmem:[#allocation5 + $0x3f8] sm:$0xff] }
 0x196   : > { %1243 = vmatprep.subr.mxu0 %v880_v35  ;;  %1305 = vmatprep.mubr.f32.mxu0 %v748_v30  ;;  %v952_v30 = vld [vmem:[#allocation5 + $0x418] sm:$0xff] }
 0x197   : > { %1314 = vmatprep.subr.mxu1 %v1008_v36  ;;  %1376 = vmatprep.mubr.f32.mxu1 %v819_v31  ;;  %v823_v31 = vld [vmem:[#allocation5 + $0x10] sm:$0xff]  ;;  %v1076_v35 = vld [vmem:[#allocation5 + $0x7f8] sm:$0xff] }
 0x198   : > { %1244 = vmatpush1.msra.mxu0 %v879_v37  ;;  %1315 = vmatpush1.msra.mxu1 %v1007_v38  ;;  %v947_v36 = vld [vmem:[#allocation5 + $0x3f0] sm:$0xff]  ;;  %v944_v38 = vld [vmem:[#allocation5 + $0x3d8] sm:$0xff] }
 0x199   : > { %1245 = vmatprep.subr.mxu0 %v876_v39  ;;  %1316 = vmatprep.subr.mxu1 %v1004_v40  ;;  %v1075_v37 = vld [vmem:[#allocation5 + $0x7f0] sm:$0xff]  ;;  %v1072_v39 = vld [vmem:[#allocation5 + $0x7d8] sm:$0xff] }
 0x19a   : > { %1246 = vmatpush1.msra.mxu0 %v875_v41  ;;  %1317 = vmatpush1.msra.mxu1 %v1003_v42  ;;  %v943_v40 = vld [vmem:[#allocation5 + $0x3d0] sm:$0xff]  ;;  %v940_v42 = vld [vmem:[#allocation5 + $0x3b8] sm:$0xff] }
 0x19b   : > { %1247 = vmatprep.subr.mxu0 %v872_v43  ;;  %1318 = vmatprep.subr.mxu1 %v1000_v44  ;;  %v1071_v41 = vld [vmem:[#allocation5 + $0x7d0] sm:$0xff]  ;;  %v1068_v43 = vld [vmem:[#allocation5 + $0x7b8] sm:$0xff] }
 0x19c   : > { %1248 = vmatpush1.msra.mxu0 %v871_v45  ;;  %1319 = vmatpush1.msra.mxu1 %v999_v46  ;;  %v939_v44 = vld [vmem:[#allocation5 + $0x3b0] sm:$0xff]  ;;  %v936_v46 = vld [vmem:[#allocation5 + $0x398] sm:$0xff] }
 0x19d   : > { %1249 = vmatprep.subr.mxu0 %v868_v47  ;;  %1320 = vmatprep.subr.mxu1 %v996_v48  ;;  %v1067_v45 = vld [vmem:[#allocation5 + $0x7b0] sm:$0xff]  ;;  %v1064_v47 = vld [vmem:[#allocation5 + $0x798] sm:$0xff] }
 0x19e   : > { %1250 = vmatpush1.msra.mxu0 %v867_v49  ;;  %1321 = vmatpush1.msra.mxu1 %v995_v50  ;;  %v935_v48 = vld [vmem:[#allocation5 + $0x390] sm:$0xff]  ;;  %v932_v50 = vld [vmem:[#allocation5 + $0x378] sm:$0xff] }
 0x19f   : > { %1251 = vmatprep.subr.mxu0 %v864_v51  ;;  %1322 = vmatprep.subr.mxu1 %v992_v52  ;;  %v1063_v49 = vld [vmem:[#allocation5 + $0x790] sm:$0xff]  ;;  %v1060_v51 = vld [vmem:[#allocation5 + $0x778] sm:$0xff] }
 0x1a0   : > { %1252 = vmatpush1.msra.mxu0 %v863_v53  ;;  %1323 = vmatpush1.msra.mxu1 %v991_v54  ;;  %v931_v52 = vld [vmem:[#allocation5 + $0x370] sm:$0xff]  ;;  %v928_v54 = vld [vmem:[#allocation5 + $0x358] sm:$0xff] }
 0x1a1   : > { %1253 = vmatprep.subr.mxu0 %v860_v55  ;;  %1324 = vmatprep.subr.mxu1 %v988_v56  ;;  %v1059_v53 = vld [vmem:[#allocation5 + $0x770] sm:$0xff]  ;;  %v1056_v55 = vld [vmem:[#allocation5 + $0x758] sm:$0xff] }
 0x1a2   : > { %1254 = vmatpush1.msra.mxu0 %v859_v57  ;;  %1325 = vmatpush1.msra.mxu1 %v987_v58  ;;  %v927_v56 = vld [vmem:[#allocation5 + $0x350] sm:$0xff]  ;;  %v924_v58 = vld [vmem:[#allocation5 + $0x338] sm:$0xff] }
 0x1a3   : > { %1255 = vmatprep.subr.mxu0 %v856_v59  ;;  %1326 = vmatprep.subr.mxu1 %v984_v60  ;;  %v1055_v57 = vld [vmem:[#allocation5 + $0x750] sm:$0xff]  ;;  %v1052_v59 = vld [vmem:[#allocation5 + $0x738] sm:$0xff] }
 0x1a4   : > { %1256 = vmatpush1.msra.mxu0 %v855_v61  ;;  %1327 = vmatpush1.msra.mxu1 %v983_v62  ;;  %v923_v60 = vld [vmem:[#allocation5 + $0x330] sm:$0xff]  ;;  %v920_v62 = vld [vmem:[#allocation5 + $0x318] sm:$0xff] }
 0x1a5   : > { %1257 = vmatprep.subr.mxu0 %v852_v63  ;;  %1328 = vmatprep.subr.mxu1 %v980_v0  ;;  %v1051_v61 = vld [vmem:[#allocation5 + $0x730] sm:$0xff]  ;;  %v1048_v63 = vld [vmem:[#allocation5 + $0x718] sm:$0xff] }
 0x1a6   : > { %1258 = vmatpush1.msra.mxu0 %v851_v1  ;;  %1329 = vmatpush1.msra.mxu1 %v979_v2  ;;  %v919_v0 = vld [vmem:[#allocation5 + $0x310] sm:$0xff]  ;;  %v916_v2 = vld [vmem:[#allocation5 + $0x2f8] sm:$0xff] }
 0x1a7   : > { %1259 = vmatprep.subr.mxu0 %v848_v3  ;;  %1330 = vmatprep.subr.mxu1 %v976_v4  ;;  %v1047_v1 = vld [vmem:[#allocation5 + $0x710] sm:$0xff]  ;;  %v1044_v3 = vld [vmem:[#allocation5 + $0x6f8] sm:$0xff] }
 0x1a8   : > { %1260 = vmatpush1.msra.mxu0 %v847_v5  ;;  %1331 = vmatpush1.msra.mxu1 %v975_v6  ;;  %v915_v4 = vld [vmem:[#allocation5 + $0x2f0] sm:$0xff]  ;;  %v912_v6 = vld [vmem:[#allocation5 + $0x2d8] sm:$0xff] }
 0x1a9   : > { %1261 = vmatprep.subr.mxu0 %v844_v7  ;;  %1332 = vmatprep.subr.mxu1 %v972_v8  ;;  %v1043_v5 = vld [vmem:[#allocation5 + $0x6f0] sm:$0xff]  ;;  %v1040_v7 = vld [vmem:[#allocation5 + $0x6d8] sm:$0xff] }
 0x1aa   : > { %1262 = vmatpush1.msra.mxu0 %v843_v9  ;;  %1333 = vmatpush1.msra.mxu1 %v971_v10  ;;  %v911_v8 = vld [vmem:[#allocation5 + $0x2d0] sm:$0xff]  ;;  %v908_v10 = vld [vmem:[#allocation5 + $0x2b8] sm:$0xff] }
 0x1ab   : > { %1263 = vmatprep.subr.mxu0 %v840_v11  ;;  %1334 = vmatprep.subr.mxu1 %v968_v12  ;;  %v1039_v9 = vld [vmem:[#allocation5 + $0x6d0] sm:$0xff]  ;;  %v1036_v11 = vld [vmem:[#allocation5 + $0x6b8] sm:$0xff] }
 0x1ac   : > { %1264 = vmatpush1.msra.mxu0 %v839_v13  ;;  %1335 = vmatpush1.msra.mxu1 %v967_v14  ;;  %v907_v12 = vld [vmem:[#allocation5 + $0x2b0] sm:$0xff]  ;;  %v904_v14 = vld [vmem:[#allocation5 + $0x298] sm:$0xff] }
 0x1ad   : > { %1265 = vmatprep.subr.mxu0 %v836_v15  ;;  %1336 = vmatprep.subr.mxu1 %v964_v16  ;;  %v1035_v13 = vld [vmem:[#allocation5 + $0x6b0] sm:$0xff]  ;;  %v1032_v15 = vld [vmem:[#allocation5 + $0x698] sm:$0xff] }
 0x1ae   : > { %1266 = vmatpush1.msra.mxu0 %v835_v18  ;;  %1337 = vmatpush1.msra.mxu1 %v963_v19  ;;  %v903_v16 = vld [vmem:[#allocation5 + $0x290] sm:$0xff]  ;;  %v900_v19 = vld [vmem:[#allocation5 + $0x278] sm:$0xff] }
 0x1af   : > { %1267 = vmatprep.subr.mxu0 %v832_v20  ;;  %1338 = vmatprep.subr.mxu1 %v960_v21  ;;  %v1031_v18 = vld [vmem:[#allocation5 + $0x690] sm:$0xff]  ;;  %v1028_v20 = vld [vmem:[#allocation5 + $0x678] sm:$0xff] }
 0x1b0   : > { %1268 = vmatpush1.msra.mxu0 %v831_v22  ;;  %1339 = vmatpush1.msra.mxu1 %v959_v23  ;;  %v899_v21 = vld [vmem:[#allocation5 + $0x270] sm:$0xff]  ;;  %v896_v23 = vld [vmem:[#allocation5 + $0x258] sm:$0xff] }
 0x1b1   : > { %1269 = vmatprep.subr.mxu0 %v828_v24  ;;  %1340 = vmatprep.subr.mxu1 %v956_v25  ;;  %v1027_v22 = vld [vmem:[#allocation5 + $0x670] sm:$0xff]  ;;  %v1024_v24 = vld [vmem:[#allocation5 + $0x658] sm:$0xff] }
 0x1b2   : > { %1270 = vmatpush1.msra.mxu0 %v827_v26  ;;  %1341 = vmatpush1.msra.mxu1 %v955_v28  ;;  %v895_v25 = vld [vmem:[#allocation5 + $0x250] sm:$0xff]  ;;  %v892_v28 = vld [vmem:[#allocation5 + $0x238] sm:$0xff] }
 0x1b3   : > { %1271 = vmatprep.subr.mxu0 %v824_v29  ;;  %1342 = vmatprep.subr.mxu1 %v952_v30  ;;  %v1023_v26 = vld [vmem:[#allocation5 + $0x650] sm:$0xff]  ;;  %v1020_v29 = vld [vmem:[#allocation5 + $0x638] sm:$0xff] }
 0x1b4   : > { %1272 = vmatpush1.msra.mxu0 %v823_v31  ;;  %1343 = vmatpush1.msra.mxu1 %v951_v33  ;;  %v891_v30 = vld [vmem:[#allocation5 + $0x230] sm:$0xff]  ;;  %v888_v33 = vld [vmem:[#allocation5 + $0x218] sm:$0xff] }
 0x1b5   : > { %1273 = vmatprep.subr.mxu0 %v948_v34  ;;  %1344 = vmatprep.subr.mxu1 %v1076_v35  ;;  %v1019_v31 = vld [vmem:[#allocation5 + $0x630] sm:$0xff]  ;;  %v1016_v34 = vld [vmem:[#allocation5 + $0x618] sm:$0xff] }
 0x1b6   : > { %1274 = vmatpush2.msra.mxu0 %v947_v36  ;;  %1345 = vmatpush2.msra.mxu1 %v1075_v37  ;;  %v887_v35 = vld [vmem:[#allocation5 + $0x210] sm:$0xff] }
 0x1b7   : > { %1275 = vmatprep.subr.mxu0 %v944_v38  ;;  %1346 = vmatprep.subr.mxu1 %v1072_v39  ;;  %v1015_v36 = vld [vmem:[#allocation5 + $0x610] sm:$0xff]  ;;  %v1447_v38 = vld [vmem:[#allocation8 + $0x1e0] sm:$0xff] }
 0x1b8   : > { %1276 = vmatpush2.msra.mxu0 %v943_v40  ;;  %1347 = vmatpush2.msra.mxu1 %v1071_v41  ;;  %v1448_v37 = vld [vmem:[#allocation8 + $0x1e8] sm:$0xff]  ;;  %v1443_v40 = vld [vmem:[#allocation8 + $0x1c0] sm:$0xff] }
 0x1b9   : > { %1277 = vmatprep.subr.mxu0 %v940_v42  ;;  %1348 = vmatprep.subr.mxu1 %v1068_v43  ;;  %v1444_v39 = vld [vmem:[#allocation8 + $0x1c8] sm:$0xff]  ;;  %v1439_v42 = vld [vmem:[#allocation8 + $0x1a0] sm:$0xff] }
 0x1ba   : > { %1278 = vmatpush2.msra.mxu0 %v939_v44  ;;  %1349 = vmatpush2.msra.mxu1 %v1067_v45  ;;  %v1440_v41 = vld [vmem:[#allocation8 + $0x1a8] sm:$0xff]  ;;  %v1435_v44 = vld [vmem:[#allocation8 + $0x180] sm:$0xff] }
 0x1bb   : > { %1279 = vmatprep.subr.mxu0 %v936_v46  ;;  %1350 = vmatprep.subr.mxu1 %v1064_v47  ;;  %v1436_v43 = vld [vmem:[#allocation8 + $0x188] sm:$0xff]  ;;  %v1431_v46 = vld [vmem:[#allocation8 + $0x160] sm:$0xff] }
 0x1bc   : > { %1280 = vmatpush2.msra.mxu0 %v935_v48  ;;  %1351 = vmatpush2.msra.mxu1 %v1063_v49  ;;  %v1432_v45 = vld [vmem:[#allocation8 + $0x168] sm:$0xff]  ;;  %v1427_v48 = vld [vmem:[#allocation8 + $0x140] sm:$0xff] }
 0x1bd   : > { %1281 = vmatprep.subr.mxu0 %v932_v50  ;;  %1352 = vmatprep.subr.mxu1 %v1060_v51  ;;  %v1576_v47 = vld [vmem:[#allocation8 + $0x5e8] sm:$0xff]  ;;  %v1571_v51 = vld [vmem:[#allocation8 + $0x5c0] sm:$0xff] }
 0x1be   : > { %1282 = vmatpush2.msra.mxu0 %v931_v52  ;;  %1353 = vmatpush2.msra.mxu1 %v1059_v53  ;;  %v1572_v49 = vld [vmem:[#allocation8 + $0x5c8] sm:$0xff]  ;;  %v1423_v52 = vld [vmem:[#allocation8 + $0x120] sm:$0xff] }
 0x1bf   : > { %1283 = vmatprep.subr.mxu0 %v928_v54  ;;  %1354 = vmatprep.subr.mxu1 %v1056_v55  ;;  %v1424_v50 = vld [vmem:[#allocation8 + $0x128] sm:$0xff]  ;;  %v1567_v55 = vld [vmem:[#allocation8 + $0x5a0] sm:$0xff] }
 0x1c0   : > { %1284 = vmatpush2.msra.mxu0 %v927_v56  ;;  %1355 = vmatpush2.msra.mxu1 %v1055_v57  ;;  %v1568_v53 = vld [vmem:[#allocation8 + $0x5a8] sm:$0xff]  ;;  %v1419_v56 = vld [vmem:[#allocation8 + $0x100] sm:$0xff] }
 0x1c1   : > { %1285 = vmatprep.subr.mxu0 %v924_v58  ;;  %1356 = vmatprep.subr.mxu1 %v1052_v59  ;;  %v1420_v54 = vld [vmem:[#allocation8 + $0x108] sm:$0xff]  ;;  %v1563_v59 = vld [vmem:[#allocation8 + $0x580] sm:$0xff] }
 0x1c2   : > { %1286 = vmatpush2.msra.mxu0 %v923_v60  ;;  %1357 = vmatpush2.msra.mxu1 %v1051_v61  ;;  %v1564_v57 = vld [vmem:[#allocation8 + $0x588] sm:$0xff]  ;;  %v1415_v60 = vld [vmem:[#allocation8 + $0xe0] sm:$0xff] }
 0x1c3   : > { %1287 = vmatprep.subr.mxu0 %v920_v62  ;;  %1358 = vmatprep.subr.mxu1 %v1048_v63  ;;  %v1416_v58 = vld [vmem:[#allocation8 + $0xe8] sm:$0xff]  ;;  %v1559_v63 = vld [vmem:[#allocation8 + $0x560] sm:$0xff] }
 0x1c4   : > { %1288 = vmatpush2.msra.mxu0 %v919_v0  ;;  %1359 = vmatpush2.msra.mxu1 %v1047_v1  ;;  %v1560_v61 = vld [vmem:[#allocation8 + $0x568] sm:$0xff]  ;;  %v1411_v0 = vld [vmem:[#allocation8 + $0xc0] sm:$0xff] }
 0x1c5   : > { %1289 = vmatprep.subr.mxu0 %v916_v2  ;;  %1360 = vmatprep.subr.mxu1 %v1044_v3  ;;  %v1412_v62 = vld [vmem:[#allocation8 + $0xc8] sm:$0xff]  ;;  %v1555_v3 = vld [vmem:[#allocation8 + $0x540] sm:$0xff] }
 0x1c6   : > { %1290 = vmatpush2.msra.mxu0 %v915_v4  ;;  %1361 = vmatpush2.msra.mxu1 %v1043_v5  ;;  %v1556_v1 = vld [vmem:[#allocation8 + $0x548] sm:$0xff]  ;;  %v1407_v4 = vld [vmem:[#allocation8 + $0xa0] sm:$0xff] }
 0x1c7   : > { %1291 = vmatprep.subr.mxu0 %v912_v6  ;;  %1362 = vmatprep.subr.mxu1 %v1040_v7  ;;  %v1408_v2 = vld [vmem:[#allocation8 + $0xa8] sm:$0xff]  ;;  %v1551_v7 = vld [vmem:[#allocation8 + $0x520] sm:$0xff] }
 0x1c8   : > { %1292 = vmatpush2.msra.mxu0 %v911_v8  ;;  %1363 = vmatpush2.msra.mxu1 %v1039_v9  ;;  %v1552_v5 = vld [vmem:[#allocation8 + $0x528] sm:$0xff]  ;;  %v1403_v8 = vld [vmem:[#allocation8 + $0x80] sm:$0xff] }
 0x1c9   : > { %1293 = vmatprep.subr.mxu0 %v908_v10  ;;  %1364 = vmatprep.subr.mxu1 %v1036_v11  ;;  %v1404_v6 = vld [vmem:[#allocation8 + $0x88] sm:$0xff]  ;;  %v1547_v11 = vld [vmem:[#allocation8 + $0x500] sm:$0xff] }
 0x1ca   : > { %1294 = vmatpush2.msra.mxu0 %v907_v12  ;;  %1365 = vmatpush2.msra.mxu1 %v1035_v13  ;;  %v1548_v9 = vld [vmem:[#allocation8 + $0x508] sm:$0xff]  ;;  %v1399_v12 = vld [vmem:[#allocation8 + $0x60] sm:$0xff] }
 0x1cb   : > { %1295 = vmatprep.subr.mxu0 %v904_v14  ;;  %1366 = vmatprep.subr.mxu1 %v1032_v15  ;;  %v1400_v10 = vld [vmem:[#allocation8 + $0x68] sm:$0xff]  ;;  %v1543_v15 = vld [vmem:[#allocation8 + $0x4e0] sm:$0xff] }
 0x1cc   : > { %1296 = vmatpush2.msra.mxu0 %v903_v16  ;;  %1367 = vmatpush2.msra.mxu1 %v1031_v18  ;;  %v1544_v13 = vld [vmem:[#allocation8 + $0x4e8] sm:$0xff]  ;;  %v1395_v16 = vld [vmem:[#allocation8 + $0x40] sm:$0xff] }
 0x1cd   : > { %1297 = vmatprep.subr.mxu0 %v900_v19  ;;  %1368 = vmatprep.subr.mxu1 %v1028_v20  ;;  %v1396_v14 = vld [vmem:[#allocation8 + $0x48] sm:$0xff]  ;;  %v1539_v20 = vld [vmem:[#allocation8 + $0x4c0] sm:$0xff] }
 0x1ce   : > { %1298 = vmatpush2.msra.mxu0 %v899_v21  ;;  %1369 = vmatpush2.msra.mxu1 %v1027_v22  ;;  %v1540_v18 = vld [vmem:[#allocation8 + $0x4c8] sm:$0xff]  ;;  %v1391_v21 = vld [vmem:[#allocation8 + $0x20] sm:$0xff] }
 0x1cf   : > { %1299 = vmatprep.subr.mxu0 %v896_v23  ;;  %1370 = vmatprep.subr.mxu1 %v1024_v24  ;;  %v1392_v19 = vld [vmem:[#allocation8 + $0x28] sm:$0xff]  ;;  %v1535_v24 = vld [vmem:[#allocation8 + $0x4a0] sm:$0xff] }
 0x1d0   : > { %1300 = vmatpush2.msra.mxu0 %v895_v25  ;;  %1371 = vmatpush2.msra.mxu1 %v1023_v26  ;;  %v1536_v22 = vld [vmem:[#allocation8 + $0x4a8] sm:$0xff]  ;;  %v1387_v25 = vld [vmem:[#allocation8] sm:$0xff] }
 0x1d1   : > { %1301 = vmatprep.subr.mxu0 %v892_v28  ;;  %1372 = vmatprep.subr.mxu1 %v1020_v29  ;;  %v1388_v23 = vld [vmem:[#allocation8 + $0x8] sm:$0xff]  ;;  %v1531_v29 = vld [vmem:[#allocation8 + $0x480] sm:$0xff] }
 0x1d2   : > { %1302 = vmatpush2.msra.mxu0 %v891_v30  ;;  %1373 = vmatpush2.msra.mxu1 %v1019_v31  ;;  %v1532_v26 = vld [vmem:[#allocation8 + $0x488] sm:$0xff]  ;;  %v1511_v30 = vld [vmem:[#allocation8 + $0x3e0] sm:$0xff] }
 0x1d3   : > { %1303 = vmatprep.subr.mxu0 %v888_v33  ;;  %1374 = vmatprep.subr.mxu1 %v1016_v34  ;;  %v1512_v28 = vld [vmem:[#allocation8 + $0x3e8] sm:$0xff]  ;;  %v1527_v34 = vld [vmem:[#allocation8 + $0x460] sm:$0xff] }
 0x1d4   : > { %1304 = vmatpush2.msra.mxu0 %v887_v35  ;;  %1375 = vmatpush2.msra.mxu1 %v1015_v36  ;;  %v1528_v31 = vld [vmem:[#allocation8 + $0x468] sm:$0xff]  ;;  %v1507_v35 = vld [vmem:[#allocation8 + $0x3c0] sm:$0xff] }
 0x1d5   : > { %1306 = vmatmul.mubr.f32.vlgmr.msra.gmra.mxu0 %v5740_v32  ;;  %1377 = vmatmul.mubr.f32.vlgmr.msra.gmra.mxu1 %v5738_v27  ;;  %v1428_v32 = vld [vmem:[#allocation8 + $0x148] sm:$0xff]  ;;  %v1575_v27 = vld [vmem:[#allocation8 + $0x5e0] sm:$0xff] }
 0x1d6   : > { %1665 = vmatprep.subr.mxu0 %v1448_v37  ;;  %1736 = vmatprep.subr.mxu1 %v1576_v47  ;;  %v1508_v33 = vld [vmem:[#allocation8 + $0x3c8] sm:$0xff]  ;;  %v1495_v47 = vld [vmem:[#allocation8 + $0x360] sm:$0xff] }
 0x1d7   : > { %1666 = vmatpush1.msra.mxu0 %v1447_v38  ;;  %1737 = vmatpush1.msra.mxu1 %v1575_v27  ;;  %v1524_v36 = vld [vmem:[#allocation8 + $0x448] sm:$0xff]  ;;  %v1523_v38 = vld [vmem:[#allocation8 + $0x440] sm:$0xff] }
 0x1d8   : > { %1667 = vmatprep.subr.mxu0 %v1444_v39  ;;  %1738 = vmatprep.subr.mxu1 %v1572_v49  ;;  %v1504_v37 = vld [vmem:[#allocation8 + $0x3a8] sm:$0xff]  ;;  %v1503_v39 = vld [vmem:[#allocation8 + $0x3a0] sm:$0xff] }
 0x1d9   : > { %1668 = vmatpush1.msra.mxu0 %v1443_v40  ;;  %1739 = vmatpush1.msra.mxu1 %v1571_v51  ;;  %v1520_v40 = vld [vmem:[#allocation8 + $0x428] sm:$0xff]  ;;  %v1491_v49 = vld [vmem:[#allocation8 + $0x340] sm:$0xff] }
 0x1da   : > { %1669 = vmatprep.subr.mxu0 %v1440_v41  ;;  %1740 = vmatprep.subr.mxu1 %v1568_v53  ;;  %v1500_v41 = vld [vmem:[#allocation8 + $0x388] sm:$0xff]  ;;  %v1487_v53 = vld [vmem:[#allocation8 + $0x320] sm:$0xff] }
 0x1db   : > { %1670 = vmatpush1.msra.mxu0 %v1439_v42  ;;  %1741 = vmatpush1.msra.mxu1 %v1567_v55  ;;  %v1519_v42 = vld [vmem:[#allocation8 + $0x420] sm:$0xff]  ;;  %v1492_v27 = vld [vmem:[#allocation8 + $0x348] sm:$0xff] }
 0x1dc   : > { %1671 = vmatprep.subr.mxu0 %v1436_v43  ;;  %1742 = vmatprep.subr.mxu1 %v1564_v57  ;;  %v1499_v43 = vld [vmem:[#allocation8 + $0x380] sm:$0xff]  ;;  %v1488_v51 = vld [vmem:[#allocation8 + $0x328] sm:$0xff] }
 0x1dd   : > { %1672 = vmatpush1.msra.mxu0 %v1435_v44  ;;  %1743 = vmatpush1.msra.mxu1 %v1563_v59  ;;  %v1516_v44 = vld [vmem:[#allocation8 + $0x408] sm:$0xff]  ;;  %v1483_v57 = vld [vmem:[#allocation8 + $0x300] sm:$0xff] }
 0x1de   : > { %1673 = vmatprep.subr.mxu0 %v1432_v45  ;;  %1744 = vmatprep.subr.mxu1 %v1560_v61  ;;  %v1496_v45 = vld [vmem:[#allocation8 + $0x368] sm:$0xff]  ;;  %v1479_v61 = vld [vmem:[#allocation8 + $0x2e0] sm:$0xff] }
 0x1df   : > { %1674 = vmatpush1.msra.mxu0 %v1431_v46  ;;  %1745 = vmatpush1.msra.mxu1 %v1559_v63  ;;  %v1515_v46 = vld [vmem:[#allocation8 + $0x400] sm:$0xff]  ;;  %v1484_v55 = vld [vmem:[#allocation8 + $0x308] sm:$0xff] }
 0x1e0   : > { %1675 = vmatprep.subr.mxu0 %v1428_v32  ;;  %1746 = vmatprep.subr.mxu1 %v1556_v1  ;;  %v1640_v32 = vld [vmem:[#allocation8 + $0x7e8] sm:$0xff]  ;;  %v1475_v1 = vld [vmem:[#allocation8 + $0x2c0] sm:$0xff] }
 0x1e1   : > { %1676 = vmatpush1.msra.mxu0 %v1427_v48  ;;  %1747 = vmatpush1.msra.mxu1 %v1555_v3  ;;  %v1639_v48 = vld [vmem:[#allocation8 + $0x7e0] sm:$0xff]  ;;  %v1480_v59 = vld [vmem:[#allocation8 + $0x2e8] sm:$0xff] }
 0x1e2   : > { %1677 = vmatprep.subr.mxu0 %v1424_v50  ;;  %1748 = vmatprep.subr.mxu1 %v1552_v5  ;;  %v1636_v50 = vld [vmem:[#allocation8 + $0x7c8] sm:$0xff]  ;;  %v1471_v5 = vld [vmem:[#allocation8 + $0x2a0] sm:$0xff] }
 0x1e3   : > { %1678 = vmatpush1.msra.mxu0 %v1423_v52  ;;  %1749 = vmatpush1.msra.mxu1 %v1551_v7  ;;  %v1635_v52 = vld [vmem:[#allocation8 + $0x7c0] sm:$0xff]  ;;  %v1476_v63 = vld [vmem:[#allocation8 + $0x2c8] sm:$0xff] }
 0x1e4   : > { %1679 = vmatprep.subr.mxu0 %v1420_v54  ;;  %1750 = vmatprep.subr.mxu1 %v1548_v9  ;;  %v1632_v54 = vld [vmem:[#allocation8 + $0x7a8] sm:$0xff]  ;;  %v1467_v9 = vld [vmem:[#allocation8 + $0x280] sm:$0xff] }
 0x1e5   : > { %1680 = vmatpush1.msra.mxu0 %v1419_v56  ;;  %1751 = vmatpush1.msra.mxu1 %v1547_v11  ;;  %v1631_v56 = vld [vmem:[#allocation8 + $0x7a0] sm:$0xff]  ;;  %v1472_v3 = vld [vmem:[#allocation8 + $0x2a8] sm:$0xff] }
 0x1e6   : > { %1681 = vmatprep.subr.mxu0 %v1416_v58  ;;  %1752 = vmatprep.subr.mxu1 %v1544_v13  ;;  %v1628_v58 = vld [vmem:[#allocation8 + $0x788] sm:$0xff]  ;;  %v1463_v13 = vld [vmem:[#allocation8 + $0x260] sm:$0xff] }
 0x1e7   : > { %1682 = vmatpush1.msra.mxu0 %v1415_v60  ;;  %1753 = vmatpush1.msra.mxu1 %v1543_v15  ;;  %v1627_v60 = vld [vmem:[#allocation8 + $0x780] sm:$0xff]  ;;  %v1468_v7 = vld [vmem:[#allocation8 + $0x288] sm:$0xff] }
 0x1e8   : > { %1683 = vmatprep.subr.mxu0 %v1412_v62  ;;  %1754 = vmatprep.subr.mxu1 %v1540_v18  ;;  %v1624_v62 = vld [vmem:[#allocation8 + $0x768] sm:$0xff]  ;;  %v1459_v18 = vld [vmem:[#allocation8 + $0x240] sm:$0xff] }
 0x1e9   : > { %1684 = vmatpush1.msra.mxu0 %v1411_v0  ;;  %1755 = vmatpush1.msra.mxu1 %v1539_v20  ;;  %v1623_v0 = vld [vmem:[#allocation8 + $0x760] sm:$0xff]  ;;  %v1464_v11 = vld [vmem:[#allocation8 + $0x268] sm:$0xff] }
 0x1ea   : > { %1685 = vmatprep.subr.mxu0 %v1408_v2  ;;  %1756 = vmatprep.subr.mxu1 %v1536_v22  ;;  %v1620_v2 = vld [vmem:[#allocation8 + $0x748] sm:$0xff]  ;;  %v1455_v22 = vld [vmem:[#allocation8 + $0x220] sm:$0xff] }
 0x1eb   : > { %1686 = vmatpush1.msra.mxu0 %v1407_v4  ;;  %1757 = vmatpush1.msra.mxu1 %v1535_v24  ;;  %v1619_v4 = vld [vmem:[#allocation8 + $0x740] sm:$0xff]  ;;  %v1460_v15 = vld [vmem:[#allocation8 + $0x248] sm:$0xff] }
 0x1ec   : > { %1687 = vmatprep.subr.mxu0 %v1404_v6  ;;  %1758 = vmatprep.subr.mxu1 %v1532_v26  ;;  %v1616_v6 = vld [vmem:[#allocation8 + $0x728] sm:$0xff]  ;;  %v1451_v26 = vld [vmem:[#allocation8 + $0x200] sm:$0xff] }
 0x1ed   : > { %1688 = vmatpush1.msra.mxu0 %v1403_v8  ;;  %1759 = vmatpush1.msra.mxu1 %v1531_v29  ;;  %v1615_v8 = vld [vmem:[#allocation8 + $0x720] sm:$0xff]  ;;  %v1456_v20 = vld [vmem:[#allocation8 + $0x228] sm:$0xff]  ;;  %v1450_v29 = vld [vmem:[#allocation8 + $0x1f8] sm:$0xff] }
 0x1ee   : > { %1689 = vmatprep.subr.mxu0 %v1400_v10  ;;  %1760 = vmatprep.subr.mxu1 %v1528_v31  ;;  %v1612_v10 = vld [vmem:[#allocation8 + $0x708] sm:$0xff] }
 0x1ef   : > { %1690 = vmatpush1.msra.mxu0 %v1399_v12  ;;  %1761 = vmatpush1.msra.mxu1 %v1527_v34  ;;  %v1611_v12 = vld [vmem:[#allocation8 + $0x700] sm:$0xff]  ;;  %v1452_v24 = vld [vmem:[#allocation8 + $0x208] sm:$0xff] }
 0x1f0   : > { %1691 = vmatprep.subr.mxu0 %v1396_v14  ;;  %1762 = vmatprep.subr.mxu1 %v1524_v36  ;;  %v1608_v14 = vld [vmem:[#allocation8 + $0x6e8] sm:$0xff] }
 0x1f1   : > { %1692 = vmatpush1.msra.mxu0 %v1395_v16  ;;  %1763 = vmatpush1.msra.mxu1 %v1523_v38  ;;  %v1607_v16 = vld [vmem:[#allocation8 + $0x6e0] sm:$0xff]  ;;  %v1592_v31 = vld [vmem:[#allocation8 + $0x668] sm:$0xff] }
 0x1f2   : > { %1693 = vmatprep.subr.mxu0 %v1392_v19  ;;  %1764 = vmatprep.subr.mxu1 %v1520_v40  ;;  %v1604_v19 = vld [vmem:[#allocation8 + $0x6c8] sm:$0xff]  ;;  %v1578_v40 = vld [vmem:[#allocation8 + $0x5f8] sm:$0xff] }
 0x1f3   : > { %1694 = vmatpush1.msra.mxu0 %v1391_v21  ;;  %1765 = vmatpush1.msra.mxu1 %v1519_v42  ;;  %v1603_v21 = vld [vmem:[#allocation8 + $0x6c0] sm:$0xff]  ;;  %v1588_v34 = vld [vmem:[#allocation8 + $0x648] sm:$0xff]  ;;  %v5749_v42 = vld [vmem:[#allocation7] sm:$0xf] }
 0x1f4   : > { %1695 = vmatprep.subr.mxu0 %v1388_v23  ;;  %1766 = vmatprep.subr.mxu1 %v1516_v44  ;;  %v1600_v23 = vld [vmem:[#allocation8 + $0x6a8] sm:$0xff] }
 0x1f5   : > { %1696 = vmatpush1.msra.mxu0 %v1387_v25  ;;  %1767 = vmatpush1.msra.mxu1 %v1515_v46  ;;  %v1599_v25 = vld [vmem:[#allocation8 + $0x6a0] sm:$0xff]  ;;  %v1584_v36 = vld [vmem:[#allocation8 + $0x628] sm:$0xff] }
 0x1f6   : > { %1697 = vmatprep.subr.mxu0 %v1512_v28  ;;  %1768 = vmatprep.subr.mxu1 %v1640_v32  ;;  %v1596_v28 = vld [vmem:[#allocation8 + $0x688] sm:$0xff] }
 0x1f7   : > { %1698 = vmatpush2.msra.mxu0 %v1511_v30  ;;  %1769 = vmatpush2.msra.mxu1 %v1639_v48  ;;  %v1595_v30 = vld [vmem:[#allocation8 + $0x680] sm:$0xff]  ;;  %v1580_v38 = vld [vmem:[#allocation8 + $0x608] sm:$0xff] }
 0x1f8   : > { %1699 = vmatprep.subr.mxu0 %v1508_v33  ;;  %1770 = vmatprep.subr.mxu1 %v1636_v50  ;;  %v1591_v33 = vld [vmem:[#allocation8 + $0x660] sm:$0xff] }
 0x1f9   : > { %1700 = vmatpush2.msra.mxu0 %v1507_v35  ;;  %1771 = vmatpush2.msra.mxu1 %v1635_v52  ;;  %v1587_v35 = vld [vmem:[#allocation8 + $0x640] sm:$0xff] }
 0x1fa   : > { %1701 = vmatprep.subr.mxu0 %v1504_v37  ;;  %1772 = vmatprep.subr.mxu1 %v1632_v54  ;;  %v1583_v37 = vld [vmem:[#allocation8 + $0x620] sm:$0xff]  ;;  %v1449_v54 = vld [vmem:[#allocation8 + $0x1f0] sm:$0xff] }
 0x1fb   : > { %1702 = vmatpush2.msra.mxu0 %v1503_v39  ;;  %1773 = vmatpush2.msra.mxu1 %v1631_v56  ;;  %v1579_v39 = vld [vmem:[#allocation8 + $0x600] sm:$0xff]  ;;  %v1445_v56 = vld [vmem:[#allocation8 + $0x1d0] sm:$0xff] }
 0x1fc   : > { %1703 = vmatprep.subr.mxu0 %v1500_v41  ;;  %1774 = vmatprep.subr.mxu1 %v1628_v58  ;;  %v5747_v41 = vsub.s32 0, %v5732_v17  ;;  %v1441_v58 = vld [vmem:[#allocation8 + $0x1b0] sm:$0xff] }
 0x1fd   : > { %1704 = vmatpush2.msra.mxu0 %v1499_v43  ;;  %1775 = vmatpush2.msra.mxu1 %v1627_v60  ;;  %v5752_v43 = vsub.s32 1, %v5732_v17  ;;  %v1437_v60 = vld [vmem:[#allocation8 + $0x190] sm:$0xff] }
 0x1fe   : > { %1705 = vmatprep.subr.mxu0 %v1496_v45  ;;  %1776 = vmatprep.subr.mxu1 %v1624_v62  ;;  %v1082_v44 = vrot.slane %v5749_v42, %v5747_v41  ;;  %v1433_v62 = vld [vmem:[#allocation8 + $0x170] sm:$0xff] }
 0x1ff   : > { %1706 = vmatpush2.msra.mxu0 %v1495_v47  ;;  %1777 = vmatpush2.msra.mxu1 %v1623_v0  ;;  %v1086_v45 = vrot.slane %v5749_v42, %v5752_v43  ;;  %v1429_v0 = vld [vmem:[#allocation8 + $0x150] sm:$0xff] }
 0x200   : > { %1707 = vmatprep.subr.mxu0 %v1492_v27  ;;  %1778 = vmatprep.subr.mxu1 %v1620_v2  ;;  %v1425_v2 = vld [vmem:[#allocation8 + $0x130] sm:$0xff] }
 0x201   : > { %1708 = vmatpush2.msra.mxu0 %v1491_v49  ;;  %1779 = vmatpush2.msra.mxu1 %v1619_v4  ;;  %v1421_v4 = vld [vmem:[#allocation8 + $0x110] sm:$0xff] }
 0x202   : > { %1709 = vmatprep.subr.mxu0 %v1488_v51  ;;  %1780 = vmatprep.subr.mxu1 %v1616_v6  ;;  %v1417_v6 = vld [vmem:[#allocation8 + $0xf0] sm:$0xff] }
 0x203   : > { %1710 = vmatpush2.msra.mxu0 %v1487_v53  ;;  %1781 = vmatpush2.msra.mxu1 %v1615_v8  ;;  %v1413_v8 = vld [vmem:[#allocation8 + $0xd0] sm:$0xff] }
 0x204   : > { %1711 = vmatprep.subr.mxu0 %v1484_v55  ;;  %1782 = vmatprep.subr.mxu1 %v1612_v10  ;;  %v1446_v55 = vld [vmem:[#allocation8 + $0x1d8] sm:$0xff]  ;;  %v1409_v10 = vld [vmem:[#allocation8 + $0xb0] sm:$0xff] }
 0x205   : > { %1712 = vmatpush2.msra.mxu0 %v1483_v57  ;;  %1783 = vmatpush2.msra.mxu1 %v1611_v12  ;;  %v1442_v57 = vld [vmem:[#allocation8 + $0x1b8] sm:$0xff]  ;;  %v1405_v12 = vld [vmem:[#allocation8 + $0x90] sm:$0xff] }
 0x206   : > { %1713 = vmatprep.subr.mxu0 %v1480_v59  ;;  %1784 = vmatprep.subr.mxu1 %v1608_v14  ;;  %v1438_v59 = vld [vmem:[#allocation8 + $0x198] sm:$0xff]  ;;  %v1401_v14 = vld [vmem:[#allocation8 + $0x70] sm:$0xff] }
 0x207   : > { %1714 = vmatpush2.msra.mxu0 %v1479_v61  ;;  %1785 = vmatpush2.msra.mxu1 %v1607_v16  ;;  %v1434_v61 = vld [vmem:[#allocation8 + $0x178] sm:$0xff]  ;;  %v1397_v16 = vld [vmem:[#allocation8 + $0x50] sm:$0xff] }
 0x208   : > { %1715 = vmatprep.subr.mxu0 %v1476_v63  ;;  %1786 = vmatprep.subr.mxu1 %v1604_v19  ;;  %v1430_v63 = vld [vmem:[#allocation8 + $0x158] sm:$0xff]  ;;  %v1393_v19 = vld [vmem:[#allocation8 + $0x30] sm:$0xff] }
 0x209   : > { %1716 = vmatpush2.msra.mxu0 %v1475_v1  ;;  %1787 = vmatpush2.msra.mxu1 %v1603_v21  ;;  %v1426_v1 = vld [vmem:[#allocation8 + $0x138] sm:$0xff]  ;;  %v1389_v21 = vld [vmem:[#allocation8 + $0x10] sm:$0xff] }
 0x20a   : > { %1717 = vmatprep.subr.mxu0 %v1472_v3  ;;  %1788 = vmatprep.subr.mxu1 %v1600_v23  ;;  %v1422_v3 = vld [vmem:[#allocation8 + $0x118] sm:$0xff]  ;;  %v1513_v23 = vld [vmem:[#allocation8 + $0x3f0] sm:$0xff] }
 0x20b   : > { %1718 = vmatpush2.msra.mxu0 %v1471_v5  ;;  %1789 = vmatpush2.msra.mxu1 %v1599_v25  ;;  %v1418_v5 = vld [vmem:[#allocation8 + $0xf8] sm:$0xff]  ;;  %v1509_v25 = vld [vmem:[#allocation8 + $0x3d0] sm:$0xff] }
 0x20c   : > { %1719 = vmatprep.subr.mxu0 %v1468_v7  ;;  %1790 = vmatprep.subr.mxu1 %v1596_v28  ;;  %v1414_v7 = vld [vmem:[#allocation8 + $0xd8] sm:$0xff]  ;;  %v1505_v28 = vld [vmem:[#allocation8 + $0x3b0] sm:$0xff] }
 0x20d   : > { %1720 = vmatpush2.msra.mxu0 %v1467_v9  ;;  %1791 = vmatpush2.msra.mxu1 %v1595_v30  ;;  %v1410_v9 = vld [vmem:[#allocation8 + $0xb8] sm:$0xff]  ;;  %v1501_v30 = vld [vmem:[#allocation8 + $0x390] sm:$0xff] }
 0x20e   : > { %1721 = vmatprep.subr.mxu0 %v1464_v11  ;;  %1792 = vmatprep.subr.mxu1 %v1592_v31  ;;  %v1406_v11 = vld [vmem:[#allocation8 + $0x98] sm:$0xff] }
 0x20f   : > { %1722 = vmatpush2.msra.mxu0 %v1463_v13  ;;  %1793 = vmatpush2.msra.mxu1 %v1591_v33  ;;  %v1402_v13 = vld [vmem:[#allocation8 + $0x78] sm:$0xff]  ;;  %v1497_v33 = vld [vmem:[#allocation8 + $0x370] sm:$0xff] }
 0x210   : > { %1723 = vmatprep.subr.mxu0 %v1460_v15  ;;  %1794 = vmatprep.subr.mxu1 %v1588_v34  ;;  %v1398_v15 = vld [vmem:[#allocation8 + $0x58] sm:$0xff] }
 0x211   : > { %1724 = vmatpush2.msra.mxu0 %v1459_v18  ;;  %1795 = vmatpush2.msra.mxu1 %v1587_v35  ;;  %v1394_v18 = vld [vmem:[#allocation8 + $0x38] sm:$0xff]  ;;  %v1493_v35 = vld [vmem:[#allocation8 + $0x350] sm:$0xff] }
 0x212   : > { %1725 = vmatprep.subr.mxu0 %v1456_v20  ;;  %1796 = vmatprep.subr.mxu1 %v1584_v36  ;;  %v1390_v20 = vld [vmem:[#allocation8 + $0x18] sm:$0xff] }
 0x213   : > { %1726 = vmatpush2.msra.mxu0 %v1455_v22  ;;  %1797 = vmatpush2.msra.mxu1 %v1583_v37  ;;  %v1514_v22 = vld [vmem:[#allocation8 + $0x3f8] sm:$0xff]  ;;  %v1489_v37 = vld [vmem:[#allocation8 + $0x330] sm:$0xff] }
 0x214   : > { %1727 = vmatprep.subr.mxu0 %v1452_v24  ;;  %1798 = vmatprep.subr.mxu1 %v1580_v38  ;;  %v1510_v24 = vld [vmem:[#allocation8 + $0x3d8] sm:$0xff] }
 0x215   : > { %1728 = vmatpush2.msra.mxu0 %v1451_v26  ;;  %1799 = vmatpush2.msra.mxu1 %v1579_v39  ;;  %v1506_v26 = vld [vmem:[#allocation8 + $0x3b8] sm:$0xff]  ;;  %v1485_v39 = vld [vmem:[#allocation8 + $0x310] sm:$0xff] }
 0x216   : > { %1807 = vmatprep.subr.mxu0 %v1450_v29  ;;  %1878 = vmatprep.subr.mxu1 %v1578_v40  ;;  %v1502_v29 = vld [vmem:[#allocation8 + $0x398] sm:$0xff] }
 0x217   : > { %v1498_v31 = vld [vmem:[#allocation8 + $0x378] sm:$0xff] }
 0x218   : > { %v1494_v34 = vld [vmem:[#allocation8 + $0x358] sm:$0xff] }
 0x219   : > { %v1490_v36 = vld [vmem:[#allocation8 + $0x338] sm:$0xff] }
 0x21a   : > { %v1486_v38 = vld [vmem:[#allocation8 + $0x318] sm:$0xff] }
 0x21b   : > { %v1482_v40 = vld [vmem:[#allocation8 + $0x2f8] sm:$0xff] }
 0x254   : > { %v1165_v46 = vpop.f32.mrf.mxu0  ;;  %v1236_v47 = vpop.f32.mrf.mxu1 }
 0x255   : > { %v1166_v32 = vadd.f32 %v1165_v46, %v1082_v44  ;;  %v1481_v44 = vld [vmem:[#allocation8 + $0x2f0] sm:$0xff] }
 0x256   : > { %v1167_v27 = vpop.f32.mrf.mxu0  ;;  %v1238_v50 = vpop.f32.mrf.mxu1  ;;  %v1477_v46 = vld [vmem:[#allocation8 + $0x2d0] sm:$0xff] }
 0x257   : > { %v1168_v48 = vadd.f32 %v1167_v27, %v1086_v45  ;;  %v5758_v49 = vadd.f32 %v1236_v47, %v1166_v32  ;;  %v1478_v45 = vld [vmem:[#allocation8 + $0x2d8] sm:$0xff]  ;;  %v5764_v47 = vsub.s32 2, %v5732_v17  ;;  %v1473_v27 = vld [vmem:[#allocation8 + $0x2b0] sm:$0xff] }
 0x258   : > { %v1474_v32 = vld [vmem:[#allocation8 + $0x2b8] sm:$0xff] }
 0x259   : > { %v1239_v51 = vadd.f32 %v1238_v50, %v1168_v48  ;;  %v1383_v53 = vmax.f32 %v5758_v49, 0.0  ;;  %v5767_v48 = vsub.s32 3, %v5732_v17  ;;  %v1470_v50 = vld [vmem:[#allocation8 + $0x298] sm:$0xff]  ;;  %v1565_v49 = vld [vmem:[#allocation8 + $0x590] sm:$0xff] }
 0x25b   : > { %v1384_v52 = vmax.f32 %v1239_v51, 0.0  ;;  %v1090_v51 = vrot.slane %v5749_v42, %v5764_v47 }
 0x25d   : > { %1729 = vmatprep.mubr.f32.mxu0 %v1384_v52 }
 0x25e   : > { %1730 = vmatmul.mubr.f32.vlgmr.msra.gmra.mxu0 %v1383_v53 }
 0x25f   : > { %1808 = vmatpush1.msra.mxu0 %v1449_v54  ;;  %1871 = vmatprep.mubr.f32.mxu0 %v1384_v52  ;;  %v1469_v52 = vld [vmem:[#allocation8 + $0x290] sm:$0xff]  ;;  %v1466_v54 = vld [vmem:[#allocation8 + $0x278] sm:$0xff] }
 0x260   : > { %1809 = vmatprep.subr.mxu0 %v1446_v55  ;;  %v1094_v55 = vrot.slane %v5749_v42, %v5767_v48 }
 0x261   : > { %1810 = vmatpush1.msra.mxu0 %v1445_v56  ;;  %v1465_v56 = vld [vmem:[#allocation8 + $0x270] sm:$0xff] }
 0x262   : > { %1811 = vmatprep.subr.mxu0 %v1442_v57 }
 0x263   : > { %1812 = vmatpush1.msra.mxu0 %v1441_v58 }
 0x264   : > { %1813 = vmatprep.subr.mxu0 %v1438_v59  ;;  %v1462_v59 = vld [vmem:[#allocation8 + $0x258] sm:$0xff] }
 0x265   : > { %1814 = vmatpush1.msra.mxu0 %v1437_v60 }
 0x266   : > { %1815 = vmatprep.subr.mxu0 %v1434_v61  ;;  %v1461_v61 = vld [vmem:[#allocation8 + $0x250] sm:$0xff] }
 0x267   : > { %1816 = vmatpush1.msra.mxu0 %v1433_v62 }
 0x268   : > { %1817 = vmatprep.subr.mxu0 %v1430_v63  ;;  %v1458_v63 = vld [vmem:[#allocation8 + $0x238] sm:$0xff] }
 0x269   : > { %1818 = vmatpush1.msra.mxu0 %v1429_v0 }
 0x26a   : > { %1819 = vmatprep.subr.mxu0 %v1426_v1  ;;  %v1457_v1 = vld [vmem:[#allocation8 + $0x230] sm:$0xff] }
 0x26b   : > { %1820 = vmatpush1.msra.mxu0 %v1425_v2 }
 0x26c   : > { %1821 = vmatprep.subr.mxu0 %v1422_v3 }
 0x26d   : > { %1822 = vmatpush1.msra.mxu0 %v1421_v4  ;;  %v1454_v4 = vld [vmem:[#allocation8 + $0x218] sm:$0xff] }
 0x26e   : > { %1823 = vmatprep.subr.mxu0 %v1418_v5  ;;  %v1453_v5 = vld [vmem:[#allocation8 + $0x210] sm:$0xff] }
 0x26f   : > { %1824 = vmatpush1.msra.mxu0 %v1417_v6 }
 0x270   : > { %1825 = vmatprep.subr.mxu0 %v1414_v7 }
 0x271   : > { %1826 = vmatpush1.msra.mxu0 %v1413_v8  ;;  %v1577_v8 = vld [vmem:[#allocation8 + $0x5f0] sm:$0xff] }
 0x272   : > { %1827 = vmatprep.subr.mxu0 %v1410_v9  ;;  %v1574_v9 = vld [vmem:[#allocation8 + $0x5d8] sm:$0xff] }
 0x273   : > { %1828 = vmatpush1.msra.mxu0 %v1409_v10  ;;  %v1573_v10 = vld [vmem:[#allocation8 + $0x5d0] sm:$0xff] }
 0x274   : > { %1829 = vmatprep.subr.mxu0 %v1406_v11  ;;  %v1570_v11 = vld [vmem:[#allocation8 + $0x5b8] sm:$0xff] }
 0x275   : > { %1830 = vmatpush1.msra.mxu0 %v1405_v12  ;;  %v1569_v12 = vld [vmem:[#allocation8 + $0x5b0] sm:$0xff] }
 0x276   : > { %1831 = vmatprep.subr.mxu0 %v1402_v13  ;;  %v2014_v13 = vld [vmem:[#allocation11 + $0x1e8] sm:$0xff] }
 0x277   : > { %1832 = vmatpush1.msra.mxu0 %v1401_v14  ;;  %v2013_v14 = vld [vmem:[#allocation11 + $0x1e0] sm:$0xff] }
 0x278   : > { %1833 = vmatprep.subr.mxu0 %v1398_v15  ;;  %v2010_v15 = vld [vmem:[#allocation11 + $0x1c8] sm:$0xff] }
 0x279   : > { %1834 = vmatpush1.msra.mxu0 %v1397_v16  ;;  %v1566_v16 = vld [vmem:[#allocation8 + $0x598] sm:$0xff] }
 0x27a   : > { %1835 = vmatprep.subr.mxu0 %v1394_v18  ;;  %v2009_v18 = vld [vmem:[#allocation11 + $0x1c0] sm:$0xff] }
 0x27b   : > { %1836 = vmatpush1.msra.mxu0 %v1393_v19  ;;  %v1562_v19 = vld [vmem:[#allocation8 + $0x578] sm:$0xff] }
 0x27c   : > { %1837 = vmatprep.subr.mxu0 %v1390_v20  ;;  %v2005_v20 = vld [vmem:[#allocation11 + $0x1a0] sm:$0xff] }
 0x27d   : > { %1838 = vmatpush1.msra.mxu0 %v1389_v21  ;;  %v1561_v21 = vld [vmem:[#allocation8 + $0x570] sm:$0xff] }
 0x27e   : > { %1839 = vmatprep.subr.mxu0 %v1514_v22  ;;  %v2002_v22 = vld [vmem:[#allocation11 + $0x188] sm:$0xff] }
 0x27f   : > { %1840 = vmatpush2.msra.mxu0 %v1513_v23  ;;  %v1558_v23 = vld [vmem:[#allocation8 + $0x558] sm:$0xff] }
 0x280   : > { %1841 = vmatprep.subr.mxu0 %v1510_v24  ;;  %v2001_v24 = vld [vmem:[#allocation11 + $0x180] sm:$0xff] }
 0x281   : > { %1842 = vmatpush2.msra.mxu0 %v1509_v25  ;;  %v1557_v25 = vld [vmem:[#allocation8 + $0x550] sm:$0xff] }
 0x282   : > { %1843 = vmatprep.subr.mxu0 %v1506_v26  ;;  %v1998_v26 = vld [vmem:[#allocation11 + $0x168] sm:$0xff] }
 0x283   : > { %1844 = vmatpush2.msra.mxu0 %v1505_v28  ;;  %v1554_v28 = vld [vmem:[#allocation8 + $0x538] sm:$0xff] }
 0x284   : > { %1845 = vmatprep.subr.mxu0 %v1502_v29  ;;  %v1997_v29 = vld [vmem:[#allocation11 + $0x160] sm:$0xff] }
 0x285   : > { %1846 = vmatpush2.msra.mxu0 %v1501_v30  ;;  %v1553_v30 = vld [vmem:[#allocation8 + $0x530] sm:$0xff] }
 0x286   : > { %1847 = vmatprep.subr.mxu0 %v1498_v31  ;;  %v1994_v31 = vld [vmem:[#allocation11 + $0x148] sm:$0xff] }
 0x287   : > { %1848 = vmatpush2.msra.mxu0 %v1497_v33  ;;  %v1550_v33 = vld [vmem:[#allocation8 + $0x518] sm:$0xff] }
 0x288   : > { %1849 = vmatprep.subr.mxu0 %v1494_v34  ;;  %v1993_v34 = vld [vmem:[#allocation11 + $0x140] sm:$0xff] }
 0x289   : > { %1850 = vmatpush2.msra.mxu0 %v1493_v35  ;;  %v1549_v35 = vld [vmem:[#allocation8 + $0x510] sm:$0xff] }
 0x28a   : > { %1851 = vmatprep.subr.mxu0 %v1490_v36  ;;  %v1990_v36 = vld [vmem:[#allocation11 + $0x128] sm:$0xff] }
 0x28b   : > { %1852 = vmatpush2.msra.mxu0 %v1489_v37  ;;  %v1546_v37 = vld [vmem:[#allocation8 + $0x4f8] sm:$0xff] }
 0x28c   : > { %1853 = vmatprep.subr.mxu0 %v1486_v38  ;;  %v1989_v38 = vld [vmem:[#allocation11 + $0x120] sm:$0xff] }
 0x28d   : > { %1854 = vmatpush2.msra.mxu0 %v1485_v39  ;;  %v1545_v39 = vld [vmem:[#allocation8 + $0x4f0] sm:$0xff] }
 0x28e   : > { %1855 = vmatprep.subr.mxu0 %v1482_v40  ;;  %v1986_v40 = vld [vmem:[#allocation11 + $0x108] sm:$0xff] }
 0x28f   : > { %1856 = vmatpush2.msra.mxu0 %v1481_v44  ;;  %v1542_v44 = vld [vmem:[#allocation8 + $0x4d8] sm:$0xff] }
 0x290   : > { %1857 = vmatprep.subr.mxu0 %v1478_v45  ;;  %v1985_v45 = vld [vmem:[#allocation11 + $0x100] sm:$0xff] }
 0x291   : > { %1858 = vmatpush2.msra.mxu0 %v1477_v46  ;;  %v1541_v46 = vld [vmem:[#allocation8 + $0x4d0] sm:$0xff] }
 0x292   : > { %1859 = vmatprep.subr.mxu0 %v1474_v32  ;;  %v1982_v32 = vld [vmem:[#allocation11 + $0xe8] sm:$0xff] }
 0x293   : > { %1860 = vmatpush2.msra.mxu0 %v1473_v27  ;;  %v1538_v27 = vld [vmem:[#allocation8 + $0x4b8] sm:$0xff] }
 0x294   : > { %1861 = vmatprep.subr.mxu0 %v1470_v50  ;;  %v1981_v50 = vld [vmem:[#allocation11 + $0xe0] sm:$0xff] }
 0x295   : > { %v1307_v57 = vpop.f32.mrf.mxu0  ;;  %v1378_v58 = vpop.f32.mrf.mxu1  ;;  %1862 = vmatpush2.msra.mxu0 %v1469_v52  ;;  %v1978_v52 = vld [vmem:[#allocation11 + $0xc8] sm:$0xff] }
 0x296   : > { %v1308_v60 = vadd.f32 %v1307_v57, %v1090_v51  ;;  %1863 = vmatprep.subr.mxu0 %v1466_v54  ;;  %v1537_v51 = vld [vmem:[#allocation8 + $0x4b0] sm:$0xff]  ;;  %v1534_v54 = vld [vmem:[#allocation8 + $0x498] sm:$0xff] }
 0x297   : > { %v1309_v62 = vpop.f32.mrf.mxu0  ;;  %1864 = vmatpush2.msra.mxu0 %v1465_v56  ;;  %v1380_v3 = vpop.f32.mrf.mxu1  ;;  %v1533_v56 = vld [vmem:[#allocation8 + $0x490] sm:$0xff] }
 0x298   : > { %v1310_v0 = vadd.f32 %v1309_v62, %v1094_v55  ;;  %1865 = vmatprep.subr.mxu0 %v1462_v59  ;;  %v5773_v2 = vadd.f32 %v1378_v58, %v1308_v60  ;;  %v1977_v55 = vld [vmem:[#allocation11 + $0xc0] sm:$0xff]  ;;  %v1974_v57 = vld [vmem:[#allocation11 + $0xa8] sm:$0xff]  ;;  %v1530_v58 = vld [vmem:[#allocation8 + $0x478] sm:$0xff] }
 0x299   : > { %1866 = vmatpush2.msra.mxu0 %v1461_v61  ;;  %v1973_v59 = vld [vmem:[#allocation11 + $0xa0] sm:$0xff]  ;;  %v1529_v60 = vld [vmem:[#allocation8 + $0x470] sm:$0xff]  ;;  %v1526_v62 = vld [vmem:[#allocation8 + $0x458] sm:$0xff] }
 0x29a   : > { %v1381_v42 = vadd.f32 %v1380_v3, %v1310_v0  ;;  %1867 = vmatprep.subr.mxu0 %v1458_v63  ;;  %v1385_v7 = vmax.f32 %v5773_v2, 0.0  ;;  %v1970_v61 = vld [vmem:[#allocation11 + $0x88] sm:$0xff]  ;;  %v1969_v63 = vld [vmem:[#allocation11 + $0x80] sm:$0xff]  ;;  %v1522_v3 = vld [vmem:[#allocation8 + $0x438] sm:$0xff] }
 0x29b   : > { %1868 = vmatpush2.msra.mxu0 %v1457_v1  ;;  %v1525_v0 = vld [vmem:[#allocation8 + $0x450] sm:$0xff] }
 0x29c   : > { %v1386_v6 = vmax.f32 %v1381_v42, 0.0  ;;  %1869 = vmatprep.subr.mxu0 %v1454_v4  ;;  %v1966_v1 = vld [vmem:[#allocation11 + $0x68] sm:$0xff]  ;;  %v1965_v4 = vld [vmem:[#allocation11 + $0x60] sm:$0xff] }
 0x29d   : > { %1870 = vmatpush2.msra.mxu0 %v1453_v5  ;;  %v1521_v42 = vld [vmem:[#allocation8 + $0x430] sm:$0xff] }
 0x29e   : > { %1800 = vmatprep.mubr.f32.mxu1 %v1386_v6  ;;  %1872 = vmatmul.mubr.f32.vlgmr.msra.gmra.mxu0 %v1383_v53  ;;  %v2006_v53 = vld [vmem:[#allocation11 + $0x1a8] sm:$0xff] }
 0x29f   : > { %1801 = vmatmul.mubr.f32.vlgmr.msra.gmra.mxu1 %v1385_v7  ;;  %2231 = vmatprep.subr.mxu0 %v2014_v13  ;;  %v1962_v5 = vld [vmem:[#allocation11 + $0x48] sm:$0xff] }
 0x2a0   : > { %1879 = vmatpush1.msra.mxu1 %v1577_v8  ;;  %1942 = vmatprep.mubr.f32.mxu1 %v1386_v6  ;;  %v1518_v6 = vld [vmem:[#allocation8 + $0x418] sm:$0xff]  ;;  %v1961_v8 = vld [vmem:[#allocation11 + $0x40] sm:$0xff]  ;;  %v1641_v13 = vld [vmem:[#allocation8 + $0x7f0] sm:$0xff] }
 0x2a1   : > { %1880 = vmatprep.subr.mxu1 %v1574_v9  ;;  %2232 = vmatpush1.msra.mxu0 %v2013_v14  ;;  %v1517_v9 = vld [vmem:[#allocation8 + $0x410] sm:$0xff] }
 0x2a2   : > { %1881 = vmatpush1.msra.mxu1 %v1573_v10  ;;  %2233 = vmatprep.subr.mxu0 %v2010_v15  ;;  %v1958_v10 = vld [vmem:[#allocation11 + $0x28] sm:$0xff]  ;;  %v1638_v15 = vld [vmem:[#allocation8 + $0x7d8] sm:$0xff] }
 0x2a3   : > { %1882 = vmatprep.subr.mxu1 %v1570_v11  ;;  %2234 = vmatpush1.msra.mxu0 %v2009_v18  ;;  %v1642_v11 = vld [vmem:[#allocation8 + $0x7f8] sm:$0xff]  ;;  %v1954_v14 = vld [vmem:[#allocation11 + $0x8] sm:$0xff] }
 0x2a4   : > { %1883 = vmatpush1.msra.mxu1 %v1569_v12  ;;  %2235 = vmatprep.subr.mxu0 %v2006_v53  ;;  %v1957_v12 = vld [vmem:[#allocation11 + $0x20] sm:$0xff]  ;;  %v1637_v18 = vld [vmem:[#allocation8 + $0x7d0] sm:$0xff]  ;;  %v1634_v53 = vld [vmem:[#allocation8 + $0x7b8] sm:$0xff] }
 0x2a5   : > { %1884 = vmatprep.subr.mxu1 %v1566_v16  ;;  %2236 = vmatpush1.msra.mxu0 %v2005_v20  ;;  %v1953_v16 = vld [vmem:[#allocation11] sm:$0xff]  ;;  %v1633_v20 = vld [vmem:[#allocation8 + $0x7b0] sm:$0xff] }
 0x2a6   : > { %1885 = vmatpush1.msra.mxu1 %v1565_v49  ;;  %2237 = vmatprep.subr.mxu0 %v2002_v22  ;;  %v2078_v49 = vld [vmem:[#allocation11 + $0x3e8] sm:$0xff]  ;;  %v1630_v22 = vld [vmem:[#allocation8 + $0x798] sm:$0xff] }
 0x2a7   : > { %1886 = vmatprep.subr.mxu1 %v1562_v19  ;;  %2238 = vmatpush1.msra.mxu0 %v2001_v24  ;;  %v2077_v19 = vld [vmem:[#allocation11 + $0x3e0] sm:$0xff]  ;;  %v1629_v24 = vld [vmem:[#allocation8 + $0x790] sm:$0xff] }
 0x2a8   : > { %1887 = vmatpush1.msra.mxu1 %v1561_v21  ;;  %2239 = vmatprep.subr.mxu0 %v1998_v26  ;;  %v2074_v21 = vld [vmem:[#allocation11 + $0x3c8] sm:$0xff]  ;;  %v1626_v26 = vld [vmem:[#allocation8 + $0x778] sm:$0xff] }
 0x2a9   : > { %1888 = vmatprep.subr.mxu1 %v1558_v23  ;;  %2240 = vmatpush1.msra.mxu0 %v1997_v29  ;;  %v2073_v23 = vld [vmem:[#allocation11 + $0x3c0] sm:$0xff]  ;;  %v1625_v29 = vld [vmem:[#allocation8 + $0x770] sm:$0xff] }
 0x2aa   : > { %1889 = vmatpush1.msra.mxu1 %v1557_v25  ;;  %2241 = vmatprep.subr.mxu0 %v1994_v31  ;;  %v2070_v25 = vld [vmem:[#allocation11 + $0x3a8] sm:$0xff]  ;;  %v1622_v31 = vld [vmem:[#allocation8 + $0x758] sm:$0xff] }
 0x2ab   : > { %1890 = vmatprep.subr.mxu1 %v1554_v28  ;;  %2242 = vmatpush1.msra.mxu0 %v1993_v34  ;;  %v2069_v28 = vld [vmem:[#allocation11 + $0x3a0] sm:$0xff]  ;;  %v1621_v34 = vld [vmem:[#allocation8 + $0x750] sm:$0xff] }
 0x2ac   : > { %1891 = vmatpush1.msra.mxu1 %v1553_v30  ;;  %2243 = vmatprep.subr.mxu0 %v1990_v36  ;;  %v2066_v30 = vld [vmem:[#allocation11 + $0x388] sm:$0xff]  ;;  %v1618_v36 = vld [vmem:[#allocation8 + $0x738] sm:$0xff] }
 0x2ad   : > { %1892 = vmatprep.subr.mxu1 %v1550_v33  ;;  %2244 = vmatpush1.msra.mxu0 %v1989_v38  ;;  %v2065_v33 = vld [vmem:[#allocation11 + $0x380] sm:$0xff]  ;;  %v1617_v38 = vld [vmem:[#allocation8 + $0x730] sm:$0xff] }
 0x2ae   : > { %1893 = vmatpush1.msra.mxu1 %v1549_v35  ;;  %2245 = vmatprep.subr.mxu0 %v1986_v40  ;;  %v2062_v35 = vld [vmem:[#allocation11 + $0x368] sm:$0xff]  ;;  %v1614_v40 = vld [vmem:[#allocation8 + $0x718] sm:$0xff] }
 0x2af   : > { %1894 = vmatprep.subr.mxu1 %v1546_v37  ;;  %2246 = vmatpush1.msra.mxu0 %v1985_v45  ;;  %v2061_v37 = vld [vmem:[#allocation11 + $0x360] sm:$0xff]  ;;  %v1613_v45 = vld [vmem:[#allocation8 + $0x710] sm:$0xff] }
 0x2b0   : > { %1895 = vmatpush1.msra.mxu1 %v1545_v39  ;;  %2247 = vmatprep.subr.mxu0 %v1982_v32  ;;  %v2058_v39 = vld [vmem:[#allocation11 + $0x348] sm:$0xff]  ;;  %v1610_v32 = vld [vmem:[#allocation8 + $0x6f8] sm:$0xff] }
 0x2b1   : > { %1896 = vmatprep.subr.mxu1 %v1542_v44  ;;  %2248 = vmatpush1.msra.mxu0 %v1981_v50  ;;  %v2057_v44 = vld [vmem:[#allocation11 + $0x340] sm:$0xff]  ;;  %v1609_v50 = vld [vmem:[#allocation8 + $0x6f0] sm:$0xff] }
 0x2b2   : > { %1897 = vmatpush1.msra.mxu1 %v1541_v46  ;;  %2249 = vmatprep.subr.mxu0 %v1978_v52  ;;  %v2054_v46 = vld [vmem:[#allocation11 + $0x328] sm:$0xff]  ;;  %v1606_v52 = vld [vmem:[#allocation8 + $0x6d8] sm:$0xff] }
 0x2b3   : > { %1898 = vmatprep.subr.mxu1 %v1538_v27  ;;  %2250 = vmatpush1.msra.mxu0 %v1977_v55  ;;  %v2053_v27 = vld [vmem:[#allocation11 + $0x320] sm:$0xff]  ;;  %v1605_v55 = vld [vmem:[#allocation8 + $0x6d0] sm:$0xff] }
 0x2b4   : > { %1899 = vmatpush1.msra.mxu1 %v1537_v51  ;;  %2251 = vmatprep.subr.mxu0 %v1974_v57  ;;  %v2050_v51 = vld [vmem:[#allocation11 + $0x308] sm:$0xff]  ;;  %v1602_v57 = vld [vmem:[#allocation8 + $0x6b8] sm:$0xff] }
 0x2b5   : > { %1900 = vmatprep.subr.mxu1 %v1534_v54  ;;  %2252 = vmatpush1.msra.mxu0 %v1973_v59  ;;  %v2049_v54 = vld [vmem:[#allocation11 + $0x300] sm:$0xff]  ;;  %v1601_v59 = vld [vmem:[#allocation8 + $0x6b0] sm:$0xff] }
 0x2b6   : > { %1901 = vmatpush1.msra.mxu1 %v1533_v56  ;;  %2253 = vmatprep.subr.mxu0 %v1970_v61  ;;  %v2046_v56 = vld [vmem:[#allocation11 + $0x2e8] sm:$0xff]  ;;  %v1598_v61 = vld [vmem:[#allocation8 + $0x698] sm:$0xff] }
 0x2b7   : > { %1902 = vmatprep.subr.mxu1 %v1530_v58  ;;  %2254 = vmatpush1.msra.mxu0 %v1969_v63  ;;  %v2045_v58 = vld [vmem:[#allocation11 + $0x2e0] sm:$0xff]  ;;  %v1597_v63 = vld [vmem:[#allocation8 + $0x690] sm:$0xff] }
 0x2b8   : > { %1903 = vmatpush1.msra.mxu1 %v1529_v60  ;;  %2255 = vmatprep.subr.mxu0 %v1966_v1  ;;  %v2042_v60 = vld [vmem:[#allocation11 + $0x2c8] sm:$0xff]  ;;  %v1594_v1 = vld [vmem:[#allocation8 + $0x678] sm:$0xff] }
 0x2b9   : > { %1904 = vmatprep.subr.mxu1 %v1526_v62  ;;  %2256 = vmatpush1.msra.mxu0 %v1965_v4  ;;  %v2041_v62 = vld [vmem:[#allocation11 + $0x2c0] sm:$0xff]  ;;  %v1593_v4 = vld [vmem:[#allocation8 + $0x670] sm:$0xff] }
 0x2ba   : > { %1905 = vmatpush1.msra.mxu1 %v1525_v0  ;;  %2257 = vmatprep.subr.mxu0 %v1962_v5  ;;  %v2038_v0 = vld [vmem:[#allocation11 + $0x2a8] sm:$0xff]  ;;  %v1590_v5 = vld [vmem:[#allocation8 + $0x658] sm:$0xff] }
 0x2bb   : > { %1906 = vmatprep.subr.mxu1 %v1522_v3  ;;  %2258 = vmatpush1.msra.mxu0 %v1961_v8  ;;  %v2037_v3 = vld [vmem:[#allocation11 + $0x2a0] sm:$0xff]  ;;  %v1589_v8 = vld [vmem:[#allocation8 + $0x650] sm:$0xff] }
 0x2bc   : > { %1907 = vmatpush1.msra.mxu1 %v1521_v42  ;;  %2259 = vmatprep.subr.mxu0 %v1958_v10  ;;  %v2034_v42 = vld [vmem:[#allocation11 + $0x288] sm:$0xff]  ;;  %v1586_v10 = vld [vmem:[#allocation8 + $0x638] sm:$0xff] }
 0x2bd   : > { %1908 = vmatprep.subr.mxu1 %v1518_v6  ;;  %2260 = vmatpush1.msra.mxu0 %v1957_v12  ;;  %v2033_v6 = vld [vmem:[#allocation11 + $0x280] sm:$0xff]  ;;  %v1582_v12 = vld [vmem:[#allocation8 + $0x618] sm:$0xff]  ;;  %v2138_v2 = vld [vmem:[#allocation11 + $0x5c8] sm:$0xff] }
 0x2be   : > { %1909 = vmatpush1.msra.mxu1 %v1517_v9  ;;  %2261 = vmatprep.subr.mxu0 %v1954_v14  ;;  %v2030_v9 = vld [vmem:[#allocation11 + $0x268] sm:$0xff]  ;;  %v2029_v14 = vld [vmem:[#allocation11 + $0x260] sm:$0xff] }
 0x2bf   : > { %1910 = vmatprep.subr.mxu1 %v1642_v11  ;;  %2262 = vmatpush1.msra.mxu0 %v1953_v16  ;;  %v1585_v11 = vld [vmem:[#allocation8 + $0x630] sm:$0xff]  ;;  %v2025_v16 = vld [vmem:[#allocation11 + $0x240] sm:$0xff] }
 0x2c0   : > { %1911 = vmatpush2.msra.mxu1 %v1641_v13  ;;  %2263 = vmatprep.subr.mxu0 %v2078_v49  ;;  %v1581_v13 = vld [vmem:[#allocation8 + $0x610] sm:$0xff]  ;;  %v2021_v49 = vld [vmem:[#allocation11 + $0x220] sm:$0xff] }
 0x2c1   : > { %1912 = vmatprep.subr.mxu1 %v1638_v15  ;;  %2264 = vmatpush2.msra.mxu0 %v2077_v19  ;;  %v2026_v15 = vld [vmem:[#allocation11 + $0x248] sm:$0xff]  ;;  %v2017_v19 = vld [vmem:[#allocation11 + $0x200] sm:$0xff] }
 0x2c2   : > { %1913 = vmatpush2.msra.mxu1 %v1637_v18  ;;  %2265 = vmatprep.subr.mxu0 %v2074_v21  ;;  %v2022_v18 = vld [vmem:[#allocation11 + $0x228] sm:$0xff]  ;;  %v2141_v21 = vld [vmem:[#allocation11 + $0x5e0] sm:$0xff] }
 0x2c3   : > { %1914 = vmatprep.subr.mxu1 %v1634_v53  ;;  %2266 = vmatpush2.msra.mxu0 %v2073_v23  ;;  %v2018_v53 = vld [vmem:[#allocation11 + $0x208] sm:$0xff] }
 0x2c4   : > { %1915 = vmatpush2.msra.mxu1 %v1633_v20  ;;  %2267 = vmatprep.subr.mxu0 %v2070_v25  ;;  %v2142_v20 = vld [vmem:[#allocation11 + $0x5e8] sm:$0xff] }
 0x2c5   : > { %1916 = vmatprep.subr.mxu1 %v1630_v22  ;;  %2268 = vmatpush2.msra.mxu0 %v2069_v28  ;;  %v2016_v22 = vld [vmem:[#allocation11 + $0x1f8] sm:$0xff]  ;;  %v2134_v23 = vld [vmem:[#allocation11 + $0x5a8] sm:$0xff] }
 0x2c6   : > { %1917 = vmatpush2.msra.mxu1 %v1629_v24  ;;  %2269 = vmatprep.subr.mxu0 %v2066_v30  ;;  %v2133_v24 = vld [vmem:[#allocation11 + $0x5a0] sm:$0xff]  ;;  %v2130_v25 = vld [vmem:[#allocation11 + $0x588] sm:$0xff] }
 0x2c7   : > { %1918 = vmatprep.subr.mxu1 %v1626_v26  ;;  %2270 = vmatpush2.msra.mxu0 %v2065_v33  ;;  %v2129_v26 = vld [vmem:[#allocation11 + $0x580] sm:$0xff]  ;;  %v2126_v28 = vld [vmem:[#allocation11 + $0x568] sm:$0xff] }
 0x2c8   : > { %1919 = vmatpush2.msra.mxu1 %v1625_v29  ;;  %2271 = vmatprep.subr.mxu0 %v2062_v35  ;;  %v2125_v29 = vld [vmem:[#allocation11 + $0x560] sm:$0xff]  ;;  %v2122_v30 = vld [vmem:[#allocation11 + $0x548] sm:$0xff] }
 0x2c9   : > { %1920 = vmatprep.subr.mxu1 %v1622_v31  ;;  %2272 = vmatpush2.msra.mxu0 %v2061_v37  ;;  %v2121_v31 = vld [vmem:[#allocation11 + $0x540] sm:$0xff]  ;;  %v2118_v33 = vld [vmem:[#allocation11 + $0x528] sm:$0xff] }
 0x2ca   : > { %1921 = vmatpush2.msra.mxu1 %v1621_v34  ;;  %2273 = vmatprep.subr.mxu0 %v2058_v39  ;;  %v2117_v34 = vld [vmem:[#allocation11 + $0x520] sm:$0xff]  ;;  %v2114_v35 = vld [vmem:[#allocation11 + $0x508] sm:$0xff] }
 0x2cb   : > { %1922 = vmatprep.subr.mxu1 %v1618_v36  ;;  %2274 = vmatpush2.msra.mxu0 %v2057_v44  ;;  %v2113_v36 = vld [vmem:[#allocation11 + $0x500] sm:$0xff]  ;;  %v2110_v37 = vld [vmem:[#allocation11 + $0x4e8] sm:$0xff] }
 0x2cc   : > { %1923 = vmatpush2.msra.mxu1 %v1617_v38  ;;  %2275 = vmatprep.subr.mxu0 %v2054_v46  ;;  %v2109_v38 = vld [vmem:[#allocation11 + $0x4e0] sm:$0xff]  ;;  %v2106_v39 = vld [vmem:[#allocation11 + $0x4c8] sm:$0xff] }
 0x2cd   : > { %1924 = vmatprep.subr.mxu1 %v1614_v40  ;;  %2276 = vmatpush2.msra.mxu0 %v2053_v27  ;;  %v2105_v40 = vld [vmem:[#allocation11 + $0x4c0] sm:$0xff]  ;;  %v2102_v44 = vld [vmem:[#allocation11 + $0x4a8] sm:$0xff] }
 0x2ce   : > { %1925 = vmatpush2.msra.mxu1 %v1613_v45  ;;  %2277 = vmatprep.subr.mxu0 %v2050_v51  ;;  %v2101_v45 = vld [vmem:[#allocation11 + $0x4a0] sm:$0xff]  ;;  %v2098_v46 = vld [vmem:[#allocation11 + $0x488] sm:$0xff] }
 0x2cf   : > { %1926 = vmatprep.subr.mxu1 %v1610_v32  ;;  %2278 = vmatpush2.msra.mxu0 %v2049_v54  ;;  %v2097_v32 = vld [vmem:[#allocation11 + $0x480] sm:$0xff]  ;;  %v2094_v27 = vld [vmem:[#allocation11 + $0x468] sm:$0xff] }
 0x2d0   : > { %1927 = vmatpush2.msra.mxu1 %v1609_v50  ;;  %2279 = vmatprep.subr.mxu0 %v2046_v56  ;;  %v2093_v50 = vld [vmem:[#allocation11 + $0x460] sm:$0xff]  ;;  %v2090_v51 = vld [vmem:[#allocation11 + $0x448] sm:$0xff] }
 0x2d1   : > { %1928 = vmatprep.subr.mxu1 %v1606_v52  ;;  %2280 = vmatpush2.msra.mxu0 %v2045_v58  ;;  %v2089_v52 = vld [vmem:[#allocation11 + $0x440] sm:$0xff]  ;;  %v2086_v54 = vld [vmem:[#allocation11 + $0x428] sm:$0xff] }
 0x2d2   : > { %1929 = vmatpush2.msra.mxu1 %v1605_v55  ;;  %2281 = vmatprep.subr.mxu0 %v2042_v60  ;;  %v2085_v55 = vld [vmem:[#allocation11 + $0x420] sm:$0xff]  ;;  %v2082_v56 = vld [vmem:[#allocation11 + $0x408] sm:$0xff] }
 0x2d3   : > { %1930 = vmatprep.subr.mxu1 %v1602_v57  ;;  %2282 = vmatpush2.msra.mxu0 %v2041_v62  ;;  %v2081_v57 = vld [vmem:[#allocation11 + $0x400] sm:$0xff]  ;;  %v2206_v58 = vld [vmem:[#allocation11 + $0x7e8] sm:$0xff] }
 0x2d4   : > { %1931 = vmatpush2.msra.mxu1 %v1601_v59  ;;  %2283 = vmatprep.subr.mxu0 %v2038_v0  ;;  %v2205_v59 = vld [vmem:[#allocation11 + $0x7e0] sm:$0xff]  ;;  %v2202_v60 = vld [vmem:[#allocation11 + $0x7c8] sm:$0xff] }
 0x2d5   : > { %1932 = vmatprep.subr.mxu1 %v1598_v61  ;;  %2284 = vmatpush2.msra.mxu0 %v2037_v3  ;;  %v2201_v61 = vld [vmem:[#allocation11 + $0x7c0] sm:$0xff]  ;;  %v2198_v62 = vld [vmem:[#allocation11 + $0x7a8] sm:$0xff] }
 0x2d6   : > { %1933 = vmatpush2.msra.mxu1 %v1597_v63  ;;  %2285 = vmatprep.subr.mxu0 %v2034_v42  ;;  %v2197_v63 = vld [vmem:[#allocation11 + $0x7a0] sm:$0xff]  ;;  %v2194_v0 = vld [vmem:[#allocation11 + $0x788] sm:$0xff] }
 0x2d7   : > { %1934 = vmatprep.subr.mxu1 %v1594_v1  ;;  %2286 = vmatpush2.msra.mxu0 %v2033_v6  ;;  %v2193_v1 = vld [vmem:[#allocation11 + $0x780] sm:$0xff]  ;;  %v2190_v3 = vld [vmem:[#allocation11 + $0x768] sm:$0xff] }
 0x2d8   : > { %1935 = vmatpush2.msra.mxu1 %v1593_v4  ;;  %2287 = vmatprep.subr.mxu0 %v2030_v9  ;;  %v2189_v4 = vld [vmem:[#allocation11 + $0x760] sm:$0xff]  ;;  %v2186_v42 = vld [vmem:[#allocation11 + $0x748] sm:$0xff] }
 0x2d9   : > { %1936 = vmatprep.subr.mxu1 %v1590_v5  ;;  %2288 = vmatpush2.msra.mxu0 %v2029_v14  ;;  %v2185_v5 = vld [vmem:[#allocation11 + $0x740] sm:$0xff]  ;;  %v2182_v6 = vld [vmem:[#allocation11 + $0x728] sm:$0xff] }
 0x2da   : > { %1937 = vmatpush2.msra.mxu1 %v1589_v8  ;;  %2289 = vmatprep.subr.mxu0 %v2026_v15  ;;  %v2181_v8 = vld [vmem:[#allocation11 + $0x720] sm:$0xff]  ;;  %v2178_v9 = vld [vmem:[#allocation11 + $0x708] sm:$0xff] }
 0x2db   : > { %1938 = vmatprep.subr.mxu1 %v1586_v10  ;;  %2290 = vmatpush2.msra.mxu0 %v2025_v16  ;;  %v2177_v10 = vld [vmem:[#allocation11 + $0x700] sm:$0xff]  ;;  %v2166_v15 = vld [vmem:[#allocation11 + $0x6a8] sm:$0xff] }
 0x2dc   : > { %1939 = vmatpush2.msra.mxu1 %v1585_v11  ;;  %2291 = vmatprep.subr.mxu0 %v2022_v18  ;;  %v2174_v11 = vld [vmem:[#allocation11 + $0x6e8] sm:$0xff]  ;;  %v2169_v14 = vld [vmem:[#allocation11 + $0x6c0] sm:$0xff] }
 0x2dd   : > { %1940 = vmatprep.subr.mxu1 %v1582_v12  ;;  %2292 = vmatpush2.msra.mxu0 %v2021_v49  ;;  %v2173_v12 = vld [vmem:[#allocation11 + $0x6e0] sm:$0xff]  ;;  %v2162_v18 = vld [vmem:[#allocation11 + $0x688] sm:$0xff] }
 0x2de   : > { %1941 = vmatpush2.msra.mxu1 %v1581_v13  ;;  %2293 = vmatprep.subr.mxu0 %v2018_v53  ;;  %v2170_v13 = vld [vmem:[#allocation11 + $0x6c8] sm:$0xff]  ;;  %v2165_v16 = vld [vmem:[#allocation11 + $0x6a0] sm:$0xff] }
 0x2df   : > { %1943 = vmatmul.mubr.f32.vlgmr.msra.gmra.mxu1 %v1385_v7  ;;  %2302 = vmatprep.subr.mxu1 %v2142_v20  ;;  %v2137_v7 = vld [vmem:[#allocation11 + $0x5c0] sm:$0xff]  ;;  %v2158_v53 = vld [vmem:[#allocation11 + $0x668] sm:$0xff] }
 0x2e0   : > { %2294 = vmatpush2.msra.mxu0 %v2017_v19  ;;  %2303 = vmatpush1.msra.mxu1 %v2141_v21  ;;  %v2161_v49 = vld [vmem:[#allocation11 + $0x680] sm:$0xff]  ;;  %v2154_v20 = vld [vmem:[#allocation11 + $0x648] sm:$0xff] }
 0x2e1   : > { %2373 = vmatprep.subr.mxu0 %v2016_v22  ;;  %2304 = vmatprep.subr.mxu1 %v2138_v2  ;;  %v2157_v19 = vld [vmem:[#allocation11 + $0x660] sm:$0xff]  ;;  %v2150_v22 = vld [vmem:[#allocation11 + $0x628] sm:$0xff] }
 0x2e2   : > { %2305 = vmatpush1.msra.mxu1 %v2137_v7  ;;  %v2153_v21 = vld [vmem:[#allocation11 + $0x640] sm:$0xff]  ;;  %v2146_v7 = vld [vmem:[#allocation11 + $0x608] sm:$0xff] }
 0x2e3   : > { %2306 = vmatprep.subr.mxu1 %v2134_v23  ;;  %v2149_v2 = vld [vmem:[#allocation11 + $0x620] sm:$0xff] }
 0x2e4   : > { %2307 = vmatpush1.msra.mxu1 %v2133_v24  ;;  %v2145_v23 = vld [vmem:[#allocation11 + $0x600] sm:$0xff]  ;;  %v2144_v24 = vld [vmem:[#allocation11 + $0x5f8] sm:$0xff] }
 0x2e5   : > { %2308 = vmatprep.subr.mxu1 %v2130_v25  ;;  %v5782_v25 = vld [vmem:[#allocation10] sm:$0xf] }
 0x2e6   : > { %2309 = vmatpush1.msra.mxu1 %v2129_v26 }
 0x2e7   : > { %2310 = vmatprep.subr.mxu1 %v2126_v28  ;;  %v1648_v28 = vrot.slane %v5782_v25, %v5747_v41 }
 0x2e8   : > { %2311 = vmatpush1.msra.mxu1 %v2125_v29  ;;  %v1652_v29 = vrot.slane %v5782_v25, %v5752_v43 }
 0x2e9   : > { %2312 = vmatprep.subr.mxu1 %v2122_v30 }
 0x2ea   : > { %2313 = vmatpush1.msra.mxu1 %v2121_v31 }
 0x2eb   : > { %2314 = vmatprep.subr.mxu1 %v2118_v33 }
 0x2ec   : > { %2315 = vmatpush1.msra.mxu1 %v2117_v34 }
 0x2ed   : > { %2316 = vmatprep.subr.mxu1 %v2114_v35 }
 0x2ee   : > { %2317 = vmatpush1.msra.mxu1 %v2113_v36 }
 0x2ef   : > { %2318 = vmatprep.subr.mxu1 %v2110_v37 }
 0x2f0   : > { %2319 = vmatpush1.msra.mxu1 %v2109_v38 }
 0x2f1   : > { %2320 = vmatprep.subr.mxu1 %v2106_v39 }
 0x2f2   : > { %2321 = vmatpush1.msra.mxu1 %v2105_v40  ;;  %v2015_v40 = vld [vmem:[#allocation11 + $0x1f0] sm:$0xff] }
 0x2f3   : > { %2322 = vmatprep.subr.mxu1 %v2102_v44  ;;  %v2012_v44 = vld [vmem:[#allocation11 + $0x1d8] sm:$0xff] }
 0x2f4   : > { %2323 = vmatpush1.msra.mxu1 %v2101_v45  ;;  %v2011_v45 = vld [vmem:[#allocation11 + $0x1d0] sm:$0xff] }
 0x2f5   : > { %2324 = vmatprep.subr.mxu1 %v2098_v46  ;;  %v2008_v46 = vld [vmem:[#allocation11 + $0x1b8] sm:$0xff] }
 0x2f6   : > { %2325 = vmatpush1.msra.mxu1 %v2097_v32  ;;  %v2007_v32 = vld [vmem:[#allocation11 + $0x1b0] sm:$0xff] }
 0x2f7   : > { %2326 = vmatprep.subr.mxu1 %v2094_v27  ;;  %v2004_v27 = vld [vmem:[#allocation11 + $0x198] sm:$0xff] }
 0x2f8   : > { %2327 = vmatpush1.msra.mxu1 %v2093_v50  ;;  %v2003_v50 = vld [vmem:[#allocation11 + $0x190] sm:$0xff] }
 0x2f9   : > { %2328 = vmatprep.subr.mxu1 %v2090_v51  ;;  %v2000_v51 = vld [vmem:[#allocation11 + $0x178] sm:$0xff] }
 0x2fa   : > { %2329 = vmatpush1.msra.mxu1 %v2089_v52  ;;  %v1999_v52 = vld [vmem:[#allocation11 + $0x170] sm:$0xff] }
 0x2fb   : > { %2330 = vmatprep.subr.mxu1 %v2086_v54  ;;  %v1996_v54 = vld [vmem:[#allocation11 + $0x158] sm:$0xff] }
 0x2fc   : > { %2331 = vmatpush1.msra.mxu1 %v2085_v55  ;;  %v1995_v55 = vld [vmem:[#allocation11 + $0x150] sm:$0xff] }
 0x2fd   : > { %2332 = vmatprep.subr.mxu1 %v2082_v56  ;;  %v1992_v56 = vld [vmem:[#allocation11 + $0x138] sm:$0xff] }
 0x2fe   : > { %2333 = vmatpush1.msra.mxu1 %v2081_v57  ;;  %v1991_v57 = vld [vmem:[#allocation11 + $0x130] sm:$0xff] }
 0x2ff   : > { %2334 = vmatprep.subr.mxu1 %v2206_v58  ;;  %v1988_v58 = vld [vmem:[#allocation11 + $0x118] sm:$0xff] }
 0x300   : > { %2335 = vmatpush2.msra.mxu1 %v2205_v59  ;;  %v1987_v59 = vld [vmem:[#allocation11 + $0x110] sm:$0xff] }
 0x301   : > { %2336 = vmatprep.subr.mxu1 %v2202_v60  ;;  %v1984_v60 = vld [vmem:[#allocation11 + $0xf8] sm:$0xff] }
 0x302   : > { %2337 = vmatpush2.msra.mxu1 %v2201_v61  ;;  %v1983_v61 = vld [vmem:[#allocation11 + $0xf0] sm:$0xff] }
 0x303   : > { %2338 = vmatprep.subr.mxu1 %v2198_v62  ;;  %v1980_v62 = vld [vmem:[#allocation11 + $0xd8] sm:$0xff] }
 0x304   : > { %2339 = vmatpush2.msra.mxu1 %v2197_v63  ;;  %v1979_v63 = vld [vmem:[#allocation11 + $0xd0] sm:$0xff] }
 0x305   : > { %2340 = vmatprep.subr.mxu1 %v2194_v0  ;;  %v1976_v0 = vld [vmem:[#allocation11 + $0xb8] sm:$0xff] }
 0x306   : > { %2341 = vmatpush2.msra.mxu1 %v2193_v1  ;;  %v1975_v1 = vld [vmem:[#allocation11 + $0xb0] sm:$0xff] }
 0x307   : > { %2342 = vmatprep.subr.mxu1 %v2190_v3  ;;  %v1972_v3 = vld [vmem:[#allocation11 + $0x98] sm:$0xff] }
 0x308   : > { %2343 = vmatpush2.msra.mxu1 %v2189_v4  ;;  %v1971_v4 = vld [vmem:[#allocation11 + $0x90] sm:$0xff] }
 0x309   : > { %2344 = vmatprep.subr.mxu1 %v2186_v42  ;;  %v1968_v42 = vld [vmem:[#allocation11 + $0x78] sm:$0xff] }
 0x30a   : > { %2345 = vmatpush2.msra.mxu1 %v2185_v5  ;;  %v1967_v5 = vld [vmem:[#allocation11 + $0x70] sm:$0xff] }
 0x30b   : > { %2346 = vmatprep.subr.mxu1 %v2182_v6  ;;  %v1964_v6 = vld [vmem:[#allocation11 + $0x58] sm:$0xff] }
 0x30c   : > { %2347 = vmatpush2.msra.mxu1 %v2181_v8  ;;  %v1963_v8 = vld [vmem:[#allocation11 + $0x50] sm:$0xff] }
 0x30d   : > { %2348 = vmatprep.subr.mxu1 %v2178_v9  ;;  %v1960_v9 = vld [vmem:[#allocation11 + $0x38] sm:$0xff] }
 0x30e   : > { %2349 = vmatpush2.msra.mxu1 %v2177_v10  ;;  %v1959_v10 = vld [vmem:[#allocation11 + $0x30] sm:$0xff] }
 0x30f   : > { %2350 = vmatprep.subr.mxu1 %v2174_v11  ;;  %v1956_v11 = vld [vmem:[#allocation11 + $0x18] sm:$0xff] }
 0x310   : > { %2351 = vmatpush2.msra.mxu1 %v2173_v12  ;;  %v1955_v12 = vld [vmem:[#allocation11 + $0x10] sm:$0xff] }
 0x311   : > { %2352 = vmatprep.subr.mxu1 %v2170_v13  ;;  %v2080_v13 = vld [vmem:[#allocation11 + $0x3f8] sm:$0xff] }
 0x312   : > { %2353 = vmatpush2.msra.mxu1 %v2169_v14  ;;  %v2079_v14 = vld [vmem:[#allocation11 + $0x3f0] sm:$0xff] }
 0x313   : > { %2354 = vmatprep.subr.mxu1 %v2166_v15  ;;  %v2076_v15 = vld [vmem:[#allocation11 + $0x3d8] sm:$0xff] }
 0x314   : > { %2355 = vmatpush2.msra.mxu1 %v2165_v16  ;;  %v2075_v16 = vld [vmem:[#allocation11 + $0x3d0] sm:$0xff] }
 0x315   : > { %2356 = vmatprep.subr.mxu1 %v2162_v18  ;;  %v2072_v18 = vld [vmem:[#allocation11 + $0x3b8] sm:$0xff] }
 0x316   : > { %2357 = vmatpush2.msra.mxu1 %v2161_v49  ;;  %v2071_v49 = vld [vmem:[#allocation11 + $0x3b0] sm:$0xff] }
 0x317   : > { %2358 = vmatprep.subr.mxu1 %v2158_v53  ;;  %v2068_v53 = vld [vmem:[#allocation11 + $0x398] sm:$0xff] }
 0x318   : > { %2359 = vmatpush2.msra.mxu1 %v2157_v19  ;;  %v2067_v19 = vld [vmem:[#allocation11 + $0x390] sm:$0xff] }
 0x319   : > { %2360 = vmatprep.subr.mxu1 %v2154_v20  ;;  %v2064_v20 = vld [vmem:[#allocation11 + $0x378] sm:$0xff] }
 0x31a   : > { %2361 = vmatpush2.msra.mxu1 %v2153_v21  ;;  %v2063_v21 = vld [vmem:[#allocation11 + $0x370] sm:$0xff] }
 0x31b   : > { %2362 = vmatprep.subr.mxu1 %v2150_v22  ;;  %v2060_v22 = vld [vmem:[#allocation11 + $0x358] sm:$0xff] }
 0x31c   : > { %2363 = vmatpush2.msra.mxu1 %v2149_v2  ;;  %v2059_v2 = vld [vmem:[#allocation11 + $0x350] sm:$0xff] }
 0x31d   : > { %2364 = vmatprep.subr.mxu1 %v2146_v7  ;;  %v2056_v7 = vld [vmem:[#allocation11 + $0x338] sm:$0xff] }
 0x31e   : > { %2365 = vmatpush2.msra.mxu1 %v2145_v23  ;;  %v1731_v26 = vpop.f32.mrf.mxu0  ;;  %v2055_v23 = vld [vmem:[#allocation11 + $0x330] sm:$0xff] }
 0x31f   : > { %2444 = vmatprep.subr.mxu1 %v2144_v24  ;;  %v1732_v31 = vadd.f32 %v1731_v26, %v1648_v28  ;;  %v2052_v24 = vld [vmem:[#allocation11 + $0x318] sm:$0xff]  ;;  %v2051_v26 = vld [vmem:[#allocation11 + $0x310] sm:$0xff] }
 0x320   : > { %v1733_v30 = vpop.f32.mrf.mxu0  ;;  %v2048_v28 = vld [vmem:[#allocation11 + $0x2f8] sm:$0xff] }
 0x321   : > { %v1734_v34 = vadd.f32 %v1733_v30, %v1652_v29  ;;  %v2047_v29 = vld [vmem:[#allocation11 + $0x2f0] sm:$0xff]  ;;  %v2044_v30 = vld [vmem:[#allocation11 + $0x2d8] sm:$0xff] }
 0x35f   : > { %v1802_v33 = vpop.f32.mrf.mxu1 }
 0x360   : > { %v5788_v35 = vadd.f32 %v1802_v33, %v1732_v31  ;;  %v2043_v31 = vld [vmem:[#allocation11 + $0x2d0] sm:$0xff]  ;;  %v2040_v33 = vld [vmem:[#allocation11 + $0x2b8] sm:$0xff] }
 0x361   : > { %v1804_v36 = vpop.f32.mrf.mxu1 }
 0x362   : > { %v1805_v37 = vadd.f32 %v1804_v36, %v1734_v34  ;;  %v1949_v39 = vmax.f32 %v5788_v35, 0.0  ;;  %v1873_v34 = vpop.f32.mrf.mxu0  ;;  %v2039_v36 = vld [vmem:[#allocation11 + $0x2b0] sm:$0xff] }
 0x363   : > { %v2572_v35 = vld [vmem:[#allocation14 + $0x1a8] sm:$0xff] }
 0x364   : > { %v1950_v38 = vmax.f32 %v1805_v37, 0.0  ;;  %v2036_v37 = vld [vmem:[#allocation11 + $0x298] sm:$0xff] }
 0x366   : > { %2295 = vmatprep.mubr.f32.mxu0 %v1950_v38 }
 0x367   : > { %2296 = vmatmul.mubr.f32.vlgmr.msra.gmra.mxu0 %v1949_v39 }
 0x368   : > { %2374 = vmatpush1.msra.mxu0 %v2015_v40  ;;  %2437 = vmatprep.mubr.f32.mxu0 %v1950_v38  ;;  %v1656_v38 = vrot.slane %v5782_v25, %v5764_v47  ;;  %v2035_v40 = vld [vmem:[#allocation11 + $0x290] sm:$0xff] }
 0x369   : > { %2375 = vmatprep.subr.mxu0 %v2012_v44  ;;  %v1660_v44 = vrot.slane %v5782_v25, %v5767_v48 }
 0x36a   : > { %2376 = vmatpush1.msra.mxu0 %v2011_v45  ;;  %v2032_v45 = vld [vmem:[#allocation11 + $0x278] sm:$0xff] }
 0x36b   : > { %2377 = vmatprep.subr.mxu0 %v2008_v46  ;;  %v1875_v46 = vpop.f32.mrf.mxu0 }
 0x36c   : > { %2378 = vmatpush1.msra.mxu0 %v2007_v32  ;;  %v2031_v32 = vld [vmem:[#allocation11 + $0x270] sm:$0xff] }
 0x36d   : > { %2379 = vmatprep.subr.mxu0 %v2004_v27  ;;  %v2028_v27 = vld [vmem:[#allocation11 + $0x258] sm:$0xff] }
 0x36e   : > { %2380 = vmatpush1.msra.mxu0 %v2003_v50  ;;  %v1874_v50 = vadd.f32 %v1873_v34, %v1656_v38  ;;  %v2548_v34 = vld [vmem:[#allocation14 + $0xe8] sm:$0xff]  ;;  %v2100_v38 = vld [vmem:[#allocation11 + $0x498] sm:$0xff] }
 0x36f   : > { %2381 = vmatprep.subr.mxu0 %v2000_v51 }
 0x370   : > { %2382 = vmatpush1.msra.mxu0 %v1999_v52  ;;  %v2027_v52 = vld [vmem:[#allocation11 + $0x250] sm:$0xff] }
 0x371   : > { %2383 = vmatprep.subr.mxu0 %v1996_v54  ;;  %v1876_v54 = vadd.f32 %v1875_v46, %v1660_v44  ;;  %v2099_v44 = vld [vmem:[#allocation11 + $0x490] sm:$0xff]  ;;  %v2096_v46 = vld [vmem:[#allocation11 + $0x478] sm:$0xff] }
 0x372   : > { %2384 = vmatpush1.msra.mxu0 %v1995_v55  ;;  %v2024_v55 = vld [vmem:[#allocation11 + $0x238] sm:$0xff] }
 0x373   : > { %2385 = vmatprep.subr.mxu0 %v1992_v56 }
 0x374   : > { %2386 = vmatpush1.msra.mxu0 %v1991_v57 }
 0x375   : > { %2387 = vmatprep.subr.mxu0 %v1988_v58  ;;  %v2023_v58 = vld [vmem:[#allocation11 + $0x230] sm:$0xff] }
 0x376   : > { %2388 = vmatpush1.msra.mxu0 %v1987_v59  ;;  %v2020_v59 = vld [vmem:[#allocation11 + $0x218] sm:$0xff] }
 0x377   : > { %2389 = vmatprep.subr.mxu0 %v1984_v60  ;;  %v2019_v60 = vld [vmem:[#allocation11 + $0x210] sm:$0xff] }
 0x378   : > { %2390 = vmatpush1.msra.mxu0 %v1983_v61 }
 0x379   : > { %2391 = vmatprep.subr.mxu0 %v1980_v62 }
 0x37a   : > { %2392 = vmatpush1.msra.mxu0 %v1979_v63  ;;  %v2143_v63 = vld [vmem:[#allocation11 + $0x5f0] sm:$0xff] }
 0x37b   : > { %2393 = vmatprep.subr.mxu0 %v1976_v0  ;;  %v2140_v0 = vld [vmem:[#allocation11 + $0x5d8] sm:$0xff] }
 0x37c   : > { %2394 = vmatpush1.msra.mxu0 %v1975_v1  ;;  %v2139_v1 = vld [vmem:[#allocation11 + $0x5d0] sm:$0xff] }
 0x37d   : > { %2395 = vmatprep.subr.mxu0 %v1972_v3  ;;  %v2136_v3 = vld [vmem:[#allocation11 + $0x5b8] sm:$0xff] }
 0x37e   : > { %2396 = vmatpush1.msra.mxu0 %v1971_v4  ;;  %v2135_v4 = vld [vmem:[#allocation11 + $0x5b0] sm:$0xff] }
 0x37f   : > { %2397 = vmatprep.subr.mxu0 %v1968_v42  ;;  %v2132_v42 = vld [vmem:[#allocation11 + $0x598] sm:$0xff] }
 0x380   : > { %2398 = vmatpush1.msra.mxu0 %v1967_v5  ;;  %v2580_v5 = vld [vmem:[#allocation14 + $0x1e8] sm:$0xff] }
 0x381   : > { %2399 = vmatprep.subr.mxu0 %v1964_v6  ;;  %v2579_v6 = vld [vmem:[#allocation14 + $0x1e0] sm:$0xff] }
 0x382   : > { %2400 = vmatpush1.msra.mxu0 %v1963_v8  ;;  %v2576_v8 = vld [vmem:[#allocation14 + $0x1c8] sm:$0xff] }
 0x383   : > { %2401 = vmatprep.subr.mxu0 %v1960_v9  ;;  %v2131_v9 = vld [vmem:[#allocation11 + $0x590] sm:$0xff] }
 0x384   : > { %2402 = vmatpush1.msra.mxu0 %v1959_v10  ;;  %v2575_v10 = vld [vmem:[#allocation14 + $0x1c0] sm:$0xff] }
 0x385   : > { %2403 = vmatprep.subr.mxu0 %v1956_v11  ;;  %v2128_v11 = vld [vmem:[#allocation11 + $0x578] sm:$0xff] }
 0x386   : > { %2404 = vmatpush1.msra.mxu0 %v1955_v12  ;;  %v2571_v12 = vld [vmem:[#allocation14 + $0x1a0] sm:$0xff] }
 0x387   : > { %2405 = vmatprep.subr.mxu0 %v2080_v13  ;;  %v2124_v13 = vld [vmem:[#allocation11 + $0x558] sm:$0xff] }
 0x388   : > { %2406 = vmatpush2.msra.mxu0 %v2079_v14  ;;  %v2568_v14 = vld [vmem:[#allocation14 + $0x188] sm:$0xff] }
 0x389   : > { %2407 = vmatprep.subr.mxu0 %v2076_v15  ;;  %v2123_v15 = vld [vmem:[#allocation11 + $0x550] sm:$0xff] }
 0x38a   : > { %2408 = vmatpush2.msra.mxu0 %v2075_v16  ;;  %v2567_v16 = vld [vmem:[#allocation14 + $0x180] sm:$0xff] }
 0x38b   : > { %2409 = vmatprep.subr.mxu0 %v2072_v18  ;;  %v2120_v18 = vld [vmem:[#allocation11 + $0x538] sm:$0xff] }
 0x38c   : > { %2410 = vmatpush2.msra.mxu0 %v2071_v49  ;;  %v2564_v49 = vld [vmem:[#allocation14 + $0x168] sm:$0xff] }
 0x38d   : > { %2411 = vmatprep.subr.mxu0 %v2068_v53  ;;  %v2119_v53 = vld [vmem:[#allocation11 + $0x530] sm:$0xff] }
 0x38e   : > { %2412 = vmatpush2.msra.mxu0 %v2067_v19  ;;  %v2563_v19 = vld [vmem:[#allocation14 + $0x160] sm:$0xff] }
 0x38f   : > { %2413 = vmatprep.subr.mxu0 %v2064_v20  ;;  %v2116_v20 = vld [vmem:[#allocation11 + $0x518] sm:$0xff] }
 0x390   : > { %2414 = vmatpush2.msra.mxu0 %v2063_v21  ;;  %v2560_v21 = vld [vmem:[#allocation14 + $0x148] sm:$0xff] }
 0x391   : > { %2415 = vmatprep.subr.mxu0 %v2060_v22  ;;  %v2115_v22 = vld [vmem:[#allocation11 + $0x510] sm:$0xff] }
 0x392   : > { %2416 = vmatpush2.msra.mxu0 %v2059_v2  ;;  %v2559_v2 = vld [vmem:[#allocation14 + $0x140] sm:$0xff] }
 0x393   : > { %2417 = vmatprep.subr.mxu0 %v2056_v7  ;;  %v2112_v7 = vld [vmem:[#allocation11 + $0x4f8] sm:$0xff] }
 0x394   : > { %2418 = vmatpush2.msra.mxu0 %v2055_v23  ;;  %v2556_v23 = vld [vmem:[#allocation14 + $0x128] sm:$0xff] }
 0x395   : > { %2419 = vmatprep.subr.mxu0 %v2052_v24  ;;  %v2111_v24 = vld [vmem:[#allocation11 + $0x4f0] sm:$0xff] }
 0x396   : > { %2420 = vmatpush2.msra.mxu0 %v2051_v26  ;;  %v2555_v26 = vld [vmem:[#allocation14 + $0x120] sm:$0xff] }
 0x397   : > { %2421 = vmatprep.subr.mxu0 %v2048_v28  ;;  %v2108_v28 = vld [vmem:[#allocation11 + $0x4d8] sm:$0xff] }
 0x398   : > { %2422 = vmatpush2.msra.mxu0 %v2047_v29  ;;  %v2552_v29 = vld [vmem:[#allocation14 + $0x108] sm:$0xff] }
 0x399   : > { %2423 = vmatprep.subr.mxu0 %v2044_v30  ;;  %v2107_v30 = vld [vmem:[#allocation11 + $0x4d0] sm:$0xff] }
 0x39a   : > { %2424 = vmatpush2.msra.mxu0 %v2043_v31  ;;  %v2551_v31 = vld [vmem:[#allocation14 + $0x100] sm:$0xff] }
 0x39b   : > { %2425 = vmatprep.subr.mxu0 %v2040_v33  ;;  %v2104_v33 = vld [vmem:[#allocation11 + $0x4b8] sm:$0xff] }
 0x39c   : > { %2426 = vmatpush2.msra.mxu0 %v2039_v36  ;;  %v2103_v36 = vld [vmem:[#allocation11 + $0x4b0] sm:$0xff] }
 0x39d   : > { %2427 = vmatprep.subr.mxu0 %v2036_v37  ;;  %v2547_v37 = vld [vmem:[#allocation14 + $0xe0] sm:$0xff] }
 0x39e   : > { %2428 = vmatpush2.msra.mxu0 %v2035_v40  ;;  %v2544_v40 = vld [vmem:[#allocation14 + $0xc8] sm:$0xff] }
 0x39f   : > { %v1944_v51 = vpop.f32.mrf.mxu1  ;;  %2429 = vmatprep.subr.mxu0 %v2032_v45  ;;  %v2543_v45 = vld [vmem:[#allocation14 + $0xc0] sm:$0xff] }
 0x3a0   : > { %2430 = vmatpush2.msra.mxu0 %v2031_v32  ;;  %v5797_v56 = vadd.f32 %v1944_v51, %v1874_v50  ;;  %v2540_v32 = vld [vmem:[#allocation14 + $0xa8] sm:$0xff]  ;;  %v2539_v50 = vld [vmem:[#allocation14 + $0xa0] sm:$0xff]  ;;  %v2092_v51 = vld [vmem:[#allocation11 + $0x458] sm:$0xff] }
 0x3a1   : > { %v1946_v57 = vpop.f32.mrf.mxu1  ;;  %2431 = vmatprep.subr.mxu0 %v2028_v27  ;;  %v2095_v27 = vld [vmem:[#allocation11 + $0x470] sm:$0xff] }
 0x3a2   : > { %v1947_v25 = vadd.f32 %v1946_v57, %v1876_v54  ;;  %2432 = vmatpush2.msra.mxu0 %v2027_v52  ;;  %v1951_v62 = vmax.f32 %v5797_v56, 0.0  ;;  %v2536_v52 = vld [vmem:[#allocation14 + $0x88] sm:$0xff]  ;;  %v2088_v57 = vld [vmem:[#allocation11 + $0x438] sm:$0xff] }
 0x3a3   : > { %2433 = vmatprep.subr.mxu0 %v2024_v55  ;;  %v2091_v54 = vld [vmem:[#allocation11 + $0x450] sm:$0xff]  ;;  %v2535_v55 = vld [vmem:[#allocation14 + $0x80] sm:$0xff] }
 0x3a4   : > { %v1952_v61 = vmax.f32 %v1947_v25, 0.0  ;;  %2434 = vmatpush2.msra.mxu0 %v2023_v58  ;;  %v2532_v58 = vld [vmem:[#allocation14 + $0x68] sm:$0xff] }
 0x3a5   : > { %2435 = vmatprep.subr.mxu0 %v2020_v59  ;;  %v2087_v25 = vld [vmem:[#allocation11 + $0x430] sm:$0xff]  ;;  %v2531_v59 = vld [vmem:[#allocation14 + $0x60] sm:$0xff] }
 0x3a6   : > { %2366 = vmatprep.mubr.f32.mxu1 %v1952_v61  ;;  %2436 = vmatpush2.msra.mxu0 %v2019_v60  ;;  %v2084_v60 = vld [vmem:[#allocation11 + $0x418] sm:$0xff]  ;;  %v2704_v56 = vld [vmem:[#allocation14 + $0x5c8] sm:$0xff] }
 0x3a7   : > { %2367 = vmatmul.mubr.f32.vlgmr.msra.gmra.mxu1 %v1951_v62  ;;  %2438 = vmatmul.mubr.f32.vlgmr.msra.gmra.mxu0 %v1949_v39  ;;  %v2127_v39 = vld [vmem:[#allocation11 + $0x570] sm:$0xff] }
 0x3a8   : > { %2445 = vmatpush1.msra.mxu1 %v2143_v63  ;;  %2508 = vmatprep.mubr.f32.mxu1 %v1952_v61  ;;  %v2528_v61 = vld [vmem:[#allocation14 + $0x48] sm:$0xff] }
 0x3a9   : > { %2446 = vmatprep.subr.mxu1 %v2140_v0  ;;  %2797 = vmatprep.subr.mxu0 %v2580_v5  ;;  %v2083_v63 = vld [vmem:[#allocation11 + $0x410] sm:$0xff]  ;;  %v2527_v0 = vld [vmem:[#allocation14 + $0x40] sm:$0xff]  ;;  %v2204_v5 = vld [vmem:[#allocation11 + $0x7d8] sm:$0xff] }
 0x3aa   : > { %2447 = vmatpush1.msra.mxu1 %v2139_v1  ;;  %2798 = vmatpush1.msra.mxu0 %v2579_v6  ;;  %v2208_v1 = vld [vmem:[#allocation11 + $0x7f8] sm:$0xff]  ;;  %v2520_v6 = vld [vmem:[#allocation14 + $0x8] sm:$0xff] }
 0x3ab   : > { %2448 = vmatprep.subr.mxu1 %v2136_v3  ;;  %2799 = vmatprep.subr.mxu0 %v2576_v8  ;;  %v2524_v3 = vld [vmem:[#allocation14 + $0x28] sm:$0xff] }
 0x3ac   : > { %2449 = vmatpush1.msra.mxu1 %v2135_v4  ;;  %2800 = vmatpush1.msra.mxu0 %v2575_v10  ;;  %v2207_v4 = vld [vmem:[#allocation11 + $0x7f0] sm:$0xff]  ;;  %v2200_v10 = vld [vmem:[#allocation11 + $0x7b8] sm:$0xff] }
 0x3ad   : > { %2450 = vmatprep.subr.mxu1 %v2132_v42  ;;  %2801 = vmatprep.subr.mxu0 %v2572_v35  ;;  %v2523_v42 = vld [vmem:[#allocation14 + $0x20] sm:$0xff]  ;;  %v2203_v8 = vld [vmem:[#allocation11 + $0x7d0] sm:$0xff] }
 0x3ae   : > { %2451 = vmatpush1.msra.mxu1 %v2131_v9  ;;  %2802 = vmatpush1.msra.mxu0 %v2571_v12  ;;  %v2519_v9 = vld [vmem:[#allocation14] sm:$0xff]  ;;  %v2199_v35 = vld [vmem:[#allocation11 + $0x7b0] sm:$0xff]  ;;  %v2196_v12 = vld [vmem:[#allocation11 + $0x798] sm:$0xff] }
 0x3af   : > { %2452 = vmatprep.subr.mxu1 %v2128_v11  ;;  %2803 = vmatprep.subr.mxu0 %v2568_v14  ;;  %v2644_v11 = vld [vmem:[#allocation14 + $0x3e8] sm:$0xff] }
 0x3b0   : > { %2453 = vmatpush1.msra.mxu1 %v2127_v39  ;;  %2804 = vmatpush1.msra.mxu0 %v2567_v16  ;;  %v2643_v39 = vld [vmem:[#allocation14 + $0x3e0] sm:$0xff]  ;;  %v2195_v14 = vld [vmem:[#allocation11 + $0x790] sm:$0xff]  ;;  %v2192_v16 = vld [vmem:[#allocation11 + $0x778] sm:$0xff] }
 0x3b1   : > { %2454 = vmatprep.subr.mxu1 %v2124_v13  ;;  %2805 = vmatprep.subr.mxu0 %v2564_v49  ;;  %v2640_v13 = vld [vmem:[#allocation14 + $0x3c8] sm:$0xff] }
 0x3b2   : > { %2455 = vmatpush1.msra.mxu1 %v2123_v15  ;;  %2806 = vmatpush1.msra.mxu0 %v2563_v19  ;;  %v2639_v15 = vld [vmem:[#allocation14 + $0x3c0] sm:$0xff]  ;;  %v2191_v49 = vld [vmem:[#allocation11 + $0x770] sm:$0xff]  ;;  %v2188_v19 = vld [vmem:[#allocation11 + $0x758] sm:$0xff] }
 0x3b3   : > { %2456 = vmatprep.subr.mxu1 %v2120_v18  ;;  %2807 = vmatprep.subr.mxu0 %v2560_v21  ;;  %v2636_v18 = vld [vmem:[#allocation14 + $0x3a8] sm:$0xff] }
 0x3b4   : > { %2457 = vmatpush1.msra.mxu1 %v2119_v53  ;;  %2808 = vmatpush1.msra.mxu0 %v2559_v2  ;;  %v2635_v53 = vld [vmem:[#allocation14 + $0x3a0] sm:$0xff]  ;;  %v2187_v21 = vld [vmem:[#allocation11 + $0x750] sm:$0xff]  ;;  %v2184_v2 = vld [vmem:[#allocation11 + $0x738] sm:$0xff] }
 0x3b5   : > { %2458 = vmatprep.subr.mxu1 %v2116_v20  ;;  %2809 = vmatprep.subr.mxu0 %v2556_v23  ;;  %v2632_v20 = vld [vmem:[#allocation14 + $0x388] sm:$0xff] }
 0x3b6   : > { %2459 = vmatpush1.msra.mxu1 %v2115_v22  ;;  %2810 = vmatpush1.msra.mxu0 %v2555_v26  ;;  %v2631_v22 = vld [vmem:[#allocation14 + $0x380] sm:$0xff]  ;;  %v2183_v23 = vld [vmem:[#allocation11 + $0x730] sm:$0xff]  ;;  %v2180_v26 = vld [vmem:[#allocation11 + $0x718] sm:$0xff] }
 0x3b7   : > { %2460 = vmatprep.subr.mxu1 %v2112_v7  ;;  %2811 = vmatprep.subr.mxu0 %v2552_v29  ;;  %v2628_v7 = vld [vmem:[#allocation14 + $0x368] sm:$0xff] }
 0x3b8   : > { %2461 = vmatpush1.msra.mxu1 %v2111_v24  ;;  %2812 = vmatpush1.msra.mxu0 %v2551_v31  ;;  %v2627_v24 = vld [vmem:[#allocation14 + $0x360] sm:$0xff]  ;;  %v2179_v29 = vld [vmem:[#allocation11 + $0x710] sm:$0xff]  ;;  %v2176_v31 = vld [vmem:[#allocation11 + $0x6f8] sm:$0xff] }
 0x3b9   : > { %2462 = vmatprep.subr.mxu1 %v2108_v28  ;;  %2813 = vmatprep.subr.mxu0 %v2548_v34  ;;  %v2624_v28 = vld [vmem:[#allocation14 + $0x348] sm:$0xff] }
 0x3ba   : > { %2463 = vmatpush1.msra.mxu1 %v2107_v30  ;;  %2814 = vmatpush1.msra.mxu0 %v2547_v37  ;;  %v2623_v30 = vld [vmem:[#allocation14 + $0x340] sm:$0xff]  ;;  %v2175_v34 = vld [vmem:[#allocation11 + $0x6f0] sm:$0xff]  ;;  %v2172_v37 = vld [vmem:[#allocation11 + $0x6d8] sm:$0xff] }
 0x3bb   : > { %2464 = vmatprep.subr.mxu1 %v2104_v33  ;;  %2815 = vmatprep.subr.mxu0 %v2544_v40  ;;  %v2620_v33 = vld [vmem:[#allocation14 + $0x328] sm:$0xff] }
 0x3bc   : > { %2465 = vmatpush1.msra.mxu1 %v2103_v36  ;;  %2816 = vmatpush1.msra.mxu0 %v2543_v45  ;;  %v2619_v36 = vld [vmem:[#allocation14 + $0x320] sm:$0xff]  ;;  %v2171_v40 = vld [vmem:[#allocation11 + $0x6d0] sm:$0xff]  ;;  %v2168_v45 = vld [vmem:[#allocation11 + $0x6b8] sm:$0xff] }
 0x3bd   : > { %2466 = vmatprep.subr.mxu1 %v2100_v38  ;;  %2817 = vmatprep.subr.mxu0 %v2540_v32  ;;  %v2616_v38 = vld [vmem:[#allocation14 + $0x308] sm:$0xff] }
 0x3be   : > { %2467 = vmatpush1.msra.mxu1 %v2099_v44  ;;  %2818 = vmatpush1.msra.mxu0 %v2539_v50  ;;  %v2615_v44 = vld [vmem:[#allocation14 + $0x300] sm:$0xff]  ;;  %v2167_v32 = vld [vmem:[#allocation11 + $0x6b0] sm:$0xff]  ;;  %v2164_v50 = vld [vmem:[#allocation11 + $0x698] sm:$0xff] }
 0x3bf   : > { %2468 = vmatprep.subr.mxu1 %v2096_v46  ;;  %2819 = vmatprep.subr.mxu0 %v2536_v52  ;;  %v2612_v46 = vld [vmem:[#allocation14 + $0x2e8] sm:$0xff] }
 0x3c0   : > { %2469 = vmatpush1.msra.mxu1 %v2095_v27  ;;  %2820 = vmatpush1.msra.mxu0 %v2535_v55  ;;  %v2611_v27 = vld [vmem:[#allocation14 + $0x2e0] sm:$0xff]  ;;  %v2163_v52 = vld [vmem:[#allocation11 + $0x690] sm:$0xff]  ;;  %v2160_v55 = vld [vmem:[#allocation11 + $0x678] sm:$0xff] }
 0x3c1   : > { %2470 = vmatprep.subr.mxu1 %v2092_v51  ;;  %2821 = vmatprep.subr.mxu0 %v2532_v58  ;;  %v2608_v51 = vld [vmem:[#allocation14 + $0x2c8] sm:$0xff] }
 0x3c2   : > { %2471 = vmatpush1.msra.mxu1 %v2091_v54  ;;  %2822 = vmatpush1.msra.mxu0 %v2531_v59  ;;  %v2607_v54 = vld [vmem:[#allocation14 + $0x2c0] sm:$0xff]  ;;  %v2159_v58 = vld [vmem:[#allocation11 + $0x670] sm:$0xff]  ;;  %v2156_v59 = vld [vmem:[#allocation11 + $0x658] sm:$0xff] }
 0x3c3   : > { %2472 = vmatprep.subr.mxu1 %v2088_v57  ;;  %2823 = vmatprep.subr.mxu0 %v2528_v61  ;;  %v2604_v57 = vld [vmem:[#allocation14 + $0x2a8] sm:$0xff] }
 0x3c4   : > { %2473 = vmatpush1.msra.mxu1 %v2087_v25  ;;  %2824 = vmatpush1.msra.mxu0 %v2527_v0  ;;  %v2603_v25 = vld [vmem:[#allocation14 + $0x2a0] sm:$0xff]  ;;  %v2155_v61 = vld [vmem:[#allocation11 + $0x650] sm:$0xff]  ;;  %v2152_v0 = vld [vmem:[#allocation11 + $0x638] sm:$0xff] }
 0x3c5   : > { %2474 = vmatprep.subr.mxu1 %v2084_v60  ;;  %2825 = vmatprep.subr.mxu0 %v2524_v3  ;;  %v2600_v60 = vld [vmem:[#allocation14 + $0x288] sm:$0xff] }
 0x3c6   : > { %2475 = vmatpush1.msra.mxu1 %v2083_v63  ;;  %2826 = vmatpush1.msra.mxu0 %v2523_v42  ;;  %v2599_v63 = vld [vmem:[#allocation14 + $0x280] sm:$0xff]  ;;  %v2151_v3 = vld [vmem:[#allocation11 + $0x630] sm:$0xff] }
 0x3c7   : > { %2476 = vmatprep.subr.mxu1 %v2208_v1  ;;  %2827 = vmatprep.subr.mxu0 %v2520_v6  ;;  %v2596_v1 = vld [vmem:[#allocation14 + $0x268] sm:$0xff] }
 0x3c8   : > { %2477 = vmatpush2.msra.mxu1 %v2207_v4  ;;  %2828 = vmatpush1.msra.mxu0 %v2519_v9  ;;  %v2148_v4 = vld [vmem:[#allocation11 + $0x618] sm:$0xff]  ;;  %v2147_v42 = vld [vmem:[#allocation11 + $0x610] sm:$0xff] }
 0x3c9   : > { %2478 = vmatprep.subr.mxu1 %v2204_v5  ;;  %2829 = vmatprep.subr.mxu0 %v2644_v11  ;;  %v2595_v5 = vld [vmem:[#allocation14 + $0x260] sm:$0xff]  ;;  %v2592_v6 = vld [vmem:[#allocation14 + $0x248] sm:$0xff] }
 0x3ca   : > { %2479 = vmatpush2.msra.mxu1 %v2203_v8  ;;  %2830 = vmatpush2.msra.mxu0 %v2643_v39  ;;  %v2591_v8 = vld [vmem:[#allocation14 + $0x240] sm:$0xff]  ;;  %v2588_v9 = vld [vmem:[#allocation14 + $0x228] sm:$0xff] }
 0x3cb   : > { %2480 = vmatprep.subr.mxu1 %v2200_v10  ;;  %2831 = vmatprep.subr.mxu0 %v2640_v13  ;;  %v2587_v10 = vld [vmem:[#allocation14 + $0x220] sm:$0xff]  ;;  %v2584_v11 = vld [vmem:[#allocation14 + $0x208] sm:$0xff]  ;;  %v2582_v13 = vld [vmem:[#allocation14 + $0x1f8] sm:$0xff] }
 0x3cc   : > { %2481 = vmatpush2.msra.mxu1 %v2199_v35  ;;  %2832 = vmatpush2.msra.mxu0 %v2639_v15  ;;  %v2583_v35 = vld [vmem:[#allocation14 + $0x200] sm:$0xff]  ;;  %v2708_v39 = vld [vmem:[#allocation14 + $0x5e8] sm:$0xff] }
 0x3cd   : > { %2482 = vmatprep.subr.mxu1 %v2196_v12  ;;  %2833 = vmatprep.subr.mxu0 %v2636_v18  ;;  %v2707_v12 = vld [vmem:[#allocation14 + $0x5e0] sm:$0xff] }
 0x3ce   : > { %2483 = vmatpush2.msra.mxu1 %v2195_v14  ;;  %2834 = vmatpush2.msra.mxu0 %v2635_v53  ;;  %v2700_v14 = vld [vmem:[#allocation14 + $0x5a8] sm:$0xff]  ;;  %v2699_v15 = vld [vmem:[#allocation14 + $0x5a0] sm:$0xff] }
 0x3cf   : > { %2484 = vmatprep.subr.mxu1 %v2192_v16  ;;  %2835 = vmatprep.subr.mxu0 %v2632_v20  ;;  %v2696_v16 = vld [vmem:[#allocation14 + $0x588] sm:$0xff]  ;;  %v2695_v18 = vld [vmem:[#allocation14 + $0x580] sm:$0xff] }
 0x3d0   : > { %2485 = vmatpush2.msra.mxu1 %v2191_v49  ;;  %2836 = vmatpush2.msra.mxu0 %v2631_v22  ;;  %v2692_v49 = vld [vmem:[#allocation14 + $0x568] sm:$0xff]  ;;  %v2691_v53 = vld [vmem:[#allocation14 + $0x560] sm:$0xff] }
 0x3d1   : > { %2486 = vmatprep.subr.mxu1 %v2188_v19  ;;  %2837 = vmatprep.subr.mxu0 %v2628_v7  ;;  %v2688_v19 = vld [vmem:[#allocation14 + $0x548] sm:$0xff]  ;;  %v2687_v20 = vld [vmem:[#allocation14 + $0x540] sm:$0xff] }
 0x3d2   : > { %2487 = vmatpush2.msra.mxu1 %v2187_v21  ;;  %2838 = vmatpush2.msra.mxu0 %v2627_v24  ;;  %v2684_v21 = vld [vmem:[#allocation14 + $0x528] sm:$0xff]  ;;  %v2683_v22 = vld [vmem:[#allocation14 + $0x520] sm:$0xff] }
 0x3d3   : > { %2488 = vmatprep.subr.mxu1 %v2184_v2  ;;  %2839 = vmatprep.subr.mxu0 %v2624_v28  ;;  %v2680_v2 = vld [vmem:[#allocation14 + $0x508] sm:$0xff]  ;;  %v2679_v7 = vld [vmem:[#allocation14 + $0x500] sm:$0xff] }
 0x3d4   : > { %2489 = vmatpush2.msra.mxu1 %v2183_v23  ;;  %2840 = vmatpush2.msra.mxu0 %v2623_v30  ;;  %v2676_v23 = vld [vmem:[#allocation14 + $0x4e8] sm:$0xff]  ;;  %v2675_v24 = vld [vmem:[#allocation14 + $0x4e0] sm:$0xff] }
 0x3d5   : > { %2490 = vmatprep.subr.mxu1 %v2180_v26  ;;  %2841 = vmatprep.subr.mxu0 %v2620_v33  ;;  %v2672_v26 = vld [vmem:[#allocation14 + $0x4c8] sm:$0xff]  ;;  %v2671_v28 = vld [vmem:[#allocation14 + $0x4c0] sm:$0xff] }
 0x3d6   : > { %2491 = vmatpush2.msra.mxu1 %v2179_v29  ;;  %2842 = vmatpush2.msra.mxu0 %v2619_v36  ;;  %v2668_v29 = vld [vmem:[#allocation14 + $0x4a8] sm:$0xff]  ;;  %v2667_v30 = vld [vmem:[#allocation14 + $0x4a0] sm:$0xff] }
 0x3d7   : > { %2492 = vmatprep.subr.mxu1 %v2176_v31  ;;  %2843 = vmatprep.subr.mxu0 %v2616_v38  ;;  %v2664_v31 = vld [vmem:[#allocation14 + $0x488] sm:$0xff]  ;;  %v2663_v33 = vld [vmem:[#allocation14 + $0x480] sm:$0xff] }
 0x3d8   : > { %2493 = vmatpush2.msra.mxu1 %v2175_v34  ;;  %2844 = vmatpush2.msra.mxu0 %v2615_v44  ;;  %v2660_v34 = vld [vmem:[#allocation14 + $0x468] sm:$0xff]  ;;  %v2659_v36 = vld [vmem:[#allocation14 + $0x460] sm:$0xff] }
 0x3d9   : > { %2494 = vmatprep.subr.mxu1 %v2172_v37  ;;  %2845 = vmatprep.subr.mxu0 %v2612_v46  ;;  %v2656_v37 = vld [vmem:[#allocation14 + $0x448] sm:$0xff]  ;;  %v2655_v38 = vld [vmem:[#allocation14 + $0x440] sm:$0xff] }
 0x3da   : > { %2495 = vmatpush2.msra.mxu1 %v2171_v40  ;;  %2846 = vmatpush2.msra.mxu0 %v2611_v27  ;;  %v2652_v40 = vld [vmem:[#allocation14 + $0x428] sm:$0xff]  ;;  %v2651_v44 = vld [vmem:[#allocation14 + $0x420] sm:$0xff] }
 0x3db   : > { %2496 = vmatprep.subr.mxu1 %v2168_v45  ;;  %2847 = vmatprep.subr.mxu0 %v2608_v51  ;;  %v2648_v45 = vld [vmem:[#allocation14 + $0x408] sm:$0xff]  ;;  %v2647_v46 = vld [vmem:[#allocation14 + $0x400] sm:$0xff] }
 0x3dc   : > { %2497 = vmatpush2.msra.mxu1 %v2167_v32  ;;  %2848 = vmatpush2.msra.mxu0 %v2607_v54  ;;  %v2772_v32 = vld [vmem:[#allocation14 + $0x7e8] sm:$0xff]  ;;  %v2771_v27 = vld [vmem:[#allocation14 + $0x7e0] sm:$0xff] }
 0x3dd   : > { %2498 = vmatprep.subr.mxu1 %v2164_v50  ;;  %2849 = vmatprep.subr.mxu0 %v2604_v57  ;;  %v2768_v50 = vld [vmem:[#allocation14 + $0x7c8] sm:$0xff]  ;;  %v2767_v51 = vld [vmem:[#allocation14 + $0x7c0] sm:$0xff] }
 0x3de   : > { %2499 = vmatpush2.msra.mxu1 %v2163_v52  ;;  %2850 = vmatpush2.msra.mxu0 %v2603_v25  ;;  %v2764_v52 = vld [vmem:[#allocation14 + $0x7a8] sm:$0xff]  ;;  %v2763_v54 = vld [vmem:[#allocation14 + $0x7a0] sm:$0xff] }
 0x3df   : > { %2500 = vmatprep.subr.mxu1 %v2160_v55  ;;  %2851 = vmatprep.subr.mxu0 %v2600_v60  ;;  %v2760_v55 = vld [vmem:[#allocation14 + $0x788] sm:$0xff]  ;;  %v2759_v57 = vld [vmem:[#allocation14 + $0x780] sm:$0xff] }
 0x3e0   : > { %2501 = vmatpush2.msra.mxu1 %v2159_v58  ;;  %2852 = vmatpush2.msra.mxu0 %v2599_v63  ;;  %v2756_v58 = vld [vmem:[#allocation14 + $0x768] sm:$0xff]  ;;  %v2755_v25 = vld [vmem:[#allocation14 + $0x760] sm:$0xff] }
 0x3e1   : > { %2502 = vmatprep.subr.mxu1 %v2156_v59  ;;  %2853 = vmatprep.subr.mxu0 %v2596_v1  ;;  %v2752_v59 = vld [vmem:[#allocation14 + $0x748] sm:$0xff]  ;;  %v2751_v60 = vld [vmem:[#allocation14 + $0x740] sm:$0xff] }
 0x3e2   : > { %2503 = vmatpush2.msra.mxu1 %v2155_v61  ;;  %2854 = vmatpush2.msra.mxu0 %v2595_v5  ;;  %v2748_v61 = vld [vmem:[#allocation14 + $0x728] sm:$0xff]  ;;  %v2747_v63 = vld [vmem:[#allocation14 + $0x720] sm:$0xff] }
 0x3e3   : > { %2504 = vmatprep.subr.mxu1 %v2152_v0  ;;  %2855 = vmatprep.subr.mxu0 %v2592_v6  ;;  %v2744_v0 = vld [vmem:[#allocation14 + $0x708] sm:$0xff]  ;;  %v2743_v1 = vld [vmem:[#allocation14 + $0x700] sm:$0xff] }
 0x3e4   : > { %2505 = vmatpush2.msra.mxu1 %v2151_v3  ;;  %2856 = vmatpush2.msra.mxu0 %v2591_v8  ;;  %v2740_v3 = vld [vmem:[#allocation14 + $0x6e8] sm:$0xff]  ;;  %v2735_v5 = vld [vmem:[#allocation14 + $0x6c0] sm:$0xff] }
 0x3e5   : > { %2506 = vmatprep.subr.mxu1 %v2148_v4  ;;  %2857 = vmatprep.subr.mxu0 %v2588_v9  ;;  %v2739_v4 = vld [vmem:[#allocation14 + $0x6e0] sm:$0xff]  ;;  %v2732_v6 = vld [vmem:[#allocation14 + $0x6a8] sm:$0xff] }
 0x3e6   : > { %2507 = vmatpush2.msra.mxu1 %v2147_v42  ;;  %2858 = vmatpush2.msra.mxu0 %v2587_v10  ;;  %v2736_v42 = vld [vmem:[#allocation14 + $0x6c8] sm:$0xff]  ;;  %v2731_v8 = vld [vmem:[#allocation14 + $0x6a0] sm:$0xff] }
 0x3e7   : > { %2509 = vmatmul.mubr.f32.vlgmr.msra.gmra.mxu1 %v1951_v62  ;;  %2859 = vmatprep.subr.mxu0 %v2584_v11  ;;  %v2703_v62 = vld [vmem:[#allocation14 + $0x5c0] sm:$0xff]  ;;  %v2728_v9 = vld [vmem:[#allocation14 + $0x688] sm:$0xff] }
 0x3e8   : > { %2868 = vmatprep.subr.mxu1 %v2708_v39  ;;  %2860 = vmatpush2.msra.mxu0 %v2583_v35  ;;  %v2727_v10 = vld [vmem:[#allocation14 + $0x680] sm:$0xff]  ;;  %v2724_v11 = vld [vmem:[#allocation14 + $0x668] sm:$0xff] }
 0x3e9   : > { %2869 = vmatpush1.msra.mxu1 %v2707_v12  ;;  %2939 = vmatprep.subr.mxu0 %v2582_v13  ;;  %v2723_v35 = vld [vmem:[#allocation14 + $0x660] sm:$0xff]  ;;  %v2720_v39 = vld [vmem:[#allocation14 + $0x648] sm:$0xff] }
 0x3ea   : > { %2870 = vmatprep.subr.mxu1 %v2704_v56  ;;  %v2719_v12 = vld [vmem:[#allocation14 + $0x640] sm:$0xff]  ;;  %v2716_v13 = vld [vmem:[#allocation14 + $0x628] sm:$0xff] }
 0x3eb   : > { %2871 = vmatpush1.msra.mxu1 %v2703_v62  ;;  %v2715_v56 = vld [vmem:[#allocation14 + $0x620] sm:$0xff]  ;;  %v2712_v62 = vld [vmem:[#allocation14 + $0x608] sm:$0xff] }
 0x3ec   : > { %2872 = vmatprep.subr.mxu1 %v2700_v14  ;;  %v2711_v14 = vld [vmem:[#allocation14 + $0x600] sm:$0xff] }
 0x3ed   : > { %2873 = vmatpush1.msra.mxu1 %v2699_v15  ;;  %v2710_v15 = vld [vmem:[#allocation14 + $0x5f8] sm:$0xff] }
 0x3ee   : > { %2874 = vmatprep.subr.mxu1 %v2696_v16  ;;  %v5806_v16 = vld [vmem:[#allocation13] sm:$0xf] }
 0x3ef   : > { %2875 = vmatpush1.msra.mxu1 %v2695_v18 }
 0x3f0   : > { %2876 = vmatprep.subr.mxu1 %v2692_v49  ;;  %v2214_v49 = vrot.slane %v5806_v16, %v5747_v41 }
 0x3f1   : > { %2877 = vmatpush1.msra.mxu1 %v2691_v53  ;;  %v2218_v53 = vrot.slane %v5806_v16, %v5752_v43 }
 0x3f2   : > { %2878 = vmatprep.subr.mxu1 %v2688_v19 }
 0x3f3   : > { %2879 = vmatpush1.msra.mxu1 %v2687_v20 }
 0x3f4   : > { %2880 = vmatprep.subr.mxu1 %v2684_v21 }
 0x3f5   : > { %2881 = vmatpush1.msra.mxu1 %v2683_v22 }
 0x3f6   : > { %2882 = vmatprep.subr.mxu1 %v2680_v2 }
 0x3f7   : > { %2883 = vmatpush1.msra.mxu1 %v2679_v7 }
 0x3f8   : > { %2884 = vmatprep.subr.mxu1 %v2676_v23 }
 0x3f9   : > { %2885 = vmatpush1.msra.mxu1 %v2675_v24 }
 0x3fa   : > { %2886 = vmatprep.subr.mxu1 %v2672_v26 }
 0x3fb   : > { %2887 = vmatpush1.msra.mxu1 %v2671_v28  ;;  %v2581_v28 = vld [vmem:[#allocation14 + $0x1f0] sm:$0xff] }
 0x3fc   : > { %2888 = vmatprep.subr.mxu1 %v2668_v29  ;;  %v2578_v29 = vld [vmem:[#allocation14 + $0x1d8] sm:$0xff] }
 0x3fd   : > { %2889 = vmatpush1.msra.mxu1 %v2667_v30  ;;  %v2577_v30 = vld [vmem:[#allocation14 + $0x1d0] sm:$0xff] }
 0x3fe   : > { %2890 = vmatprep.subr.mxu1 %v2664_v31  ;;  %v2574_v31 = vld [vmem:[#allocation14 + $0x1b8] sm:$0xff] }
 0x3ff   : > { %2891 = vmatpush1.msra.mxu1 %v2663_v33  ;;  %v2573_v33 = vld [vmem:[#allocation14 + $0x1b0] sm:$0xff] }
 0x400   : > { %2892 = vmatprep.subr.mxu1 %v2660_v34  ;;  %v2570_v34 = vld [vmem:[#allocation14 + $0x198] sm:$0xff] }
 0x401   : > { %2893 = vmatpush1.msra.mxu1 %v2659_v36  ;;  %v2569_v36 = vld [vmem:[#allocation14 + $0x190] sm:$0xff] }
 0x402   : > { %2894 = vmatprep.subr.mxu1 %v2656_v37  ;;  %v2566_v37 = vld [vmem:[#allocation14 + $0x178] sm:$0xff] }
 0x403   : > { %2895 = vmatpush1.msra.mxu1 %v2655_v38  ;;  %v2565_v38 = vld [vmem:[#allocation14 + $0x170] sm:$0xff] }
 0x404   : > { %2896 = vmatprep.subr.mxu1 %v2652_v40  ;;  %v2562_v40 = vld [vmem:[#allocation14 + $0x158] sm:$0xff] }
 0x405   : > { %2897 = vmatpush1.msra.mxu1 %v2651_v44  ;;  %v2561_v44 = vld [vmem:[#allocation14 + $0x150] sm:$0xff] }
 0x406   : > { %2898 = vmatprep.subr.mxu1 %v2648_v45  ;;  %v2558_v45 = vld [vmem:[#allocation14 + $0x138] sm:$0xff] }
 0x407   : > { %2899 = vmatpush1.msra.mxu1 %v2647_v46  ;;  %v2557_v46 = vld [vmem:[#allocation14 + $0x130] sm:$0xff] }
 0x408   : > { %2900 = vmatprep.subr.mxu1 %v2772_v32  ;;  %v2554_v32 = vld [vmem:[#allocation14 + $0x118] sm:$0xff] }
 0x409   : > { %2901 = vmatpush2.msra.mxu1 %v2771_v27  ;;  %v2553_v27 = vld [vmem:[#allocation14 + $0x110] sm:$0xff] }
 0x40a   : > { %2902 = vmatprep.subr.mxu1 %v2768_v50  ;;  %v2550_v50 = vld [vmem:[#allocation14 + $0xf8] sm:$0xff] }
 0x40b   : > { %2903 = vmatpush2.msra.mxu1 %v2767_v51  ;;  %v2549_v51 = vld [vmem:[#allocation14 + $0xf0] sm:$0xff] }
 0x40c   : > { %2904 = vmatprep.subr.mxu1 %v2764_v52  ;;  %v2546_v52 = vld [vmem:[#allocation14 + $0xd8] sm:$0xff] }
 0x40d   : > { %2905 = vmatpush2.msra.mxu1 %v2763_v54  ;;  %v2545_v54 = vld [vmem:[#allocation14 + $0xd0] sm:$0xff] }
 0x40e   : > { %2906 = vmatprep.subr.mxu1 %v2760_v55  ;;  %v2542_v55 = vld [vmem:[#allocation14 + $0xb8] sm:$0xff] }
 0x40f   : > { %2907 = vmatpush2.msra.mxu1 %v2759_v57  ;;  %v2541_v57 = vld [vmem:[#allocation14 + $0xb0] sm:$0xff] }
 0x410   : > { %2908 = vmatprep.subr.mxu1 %v2756_v58  ;;  %v2538_v58 = vld [vmem:[#allocation14 + $0x98] sm:$0xff] }
 0x411   : > { %2909 = vmatpush2.msra.mxu1 %v2755_v25  ;;  %v2537_v25 = vld [vmem:[#allocation14 + $0x90] sm:$0xff] }
 0x412   : > { %2910 = vmatprep.subr.mxu1 %v2752_v59  ;;  %v2534_v59 = vld [vmem:[#allocation14 + $0x78] sm:$0xff] }
 0x413   : > { %2911 = vmatpush2.msra.mxu1 %v2751_v60  ;;  %v2533_v60 = vld [vmem:[#allocation14 + $0x70] sm:$0xff] }
 0x414   : > { %2912 = vmatprep.subr.mxu1 %v2748_v61  ;;  %v2530_v61 = vld [vmem:[#allocation14 + $0x58] sm:$0xff] }
 0x415   : > { %2913 = vmatpush2.msra.mxu1 %v2747_v63  ;;  %v2529_v63 = vld [vmem:[#allocation14 + $0x50] sm:$0xff] }
 0x416   : > { %2914 = vmatprep.subr.mxu1 %v2744_v0  ;;  %v2526_v0 = vld [vmem:[#allocation14 + $0x38] sm:$0xff] }
 0x417   : > { %2915 = vmatpush2.msra.mxu1 %v2743_v1  ;;  %v2525_v1 = vld [vmem:[#allocation14 + $0x30] sm:$0xff] }
 0x418   : > { %2916 = vmatprep.subr.mxu1 %v2740_v3  ;;  %v2522_v3 = vld [vmem:[#allocation14 + $0x18] sm:$0xff] }
 0x419   : > { %2917 = vmatpush2.msra.mxu1 %v2739_v4  ;;  %v2521_v4 = vld [vmem:[#allocation14 + $0x10] sm:$0xff] }
 0x41a   : > { %2918 = vmatprep.subr.mxu1 %v2736_v42  ;;  %v2646_v42 = vld [vmem:[#allocation14 + $0x3f8] sm:$0xff] }
 0x41b   : > { %2919 = vmatpush2.msra.mxu1 %v2735_v5  ;;  %v2645_v5 = vld [vmem:[#allocation14 + $0x3f0] sm:$0xff] }
 0x41c   : > { %2920 = vmatprep.subr.mxu1 %v2732_v6  ;;  %v2642_v6 = vld [vmem:[#allocation14 + $0x3d8] sm:$0xff] }
 0x41d   : > { %2921 = vmatpush2.msra.mxu1 %v2731_v8  ;;  %v2641_v8 = vld [vmem:[#allocation14 + $0x3d0] sm:$0xff] }
 0x41e   : > { %2922 = vmatprep.subr.mxu1 %v2728_v9  ;;  %v2638_v9 = vld [vmem:[#allocation14 + $0x3b8] sm:$0xff] }
 0x41f   : > { %2923 = vmatpush2.msra.mxu1 %v2727_v10  ;;  %v2637_v10 = vld [vmem:[#allocation14 + $0x3b0] sm:$0xff] }
 0x420   : > { %2924 = vmatprep.subr.mxu1 %v2724_v11  ;;  %v2634_v11 = vld [vmem:[#allocation14 + $0x398] sm:$0xff] }
 0x421   : > { %2925 = vmatpush2.msra.mxu1 %v2723_v35  ;;  %v2633_v35 = vld [vmem:[#allocation14 + $0x390] sm:$0xff] }
 0x422   : > { %2926 = vmatprep.subr.mxu1 %v2720_v39  ;;  %v2630_v39 = vld [vmem:[#allocation14 + $0x378] sm:$0xff] }
 0x423   : > { %2927 = vmatpush2.msra.mxu1 %v2719_v12  ;;  %v2629_v12 = vld [vmem:[#allocation14 + $0x370] sm:$0xff] }
 0x424   : > { %2928 = vmatprep.subr.mxu1 %v2716_v13  ;;  %v2626_v13 = vld [vmem:[#allocation14 + $0x358] sm:$0xff] }
 0x425   : > { %2929 = vmatpush2.msra.mxu1 %v2715_v56  ;;  %v2625_v56 = vld [vmem:[#allocation14 + $0x350] sm:$0xff] }
 0x426   : > { %2930 = vmatprep.subr.mxu1 %v2712_v62  ;;  %v2622_v62 = vld [vmem:[#allocation14 + $0x338] sm:$0xff] }
 0x427   : > { %2931 = vmatpush2.msra.mxu1 %v2711_v14  ;;  %v2297_v18 = vpop.f32.mrf.mxu0  ;;  %v2621_v14 = vld [vmem:[#allocation14 + $0x330] sm:$0xff] }
 0x428   : > { %3010 = vmatprep.subr.mxu1 %v2710_v15  ;;  %v2298_v20 = vadd.f32 %v2297_v18, %v2214_v49  ;;  %v2618_v15 = vld [vmem:[#allocation14 + $0x318] sm:$0xff]  ;;  %v2617_v18 = vld [vmem:[#allocation14 + $0x310] sm:$0xff] }
 0x429   : > { %v2299_v19 = vpop.f32.mrf.mxu0  ;;  %v2614_v49 = vld [vmem:[#allocation14 + $0x2f8] sm:$0xff] }
 0x42a   : > { %v2300_v22 = vadd.f32 %v2299_v19, %v2218_v53  ;;  %v2613_v53 = vld [vmem:[#allocation14 + $0x2f0] sm:$0xff]  ;;  %v2610_v19 = vld [vmem:[#allocation14 + $0x2d8] sm:$0xff] }
 0x467   : > { %v2368_v21 = vpop.f32.mrf.mxu1 }
 0x468   : > { %v5812_v2 = vadd.f32 %v2368_v21, %v2298_v20  ;;  %v2609_v20 = vld [vmem:[#allocation14 + $0x2d0] sm:$0xff]  ;;  %v2606_v21 = vld [vmem:[#allocation14 + $0x2b8] sm:$0xff] }
 0x469   : > { %v2370_v7 = vpop.f32.mrf.mxu1 }
 0x46a   : > { %v2371_v23 = vadd.f32 %v2370_v7, %v2300_v22  ;;  %v2515_v26 = vmax.f32 %v5812_v2, 0.0  ;;  %v2439_v22 = vpop.f32.mrf.mxu0  ;;  %v2605_v7 = vld [vmem:[#allocation14 + $0x2b0] sm:$0xff] }
 0x46b   : > { %v3186_v2 = vld [vmem:[#allocation17 + $0x348] sm:$0xff] }
 0x46c   : > { %v2516_v24 = vmax.f32 %v2371_v23, 0.0  ;;  %v2602_v23 = vld [vmem:[#allocation14 + $0x298] sm:$0xff] }
 0x46e   : > { %2861 = vmatprep.mubr.f32.mxu0 %v2516_v24 }
 0x46f   : > { %2862 = vmatmul.mubr.f32.vlgmr.msra.gmra.mxu0 %v2515_v26 }
 0x470   : > { %2940 = vmatpush1.msra.mxu0 %v2581_v28  ;;  %3003 = vmatprep.mubr.f32.mxu0 %v2516_v24  ;;  %v2222_v24 = vrot.slane %v5806_v16, %v5764_v47  ;;  %v2601_v28 = vld [vmem:[#allocation14 + $0x290] sm:$0xff] }
 0x471   : > { %2941 = vmatprep.subr.mxu0 %v2578_v29  ;;  %v2226_v29 = vrot.slane %v5806_v16, %v5767_v48 }
 0x472   : > { %2942 = vmatpush1.msra.mxu0 %v2577_v30  ;;  %v2598_v30 = vld [vmem:[#allocation14 + $0x278] sm:$0xff] }
 0x473   : > { %2943 = vmatprep.subr.mxu0 %v2574_v31  ;;  %v2441_v31 = vpop.f32.mrf.mxu0 }
 0x474   : > { %2944 = vmatpush1.msra.mxu0 %v2573_v33  ;;  %v2597_v33 = vld [vmem:[#allocation14 + $0x270] sm:$0xff] }
 0x475   : > { %2945 = vmatprep.subr.mxu0 %v2570_v34  ;;  %v2594_v34 = vld [vmem:[#allocation14 + $0x258] sm:$0xff] }
 0x476   : > { %2946 = vmatpush1.msra.mxu0 %v2569_v36  ;;  %v2440_v36 = vadd.f32 %v2439_v22, %v2222_v24  ;;  %v3138_v22 = vld [vmem:[#allocation17 + $0x1c8] sm:$0xff]  ;;  %v2666_v24 = vld [vmem:[#allocation14 + $0x498] sm:$0xff] }
 0x477   : > { %2947 = vmatprep.subr.mxu0 %v2566_v37 }
 0x478   : > { %2948 = vmatpush1.msra.mxu0 %v2565_v38  ;;  %v2593_v38 = vld [vmem:[#allocation14 + $0x250] sm:$0xff] }
 0x479   : > { %2949 = vmatprep.subr.mxu0 %v2562_v40  ;;  %v2442_v40 = vadd.f32 %v2441_v31, %v2226_v29  ;;  %v2665_v29 = vld [vmem:[#allocation14 + $0x490] sm:$0xff]  ;;  %v2662_v31 = vld [vmem:[#allocation14 + $0x478] sm:$0xff] }
 0x47a   : > { %2950 = vmatpush1.msra.mxu0 %v2561_v44  ;;  %v2590_v44 = vld [vmem:[#allocation14 + $0x238] sm:$0xff] }
 0x47b   : > { %2951 = vmatprep.subr.mxu0 %v2558_v45 }
 0x47c   : > { %2952 = vmatpush1.msra.mxu0 %v2557_v46 }
 0x47d   : > { %2953 = vmatprep.subr.mxu0 %v2554_v32  ;;  %v2589_v32 = vld [vmem:[#allocation14 + $0x230] sm:$0xff] }
 0x47e   : > { %2954 = vmatpush1.msra.mxu0 %v2553_v27  ;;  %v2586_v27 = vld [vmem:[#allocation14 + $0x218] sm:$0xff] }
 0x47f   : > { %2955 = vmatprep.subr.mxu0 %v2550_v50  ;;  %v2585_v50 = vld [vmem:[#allocation14 + $0x210] sm:$0xff] }
 0x480   : > { %2956 = vmatpush1.msra.mxu0 %v2549_v51 }
 0x481   : > { %2957 = vmatprep.subr.mxu0 %v2546_v52 }
 0x482   : > { %2958 = vmatpush1.msra.mxu0 %v2545_v54  ;;  %v2709_v54 = vld [vmem:[#allocation14 + $0x5f0] sm:$0xff] }
 0x483   : > { %2959 = vmatprep.subr.mxu0 %v2542_v55  ;;  %v2706_v55 = vld [vmem:[#allocation14 + $0x5d8] sm:$0xff] }
 0x484   : > { %2960 = vmatpush1.msra.mxu0 %v2541_v57  ;;  %v2705_v57 = vld [vmem:[#allocation14 + $0x5d0] sm:$0xff] }
 0x485   : > { %2961 = vmatprep.subr.mxu0 %v2538_v58  ;;  %v2702_v58 = vld [vmem:[#allocation14 + $0x5b8] sm:$0xff] }
 0x486   : > { %2962 = vmatpush1.msra.mxu0 %v2537_v25  ;;  %v2701_v25 = vld [vmem:[#allocation14 + $0x5b0] sm:$0xff] }
 0x487   : > { %2963 = vmatprep.subr.mxu0 %v2534_v59  ;;  %v2698_v59 = vld [vmem:[#allocation14 + $0x598] sm:$0xff] }
 0x488   : > { %2964 = vmatpush1.msra.mxu0 %v2533_v60  ;;  %v3202_v60 = vld [vmem:[#allocation17 + $0x3c8] sm:$0xff] }
 0x489   : > { %2965 = vmatprep.subr.mxu0 %v2530_v61  ;;  %v3201_v61 = vld [vmem:[#allocation17 + $0x3c0] sm:$0xff] }
 0x48a   : > { %2966 = vmatpush1.msra.mxu0 %v2529_v63  ;;  %v3194_v63 = vld [vmem:[#allocation17 + $0x388] sm:$0xff] }
 0x48b   : > { %2967 = vmatprep.subr.mxu0 %v2526_v0  ;;  %v2697_v0 = vld [vmem:[#allocation14 + $0x590] sm:$0xff] }
 0x48c   : > { %2968 = vmatpush1.msra.mxu0 %v2525_v1  ;;  %v3193_v1 = vld [vmem:[#allocation17 + $0x380] sm:$0xff] }
 0x48d   : > { %2969 = vmatprep.subr.mxu0 %v2522_v3  ;;  %v2694_v3 = vld [vmem:[#allocation14 + $0x578] sm:$0xff] }
 0x48e   : > { %2970 = vmatpush1.msra.mxu0 %v2521_v4  ;;  %v3185_v4 = vld [vmem:[#allocation17 + $0x340] sm:$0xff] }
 0x48f   : > { %2971 = vmatprep.subr.mxu0 %v2646_v42  ;;  %v2690_v42 = vld [vmem:[#allocation14 + $0x558] sm:$0xff] }
 0x490   : > { %2972 = vmatpush2.msra.mxu0 %v2645_v5  ;;  %v3178_v5 = vld [vmem:[#allocation17 + $0x308] sm:$0xff] }
 0x491   : > { %2973 = vmatprep.subr.mxu0 %v2642_v6  ;;  %v2689_v6 = vld [vmem:[#allocation14 + $0x550] sm:$0xff] }
 0x492   : > { %2974 = vmatpush2.msra.mxu0 %v2641_v8  ;;  %v3177_v8 = vld [vmem:[#allocation17 + $0x300] sm:$0xff] }
 0x493   : > { %2975 = vmatprep.subr.mxu0 %v2638_v9  ;;  %v2686_v9 = vld [vmem:[#allocation14 + $0x538] sm:$0xff] }
 0x494   : > { %2976 = vmatpush2.msra.mxu0 %v2637_v10  ;;  %v3170_v10 = vld [vmem:[#allocation17 + $0x2c8] sm:$0xff] }
 0x495   : > { %2977 = vmatprep.subr.mxu0 %v2634_v11  ;;  %v2685_v11 = vld [vmem:[#allocation14 + $0x530] sm:$0xff] }
 0x496   : > { %2978 = vmatpush2.msra.mxu0 %v2633_v35  ;;  %v3169_v35 = vld [vmem:[#allocation17 + $0x2c0] sm:$0xff] }
 0x497   : > { %2979 = vmatprep.subr.mxu0 %v2630_v39  ;;  %v2682_v39 = vld [vmem:[#allocation14 + $0x518] sm:$0xff] }
 0x498   : > { %2980 = vmatpush2.msra.mxu0 %v2629_v12  ;;  %v3162_v12 = vld [vmem:[#allocation17 + $0x288] sm:$0xff] }
 0x499   : > { %2981 = vmatprep.subr.mxu0 %v2626_v13  ;;  %v2681_v13 = vld [vmem:[#allocation14 + $0x510] sm:$0xff] }
 0x49a   : > { %2982 = vmatpush2.msra.mxu0 %v2625_v56  ;;  %v3161_v56 = vld [vmem:[#allocation17 + $0x280] sm:$0xff] }
 0x49b   : > { %2983 = vmatprep.subr.mxu0 %v2622_v62  ;;  %v2678_v62 = vld [vmem:[#allocation14 + $0x4f8] sm:$0xff] }
 0x49c   : > { %2984 = vmatpush2.msra.mxu0 %v2621_v14  ;;  %v3154_v14 = vld [vmem:[#allocation17 + $0x248] sm:$0xff] }
 0x49d   : > { %2985 = vmatprep.subr.mxu0 %v2618_v15  ;;  %v2677_v15 = vld [vmem:[#allocation14 + $0x4f0] sm:$0xff] }
 0x49e   : > { %2986 = vmatpush2.msra.mxu0 %v2617_v18  ;;  %v3153_v18 = vld [vmem:[#allocation17 + $0x240] sm:$0xff] }
 0x49f   : > { %2987 = vmatprep.subr.mxu0 %v2614_v49  ;;  %v2674_v49 = vld [vmem:[#allocation14 + $0x4d8] sm:$0xff] }
 0x4a0   : > { %2988 = vmatpush2.msra.mxu0 %v2613_v53  ;;  %v3146_v53 = vld [vmem:[#allocation17 + $0x208] sm:$0xff] }
 0x4a1   : > { %2989 = vmatprep.subr.mxu0 %v2610_v19  ;;  %v2673_v19 = vld [vmem:[#allocation14 + $0x4d0] sm:$0xff] }
 0x4a2   : > { %2990 = vmatpush2.msra.mxu0 %v2609_v20  ;;  %v3145_v20 = vld [vmem:[#allocation17 + $0x200] sm:$0xff] }
 0x4a3   : > { %2991 = vmatprep.subr.mxu0 %v2606_v21  ;;  %v2670_v21 = vld [vmem:[#allocation14 + $0x4b8] sm:$0xff] }
 0x4a4   : > { %2992 = vmatpush2.msra.mxu0 %v2605_v7  ;;  %v2669_v7 = vld [vmem:[#allocation14 + $0x4b0] sm:$0xff] }
 0x4a5   : > { %2993 = vmatprep.subr.mxu0 %v2602_v23  ;;  %v3137_v23 = vld [vmem:[#allocation17 + $0x1c0] sm:$0xff] }
 0x4a6   : > { %2994 = vmatpush2.msra.mxu0 %v2601_v28  ;;  %v3130_v28 = vld [vmem:[#allocation17 + $0x188] sm:$0xff] }
 0x4a7   : > { %v2510_v37 = vpop.f32.mrf.mxu1  ;;  %2995 = vmatprep.subr.mxu0 %v2598_v30  ;;  %v3129_v30 = vld [vmem:[#allocation17 + $0x180] sm:$0xff] }
 0x4a8   : > { %2996 = vmatpush2.msra.mxu0 %v2597_v33  ;;  %v5821_v45 = vadd.f32 %v2510_v37, %v2440_v36  ;;  %v3122_v33 = vld [vmem:[#allocation17 + $0x148] sm:$0xff]  ;;  %v3121_v36 = vld [vmem:[#allocation17 + $0x140] sm:$0xff]  ;;  %v2658_v37 = vld [vmem:[#allocation14 + $0x458] sm:$0xff] }
 0x4a9   : > { %v2512_v46 = vpop.f32.mrf.mxu1  ;;  %2997 = vmatprep.subr.mxu0 %v2594_v34  ;;  %v2661_v34 = vld [vmem:[#allocation14 + $0x470] sm:$0xff] }
 0x4aa   : > { %v2513_v16 = vadd.f32 %v2512_v46, %v2442_v40  ;;  %2998 = vmatpush2.msra.mxu0 %v2593_v38  ;;  %v2517_v52 = vmax.f32 %v5821_v45, 0.0  ;;  %v3114_v38 = vld [vmem:[#allocation17 + $0x108] sm:$0xff]  ;;  %v2654_v46 = vld [vmem:[#allocation14 + $0x438] sm:$0xff]  ;;  %v3449_v45 = vld [vmem:[#allocation17 + $0xb80] sm:$0xff] }
 0x4ab   : > { %2999 = vmatprep.subr.mxu0 %v2590_v44  ;;  %v2657_v40 = vld [vmem:[#allocation14 + $0x450] sm:$0xff]  ;;  %v3113_v44 = vld [vmem:[#allocation17 + $0x100] sm:$0xff] }
 0x4ac   : > { %v2518_v51 = vmax.f32 %v2513_v16, 0.0  ;;  %3000 = vmatpush2.msra.mxu0 %v2589_v32  ;;  %v3106_v32 = vld [vmem:[#allocation17 + $0xc8] sm:$0xff] }
 0x4ad   : > { %3001 = vmatprep.subr.mxu0 %v2586_v27  ;;  %v2653_v16 = vld [vmem:[#allocation14 + $0x430] sm:$0xff]  ;;  %v3105_v27 = vld [vmem:[#allocation17 + $0xc0] sm:$0xff] }
 0x4ae   : > { %2932 = vmatprep.mubr.f32.mxu1 %v2518_v51  ;;  %3002 = vmatpush2.msra.mxu0 %v2585_v50  ;;  %v2650_v50 = vld [vmem:[#allocation14 + $0x418] sm:$0xff] }
 0x4af   : > { %2933 = vmatmul.mubr.f32.vlgmr.msra.gmra.mxu1 %v2517_v52  ;;  %3004 = vmatmul.mubr.f32.vlgmr.msra.gmra.mxu0 %v2515_v26  ;;  %v2693_v26 = vld [vmem:[#allocation14 + $0x570] sm:$0xff] }
 0x4b0   : > { %3011 = vmatpush1.msra.mxu1 %v2709_v54  ;;  %3074 = vmatprep.mubr.f32.mxu1 %v2518_v51  ;;  %v3098_v51 = vld [vmem:[#allocation17 + $0x88] sm:$0xff] }
 0x4b1   : > { %3012 = vmatprep.subr.mxu1 %v2706_v55  ;;  %3635 = vmatprep.subr.mxu0 %v3202_v60  ;;  %v2649_v54 = vld [vmem:[#allocation14 + $0x410] sm:$0xff]  ;;  %v3097_v55 = vld [vmem:[#allocation17 + $0x80] sm:$0xff]  ;;  %v2770_v60 = vld [vmem:[#allocation14 + $0x7d8] sm:$0xff] }
 0x4b2   : > { %3013 = vmatpush1.msra.mxu1 %v2705_v57  ;;  %3636 = vmatpush1.msra.mxu0 %v3201_v61  ;;  %v2774_v57 = vld [vmem:[#allocation14 + $0x7f8] sm:$0xff]  ;;  %v3082_v61 = vld [vmem:[#allocation17 + $0x8] sm:$0xff] }
 0x4b3   : > { %3014 = vmatprep.subr.mxu1 %v2702_v58  ;;  %3637 = vmatprep.subr.mxu0 %v3194_v63  ;;  %v3090_v58 = vld [vmem:[#allocation17 + $0x48] sm:$0xff] }
 0x4b4   : > { %3015 = vmatpush1.msra.mxu1 %v2701_v25  ;;  %3638 = vmatpush1.msra.mxu0 %v3193_v1  ;;  %v2773_v25 = vld [vmem:[#allocation14 + $0x7f0] sm:$0xff]  ;;  %v2766_v1 = vld [vmem:[#allocation14 + $0x7b8] sm:$0xff] }
 0x4b5   : > { %3016 = vmatprep.subr.mxu1 %v2698_v59  ;;  %3639 = vmatprep.subr.mxu0 %v3186_v2  ;;  %v3089_v59 = vld [vmem:[#allocation17 + $0x40] sm:$0xff]  ;;  %v2769_v63 = vld [vmem:[#allocation14 + $0x7d0] sm:$0xff] }
 0x4b6   : > { %3017 = vmatpush1.msra.mxu1 %v2697_v0  ;;  %3640 = vmatpush1.msra.mxu0 %v3185_v4  ;;  %v3081_v0 = vld [vmem:[#allocation17] sm:$0xff]  ;;  %v2765_v2 = vld [vmem:[#allocation14 + $0x7b0] sm:$0xff]  ;;  %v2762_v4 = vld [vmem:[#allocation14 + $0x798] sm:$0xff] }
 0x4b7   : > { %3018 = vmatprep.subr.mxu1 %v2694_v3  ;;  %3641 = vmatprep.subr.mxu0 %v3178_v5  ;;  %v3330_v3 = vld [vmem:[#allocation17 + $0x7c8] sm:$0xff] }
 0x4b8   : > { %3019 = vmatpush1.msra.mxu1 %v2693_v26  ;;  %3642 = vmatpush1.msra.mxu0 %v3177_v8  ;;  %v3329_v26 = vld [vmem:[#allocation17 + $0x7c0] sm:$0xff]  ;;  %v2761_v5 = vld [vmem:[#allocation14 + $0x790] sm:$0xff]  ;;  %v2758_v8 = vld [vmem:[#allocation14 + $0x778] sm:$0xff] }
 0x4b9   : > { %3020 = vmatprep.subr.mxu1 %v2690_v42  ;;  %3643 = vmatprep.subr.mxu0 %v3170_v10  ;;  %v3322_v42 = vld [vmem:[#allocation17 + $0x788] sm:$0xff] }
 0x4ba   : > { %3021 = vmatpush1.msra.mxu1 %v2689_v6  ;;  %3644 = vmatpush1.msra.mxu0 %v3169_v35  ;;  %v3321_v6 = vld [vmem:[#allocation17 + $0x780] sm:$0xff]  ;;  %v2757_v10 = vld [vmem:[#allocation14 + $0x770] sm:$0xff]  ;;  %v2754_v35 = vld [vmem:[#allocation14 + $0x758] sm:$0xff] }
 0x4bb   : > { %3022 = vmatprep.subr.mxu1 %v2686_v9  ;;  %3645 = vmatprep.subr.mxu0 %v3162_v12  ;;  %v3314_v9 = vld [vmem:[#allocation17 + $0x748] sm:$0xff] }
 0x4bc   : > { %3023 = vmatpush1.msra.mxu1 %v2685_v11  ;;  %3646 = vmatpush1.msra.mxu0 %v3161_v56  ;;  %v3313_v11 = vld [vmem:[#allocation17 + $0x740] sm:$0xff]  ;;  %v2753_v12 = vld [vmem:[#allocation14 + $0x750] sm:$0xff]  ;;  %v2750_v56 = vld [vmem:[#allocation14 + $0x738] sm:$0xff] }
 0x4bd   : > { %3024 = vmatprep.subr.mxu1 %v2682_v39  ;;  %3647 = vmatprep.subr.mxu0 %v3154_v14  ;;  %v3306_v39 = vld [vmem:[#allocation17 + $0x708] sm:$0xff] }
 0x4be   : > { %3025 = vmatpush1.msra.mxu1 %v2681_v13  ;;  %3648 = vmatpush1.msra.mxu0 %v3153_v18  ;;  %v3305_v13 = vld [vmem:[#allocation17 + $0x700] sm:$0xff]  ;;  %v2749_v14 = vld [vmem:[#allocation14 + $0x730] sm:$0xff]  ;;  %v2746_v18 = vld [vmem:[#allocation14 + $0x718] sm:$0xff] }
 0x4bf   : > { %3026 = vmatprep.subr.mxu1 %v2678_v62  ;;  %3649 = vmatprep.subr.mxu0 %v3146_v53  ;;  %v3298_v62 = vld [vmem:[#allocation17 + $0x6c8] sm:$0xff] }
 0x4c0   : > { %3027 = vmatpush1.msra.mxu1 %v2677_v15  ;;  %3650 = vmatpush1.msra.mxu0 %v3145_v20  ;;  %v3297_v15 = vld [vmem:[#allocation17 + $0x6c0] sm:$0xff]  ;;  %v2745_v53 = vld [vmem:[#allocation14 + $0x710] sm:$0xff]  ;;  %v2742_v20 = vld [vmem:[#allocation14 + $0x6f8] sm:$0xff] }
 0x4c1   : > { %3028 = vmatprep.subr.mxu1 %v2674_v49  ;;  %3651 = vmatprep.subr.mxu0 %v3138_v22  ;;  %v3290_v49 = vld [vmem:[#allocation17 + $0x688] sm:$0xff] }
 0x4c2   : > { %3029 = vmatpush1.msra.mxu1 %v2673_v19  ;;  %3652 = vmatpush1.msra.mxu0 %v3137_v23  ;;  %v3289_v19 = vld [vmem:[#allocation17 + $0x680] sm:$0xff]  ;;  %v2741_v22 = vld [vmem:[#allocation14 + $0x6f0] sm:$0xff]  ;;  %v2738_v23 = vld [vmem:[#allocation14 + $0x6d8] sm:$0xff] }
 0x4c3   : > { %3030 = vmatprep.subr.mxu1 %v2670_v21  ;;  %3653 = vmatprep.subr.mxu0 %v3130_v28  ;;  %v3282_v21 = vld [vmem:[#allocation17 + $0x648] sm:$0xff] }
 0x4c4   : > { %3031 = vmatpush1.msra.mxu1 %v2669_v7  ;;  %3654 = vmatpush1.msra.mxu0 %v3129_v30  ;;  %v3281_v7 = vld [vmem:[#allocation17 + $0x640] sm:$0xff]  ;;  %v2737_v28 = vld [vmem:[#allocation14 + $0x6d0] sm:$0xff]  ;;  %v2734_v30 = vld [vmem:[#allocation14 + $0x6b8] sm:$0xff] }
 0x4c5   : > { %3032 = vmatprep.subr.mxu1 %v2666_v24  ;;  %3655 = vmatprep.subr.mxu0 %v3122_v33  ;;  %v3274_v24 = vld [vmem:[#allocation17 + $0x608] sm:$0xff] }
 0x4c6   : > { %3033 = vmatpush1.msra.mxu1 %v2665_v29  ;;  %3656 = vmatpush1.msra.mxu0 %v3121_v36  ;;  %v3273_v29 = vld [vmem:[#allocation17 + $0x600] sm:$0xff]  ;;  %v2733_v33 = vld [vmem:[#allocation14 + $0x6b0] sm:$0xff]  ;;  %v2730_v36 = vld [vmem:[#allocation14 + $0x698] sm:$0xff] }
 0x4c7   : > { %3034 = vmatprep.subr.mxu1 %v2662_v31  ;;  %3657 = vmatprep.subr.mxu0 %v3114_v38  ;;  %v3266_v31 = vld [vmem:[#allocation17 + $0x5c8] sm:$0xff] }
 0x4c8   : > { %3035 = vmatpush1.msra.mxu1 %v2661_v34  ;;  %3658 = vmatpush1.msra.mxu0 %v3113_v44  ;;  %v3265_v34 = vld [vmem:[#allocation17 + $0x5c0] sm:$0xff]  ;;  %v2729_v38 = vld [vmem:[#allocation14 + $0x690] sm:$0xff]  ;;  %v2726_v44 = vld [vmem:[#allocation14 + $0x678] sm:$0xff] }
 0x4c9   : > { %3036 = vmatprep.subr.mxu1 %v2658_v37  ;;  %3659 = vmatprep.subr.mxu0 %v3106_v32  ;;  %v3258_v37 = vld [vmem:[#allocation17 + $0x588] sm:$0xff] }
 0x4ca   : > { %3037 = vmatpush1.msra.mxu1 %v2657_v40  ;;  %3660 = vmatpush1.msra.mxu0 %v3105_v27  ;;  %v3257_v40 = vld [vmem:[#allocation17 + $0x580] sm:$0xff]  ;;  %v2725_v32 = vld [vmem:[#allocation14 + $0x670] sm:$0xff]  ;;  %v2722_v27 = vld [vmem:[#allocation14 + $0x658] sm:$0xff] }
 0x4cb   : > { %3038 = vmatprep.subr.mxu1 %v2654_v46  ;;  %3661 = vmatprep.subr.mxu0 %v3098_v51  ;;  %v3250_v46 = vld [vmem:[#allocation17 + $0x548] sm:$0xff] }
 0x4cc   : > { %3039 = vmatpush1.msra.mxu1 %v2653_v16  ;;  %3662 = vmatpush1.msra.mxu0 %v3097_v55  ;;  %v3249_v16 = vld [vmem:[#allocation17 + $0x540] sm:$0xff]  ;;  %v2721_v51 = vld [vmem:[#allocation14 + $0x650] sm:$0xff]  ;;  %v2718_v55 = vld [vmem:[#allocation14 + $0x638] sm:$0xff] }
 0x4cd   : > { %3040 = vmatprep.subr.mxu1 %v2650_v50  ;;  %3663 = vmatprep.subr.mxu0 %v3090_v58  ;;  %v3242_v50 = vld [vmem:[#allocation17 + $0x508] sm:$0xff] }
 0x4ce   : > { %3041 = vmatpush1.msra.mxu1 %v2649_v54  ;;  %3664 = vmatpush1.msra.mxu0 %v3089_v59  ;;  %v3241_v54 = vld [vmem:[#allocation17 + $0x500] sm:$0xff]  ;;  %v2717_v58 = vld [vmem:[#allocation14 + $0x630] sm:$0xff]  ;;  %v2714_v59 = vld [vmem:[#allocation14 + $0x618] sm:$0xff] }
 0x4cf   : > { %3042 = vmatprep.subr.mxu1 %v2774_v57  ;;  %3665 = vmatprep.subr.mxu0 %v3082_v61  ;;  %v3234_v57 = vld [vmem:[#allocation17 + $0x4c8] sm:$0xff] }
 0x4d0   : > { %3043 = vmatpush2.msra.mxu1 %v2773_v25  ;;  %3666 = vmatpush1.msra.mxu0 %v3081_v0  ;;  %v3233_v25 = vld [vmem:[#allocation17 + $0x4c0] sm:$0xff]  ;;  %v2713_v61 = vld [vmem:[#allocation14 + $0x610] sm:$0xff] }
 0x4d1   : > { %3044 = vmatprep.subr.mxu1 %v2770_v60  ;;  %3667 = vmatprep.subr.mxu0 %v3330_v3  ;;  %v3226_v60 = vld [vmem:[#allocation17 + $0x488] sm:$0xff] }
 0x4d2   : > { %3045 = vmatpush2.msra.mxu1 %v2769_v63  ;;  %3668 = vmatpush2.msra.mxu0 %v3329_v26  ;;  %v3225_v63 = vld [vmem:[#allocation17 + $0x480] sm:$0xff]  ;;  %v3218_v0 = vld [vmem:[#allocation17 + $0x448] sm:$0xff] }
 0x4d3   : > { %3046 = vmatprep.subr.mxu1 %v2766_v1  ;;  %3669 = vmatprep.subr.mxu0 %v3322_v42  ;;  %v3217_v1 = vld [vmem:[#allocation17 + $0x440] sm:$0xff]  ;;  %v3210_v3 = vld [vmem:[#allocation17 + $0x408] sm:$0xff]  ;;  %v3204_v42 = vld [vmem:[#allocation17 + $0x3d8] sm:$0xff] }
 0x4d4   : > { %3047 = vmatpush2.msra.mxu1 %v2765_v2  ;;  %3670 = vmatpush2.msra.mxu0 %v3321_v6  ;;  %v3209_v2 = vld [vmem:[#allocation17 + $0x400] sm:$0xff]  ;;  %v3458_v26 = vld [vmem:[#allocation17 + $0xbc8] sm:$0xff] }
 0x4d5   : > { %3048 = vmatprep.subr.mxu1 %v2762_v4  ;;  %3671 = vmatprep.subr.mxu0 %v3314_v9  ;;  %v3457_v4 = vld [vmem:[#allocation17 + $0xbc0] sm:$0xff] }
 0x4d6   : > { %3049 = vmatpush2.msra.mxu1 %v2761_v5  ;;  %3672 = vmatpush2.msra.mxu0 %v3313_v11  ;;  %v3450_v5 = vld [vmem:[#allocation17 + $0xb88] sm:$0xff]  ;;  %v3441_v6 = vld [vmem:[#allocation17 + $0xb40] sm:$0xff] }
 0x4d7   : > { %3050 = vmatprep.subr.mxu1 %v2758_v8  ;;  %3673 = vmatprep.subr.mxu0 %v3306_v39  ;;  %v3434_v8 = vld [vmem:[#allocation17 + $0xb08] sm:$0xff]  ;;  %v3433_v9 = vld [vmem:[#allocation17 + $0xb00] sm:$0xff] }
 0x4d8   : > { %3051 = vmatpush2.msra.mxu1 %v2757_v10  ;;  %3674 = vmatpush2.msra.mxu0 %v3305_v13  ;;  %v3426_v10 = vld [vmem:[#allocation17 + $0xac8] sm:$0xff]  ;;  %v3425_v11 = vld [vmem:[#allocation17 + $0xac0] sm:$0xff] }
 0x4d9   : > { %3052 = vmatprep.subr.mxu1 %v2754_v35  ;;  %3675 = vmatprep.subr.mxu0 %v3298_v62  ;;  %v3418_v35 = vld [vmem:[#allocation17 + $0xa88] sm:$0xff]  ;;  %v3417_v39 = vld [vmem:[#allocation17 + $0xa80] sm:$0xff] }
 0x4da   : > { %3053 = vmatpush2.msra.mxu1 %v2753_v12  ;;  %3676 = vmatpush2.msra.mxu0 %v3297_v15  ;;  %v3410_v12 = vld [vmem:[#allocation17 + $0xa48] sm:$0xff]  ;;  %v3409_v13 = vld [vmem:[#allocation17 + $0xa40] sm:$0xff] }
 0x4db   : > { %3054 = vmatprep.subr.mxu1 %v2750_v56  ;;  %3677 = vmatprep.subr.mxu0 %v3290_v49  ;;  %v3402_v56 = vld [vmem:[#allocation17 + $0xa08] sm:$0xff]  ;;  %v3401_v62 = vld [vmem:[#allocation17 + $0xa00] sm:$0xff] }
 0x4dc   : > { %3055 = vmatpush2.msra.mxu1 %v2749_v14  ;;  %3678 = vmatpush2.msra.mxu0 %v3289_v19  ;;  %v3394_v14 = vld [vmem:[#allocation17 + $0x9c8] sm:$0xff]  ;;  %v3393_v15 = vld [vmem:[#allocation17 + $0x9c0] sm:$0xff] }
 0x4dd   : > { %3056 = vmatprep.subr.mxu1 %v2746_v18  ;;  %3679 = vmatprep.subr.mxu0 %v3282_v21  ;;  %v3386_v18 = vld [vmem:[#allocation17 + $0x988] sm:$0xff]  ;;  %v3385_v49 = vld [vmem:[#allocation17 + $0x980] sm:$0xff] }
 0x4de   : > { %3057 = vmatpush2.msra.mxu1 %v2745_v53  ;;  %3680 = vmatpush2.msra.mxu0 %v3281_v7  ;;  %v3378_v53 = vld [vmem:[#allocation17 + $0x948] sm:$0xff]  ;;  %v3377_v19 = vld [vmem:[#allocation17 + $0x940] sm:$0xff] }
 0x4df   : > { %3058 = vmatprep.subr.mxu1 %v2742_v20  ;;  %3681 = vmatprep.subr.mxu0 %v3274_v24  ;;  %v3370_v20 = vld [vmem:[#allocation17 + $0x908] sm:$0xff]  ;;  %v3369_v21 = vld [vmem:[#allocation17 + $0x900] sm:$0xff] }
 0x4e0   : > { %3059 = vmatpush2.msra.mxu1 %v2741_v22  ;;  %3682 = vmatpush2.msra.mxu0 %v3273_v29  ;;  %v3362_v22 = vld [vmem:[#allocation17 + $0x8c8] sm:$0xff]  ;;  %v3361_v7 = vld [vmem:[#allocation17 + $0x8c0] sm:$0xff] }
 0x4e1   : > { %3060 = vmatprep.subr.mxu1 %v2738_v23  ;;  %3683 = vmatprep.subr.mxu0 %v3266_v31  ;;  %v3354_v23 = vld [vmem:[#allocation17 + $0x888] sm:$0xff]  ;;  %v3353_v24 = vld [vmem:[#allocation17 + $0x880] sm:$0xff] }
 0x4e2   : > { %3061 = vmatpush2.msra.mxu1 %v2737_v28  ;;  %3684 = vmatpush2.msra.mxu0 %v3265_v34  ;;  %v3346_v28 = vld [vmem:[#allocation17 + $0x848] sm:$0xff]  ;;  %v3345_v29 = vld [vmem:[#allocation17 + $0x840] sm:$0xff] }
 0x4e3   : > { %3062 = vmatprep.subr.mxu1 %v2734_v30  ;;  %3685 = vmatprep.subr.mxu0 %v3258_v37  ;;  %v3338_v30 = vld [vmem:[#allocation17 + $0x808] sm:$0xff]  ;;  %v3337_v31 = vld [vmem:[#allocation17 + $0x800] sm:$0xff] }
 0x4e4   : > { %3063 = vmatpush2.msra.mxu1 %v2733_v33  ;;  %3686 = vmatpush2.msra.mxu0 %v3257_v40  ;;  %v3586_v33 = vld [vmem:[#allocation17 + $0xfc8] sm:$0xff]  ;;  %v3585_v34 = vld [vmem:[#allocation17 + $0xfc0] sm:$0xff] }
 0x4e5   : > { %3064 = vmatprep.subr.mxu1 %v2730_v36  ;;  %3687 = vmatprep.subr.mxu0 %v3250_v46  ;;  %v3578_v36 = vld [vmem:[#allocation17 + $0xf88] sm:$0xff]  ;;  %v3577_v37 = vld [vmem:[#allocation17 + $0xf80] sm:$0xff] }
 0x4e6   : > { %3065 = vmatpush2.msra.mxu1 %v2729_v38  ;;  %3688 = vmatpush2.msra.mxu0 %v3249_v16  ;;  %v3570_v38 = vld [vmem:[#allocation17 + $0xf48] sm:$0xff]  ;;  %v3569_v40 = vld [vmem:[#allocation17 + $0xf40] sm:$0xff] }
 0x4e7   : > { %3066 = vmatprep.subr.mxu1 %v2726_v44  ;;  %3689 = vmatprep.subr.mxu0 %v3242_v50  ;;  %v3562_v44 = vld [vmem:[#allocation17 + $0xf08] sm:$0xff]  ;;  %v3561_v46 = vld [vmem:[#allocation17 + $0xf00] sm:$0xff] }
 0x4e8   : > { %3067 = vmatpush2.msra.mxu1 %v2725_v32  ;;  %3690 = vmatpush2.msra.mxu0 %v3241_v54  ;;  %v3554_v32 = vld [vmem:[#allocation17 + $0xec8] sm:$0xff]  ;;  %v3553_v16 = vld [vmem:[#allocation17 + $0xec0] sm:$0xff] }
 0x4e9   : > { %3068 = vmatprep.subr.mxu1 %v2722_v27  ;;  %3691 = vmatprep.subr.mxu0 %v3234_v57  ;;  %v3546_v27 = vld [vmem:[#allocation17 + $0xe88] sm:$0xff]  ;;  %v3545_v50 = vld [vmem:[#allocation17 + $0xe80] sm:$0xff] }
 0x4ea   : > { %3069 = vmatpush2.msra.mxu1 %v2721_v51  ;;  %3692 = vmatpush2.msra.mxu0 %v3233_v25  ;;  %v3538_v51 = vld [vmem:[#allocation17 + $0xe48] sm:$0xff]  ;;  %v3537_v54 = vld [vmem:[#allocation17 + $0xe40] sm:$0xff] }
 0x4eb   : > { %3070 = vmatprep.subr.mxu1 %v2718_v55  ;;  %3693 = vmatprep.subr.mxu0 %v3226_v60  ;;  %v3530_v55 = vld [vmem:[#allocation17 + $0xe08] sm:$0xff]  ;;  %v3529_v57 = vld [vmem:[#allocation17 + $0xe00] sm:$0xff] }
 0x4ec   : > { %3071 = vmatpush2.msra.mxu1 %v2717_v58  ;;  %3694 = vmatpush2.msra.mxu0 %v3225_v63  ;;  %v3522_v58 = vld [vmem:[#allocation17 + $0xdc8] sm:$0xff]  ;;  %v3521_v25 = vld [vmem:[#allocation17 + $0xdc0] sm:$0xff] }
 0x4ed   : > { %3072 = vmatprep.subr.mxu1 %v2714_v59  ;;  %3695 = vmatprep.subr.mxu0 %v3218_v0  ;;  %v3514_v59 = vld [vmem:[#allocation17 + $0xd88] sm:$0xff]  ;;  %v3513_v60 = vld [vmem:[#allocation17 + $0xd80] sm:$0xff] }
 0x4ee   : > { %3073 = vmatpush2.msra.mxu1 %v2713_v61  ;;  %3696 = vmatpush2.msra.mxu0 %v3217_v1  ;;  %v3506_v61 = vld [vmem:[#allocation17 + $0xd48] sm:$0xff]  ;;  %v3505_v63 = vld [vmem:[#allocation17 + $0xd40] sm:$0xff] }
 0x4ef   : > { %3075 = vmatmul.mubr.f32.vlgmr.msra.gmra.mxu1 %v2517_v52  ;;  %3697 = vmatprep.subr.mxu0 %v3210_v3  ;;  %v3442_v52 = vld [vmem:[#allocation17 + $0xb48] sm:$0xff]  ;;  %v3497_v1 = vld [vmem:[#allocation17 + $0xd00] sm:$0xff] }
 0x4f0   : > { %3706 = vmatprep.subr.mxu1 %v3458_v26  ;;  %3698 = vmatpush2.msra.mxu0 %v3209_v2  ;;  %v3498_v0 = vld [vmem:[#allocation17 + $0xd08] sm:$0xff]  ;;  %v3489_v2 = vld [vmem:[#allocation17 + $0xcc0] sm:$0xff] }
 0x4f1   : > { %3707 = vmatpush1.msra.mxu1 %v3457_v4  ;;  %3777 = vmatprep.subr.mxu0 %v3204_v42  ;;  %v3490_v3 = vld [vmem:[#allocation17 + $0xcc8] sm:$0xff]  ;;  %v3481_v4 = vld [vmem:[#allocation17 + $0xc80] sm:$0xff] }
 0x4f2   : > { %3708 = vmatprep.subr.mxu1 %v3450_v5  ;;  %v3482_v26 = vld [vmem:[#allocation17 + $0xc88] sm:$0xff]  ;;  %v3473_v5 = vld [vmem:[#allocation17 + $0xc40] sm:$0xff] }
 0x4f3   : > { %3709 = vmatpush1.msra.mxu1 %v3449_v45  ;;  %v3474_v42 = vld [vmem:[#allocation17 + $0xc48] sm:$0xff] }
 0x4f4   : > { %3710 = vmatprep.subr.mxu1 %v3442_v52  ;;  %v3466_v45 = vld [vmem:[#allocation17 + $0xc08] sm:$0xff]  ;;  %v3465_v52 = vld [vmem:[#allocation17 + $0xc00] sm:$0xff] }
 0x4f5   : > { %3711 = vmatpush1.msra.mxu1 %v3441_v6  ;;  %v3460_v6 = vld [vmem:[#allocation17 + $0xbd8] sm:$0xff] }
 0x4f6   : > { %3712 = vmatprep.subr.mxu1 %v3434_v8 }
 0x4f7   : > { %3713 = vmatpush1.msra.mxu1 %v3433_v9  ;;  %v5830_v9 = vld [vmem:[#allocation16] sm:$0xf] }
 0x4f8   : > { %3714 = vmatprep.subr.mxu1 %v3426_v10  ;;  %v2784_v10 = vrot.slane %v5830_v9, %v5752_v43 }
 0x4f9   : > { %3715 = vmatpush1.msra.mxu1 %v3425_v11  ;;  %v2780_v11 = vrot.slane %v5830_v9, %v5747_v41 }
 0x4fa   : > { %3716 = vmatprep.subr.mxu1 %v3418_v35 }
 0x4fb   : > { %3717 = vmatpush1.msra.mxu1 %v3417_v39 }
 0x4fc   : > { %3718 = vmatprep.subr.mxu1 %v3410_v12 }
 0x4fd   : > { %3719 = vmatpush1.msra.mxu1 %v3409_v13 }
 0x4fe   : > { %3720 = vmatprep.subr.mxu1 %v3402_v56 }
 0x4ff   : > { %3721 = vmatpush1.msra.mxu1 %v3401_v62 }
 0x500   : > { %3722 = vmatprep.subr.mxu1 %v3394_v14 }
 0x501   : > { %3723 = vmatpush1.msra.mxu1 %v3393_v15  ;;  %v3203_v15 = vld [vmem:[#allocation17 + $0x3d0] sm:$0xff] }
 0x502   : > { %3724 = vmatprep.subr.mxu1 %v3386_v18  ;;  %v3196_v18 = vld [vmem:[#allocation17 + $0x398] sm:$0xff] }
 0x503   : > { %3725 = vmatpush1.msra.mxu1 %v3385_v49  ;;  %v3195_v49 = vld [vmem:[#allocation17 + $0x390] sm:$0xff] }
 0x504   : > { %3726 = vmatprep.subr.mxu1 %v3378_v53  ;;  %v3188_v53 = vld [vmem:[#allocation17 + $0x358] sm:$0xff] }
 0x505   : > { %3727 = vmatpush1.msra.mxu1 %v3377_v19  ;;  %v3187_v19 = vld [vmem:[#allocation17 + $0x350] sm:$0xff] }
 0x506   : > { %3728 = vmatprep.subr.mxu1 %v3370_v20  ;;  %v3180_v20 = vld [vmem:[#allocation17 + $0x318] sm:$0xff] }
 0x507   : > { %3729 = vmatpush1.msra.mxu1 %v3369_v21  ;;  %v3179_v21 = vld [vmem:[#allocation17 + $0x310] sm:$0xff] }
 0x508   : > { %3730 = vmatprep.subr.mxu1 %v3362_v22  ;;  %v3172_v22 = vld [vmem:[#allocation17 + $0x2d8] sm:$0xff] }
 0x509   : > { %3731 = vmatpush1.msra.mxu1 %v3361_v7  ;;  %v3171_v7 = vld [vmem:[#allocation17 + $0x2d0] sm:$0xff] }
 0x50a   : > { %3732 = vmatprep.subr.mxu1 %v3354_v23  ;;  %v3164_v23 = vld [vmem:[#allocation17 + $0x298] sm:$0xff] }
 0x50b   : > { %3733 = vmatpush1.msra.mxu1 %v3353_v24  ;;  %v3163_v24 = vld [vmem:[#allocation17 + $0x290] sm:$0xff] }
 0x50c   : > { %3734 = vmatprep.subr.mxu1 %v3346_v28  ;;  %v3156_v28 = vld [vmem:[#allocation17 + $0x258] sm:$0xff] }
 0x50d   : > { %3735 = vmatpush1.msra.mxu1 %v3345_v29  ;;  %v3155_v29 = vld [vmem:[#allocation17 + $0x250] sm:$0xff] }
 0x50e   : > { %3736 = vmatprep.subr.mxu1 %v3338_v30  ;;  %v3148_v30 = vld [vmem:[#allocation17 + $0x218] sm:$0xff] }
 0x50f   : > { %3737 = vmatpush1.msra.mxu1 %v3337_v31  ;;  %v3147_v31 = vld [vmem:[#allocation17 + $0x210] sm:$0xff] }
 0x510   : > { %3738 = vmatprep.subr.mxu1 %v3586_v33  ;;  %v3140_v33 = vld [vmem:[#allocation17 + $0x1d8] sm:$0xff] }
 0x511   : > { %3739 = vmatpush2.msra.mxu1 %v3585_v34  ;;  %v3139_v34 = vld [vmem:[#allocation17 + $0x1d0] sm:$0xff] }
 0x512   : > { %3740 = vmatprep.subr.mxu1 %v3578_v36  ;;  %v3132_v36 = vld [vmem:[#allocation17 + $0x198] sm:$0xff] }
 0x513   : > { %3741 = vmatpush2.msra.mxu1 %v3577_v37  ;;  %v3131_v37 = vld [vmem:[#allocation17 + $0x190] sm:$0xff] }
 0x514   : > { %3742 = vmatprep.subr.mxu1 %v3570_v38  ;;  %v3124_v38 = vld [vmem:[#allocation17 + $0x158] sm:$0xff] }
 0x515   : > { %3743 = vmatpush2.msra.mxu1 %v3569_v40  ;;  %v3123_v40 = vld [vmem:[#allocation17 + $0x150] sm:$0xff] }
 0x516   : > { %3744 = vmatprep.subr.mxu1 %v3562_v44  ;;  %v3116_v44 = vld [vmem:[#allocation17 + $0x118] sm:$0xff] }
 0x517   : > { %3745 = vmatpush2.msra.mxu1 %v3561_v46  ;;  %v3115_v46 = vld [vmem:[#allocation17 + $0x110] sm:$0xff] }
 0x518   : > { %3746 = vmatprep.subr.mxu1 %v3554_v32  ;;  %v3108_v32 = vld [vmem:[#allocation17 + $0xd8] sm:$0xff] }
 0x519   : > { %3747 = vmatpush2.msra.mxu1 %v3553_v16  ;;  %v3107_v16 = vld [vmem:[#allocation17 + $0xd0] sm:$0xff] }
 0x51a   : > { %3748 = vmatprep.subr.mxu1 %v3546_v27  ;;  %v3100_v27 = vld [vmem:[#allocation17 + $0x98] sm:$0xff] }
 0x51b   : > { %3749 = vmatpush2.msra.mxu1 %v3545_v50  ;;  %v3099_v50 = vld [vmem:[#allocation17 + $0x90] sm:$0xff] }
 0x51c   : > { %3750 = vmatprep.subr.mxu1 %v3538_v51  ;;  %v3092_v51 = vld [vmem:[#allocation17 + $0x58] sm:$0xff] }
 0x51d   : > { %3751 = vmatpush2.msra.mxu1 %v3537_v54  ;;  %v3091_v54 = vld [vmem:[#allocation17 + $0x50] sm:$0xff] }
 0x51e   : > { %3752 = vmatprep.subr.mxu1 %v3530_v55  ;;  %v3084_v55 = vld [vmem:[#allocation17 + $0x18] sm:$0xff] }
 0x51f   : > { %3753 = vmatpush2.msra.mxu1 %v3529_v57  ;;  %v3083_v57 = vld [vmem:[#allocation17 + $0x10] sm:$0xff] }
 0x520   : > { %3754 = vmatprep.subr.mxu1 %v3522_v58  ;;  %v3332_v58 = vld [vmem:[#allocation17 + $0x7d8] sm:$0xff] }
 0x521   : > { %3755 = vmatpush2.msra.mxu1 %v3521_v25  ;;  %v3331_v25 = vld [vmem:[#allocation17 + $0x7d0] sm:$0xff] }
 0x522   : > { %3756 = vmatprep.subr.mxu1 %v3514_v59  ;;  %v3324_v59 = vld [vmem:[#allocation17 + $0x798] sm:$0xff] }
 0x523   : > { %3757 = vmatpush2.msra.mxu1 %v3513_v60  ;;  %v3323_v60 = vld [vmem:[#allocation17 + $0x790] sm:$0xff] }
 0x524   : > { %3758 = vmatprep.subr.mxu1 %v3506_v61  ;;  %v3316_v61 = vld [vmem:[#allocation17 + $0x758] sm:$0xff] }
 0x525   : > { %3759 = vmatpush2.msra.mxu1 %v3505_v63  ;;  %v3315_v63 = vld [vmem:[#allocation17 + $0x750] sm:$0xff] }
 0x526   : > { %3760 = vmatprep.subr.mxu1 %v3498_v0  ;;  %v3308_v0 = vld [vmem:[#allocation17 + $0x718] sm:$0xff] }
 0x527   : > { %3761 = vmatpush2.msra.mxu1 %v3497_v1  ;;  %v3307_v1 = vld [vmem:[#allocation17 + $0x710] sm:$0xff] }
 0x528   : > { %3762 = vmatprep.subr.mxu1 %v3490_v3  ;;  %v3300_v3 = vld [vmem:[#allocation17 + $0x6d8] sm:$0xff] }
 0x529   : > { %3763 = vmatpush2.msra.mxu1 %v3489_v2  ;;  %v3299_v2 = vld [vmem:[#allocation17 + $0x6d0] sm:$0xff] }
 0x52a   : > { %3764 = vmatprep.subr.mxu1 %v3482_v26  ;;  %v3292_v26 = vld [vmem:[#allocation17 + $0x698] sm:$0xff] }
 0x52b   : > { %3765 = vmatpush2.msra.mxu1 %v3481_v4  ;;  %v3291_v4 = vld [vmem:[#allocation17 + $0x690] sm:$0xff] }
 0x52c   : > { %3766 = vmatprep.subr.mxu1 %v3474_v42  ;;  %v3284_v42 = vld [vmem:[#allocation17 + $0x658] sm:$0xff] }
 0x52d   : > { %3767 = vmatpush2.msra.mxu1 %v3473_v5  ;;  %v3283_v5 = vld [vmem:[#allocation17 + $0x650] sm:$0xff] }
 0x52e   : > { %3768 = vmatprep.subr.mxu1 %v3466_v45  ;;  %v3276_v45 = vld [vmem:[#allocation17 + $0x618] sm:$0xff] }
 0x52f   : > { %3769 = vmatpush2.msra.mxu1 %v3465_v52  ;;  %v2863_v8 = vpop.f32.mrf.mxu0  ;;  %v3275_v52 = vld [vmem:[#allocation17 + $0x610] sm:$0xff] }
 0x530   : > { %3848 = vmatprep.subr.mxu1 %v3460_v6  ;;  %v2864_v13 = vadd.f32 %v2863_v8, %v2780_v11  ;;  %v3268_v6 = vld [vmem:[#allocation17 + $0x5d8] sm:$0xff]  ;;  %v3267_v8 = vld [vmem:[#allocation17 + $0x5d0] sm:$0xff] }
 0x531   : > { %v2865_v35 = vpop.f32.mrf.mxu0  ;;  %v3259_v11 = vld [vmem:[#allocation17 + $0x590] sm:$0xff] }
 0x532   : > { %v2866_v12 = vadd.f32 %v2865_v35, %v2784_v10  ;;  %v3260_v10 = vld [vmem:[#allocation17 + $0x598] sm:$0xff] }
 0x533   : > { %v3252_v35 = vld [vmem:[#allocation17 + $0x558] sm:$0xff] }
 0x56f   : > { %v2934_v39 = vpop.f32.mrf.mxu1 }
 0x570   : > { %v5838_v14 = vadd.f32 %v2934_v39, %v2864_v13  ;;  %v3251_v39 = vld [vmem:[#allocation17 + $0x550] sm:$0xff]  ;;  %v3005_v13 = vpop.f32.mrf.mxu0 }
 0x571   : > { %v2936_v56 = vpop.f32.mrf.mxu1 }
 0x572   : > { %v5836_v62 = vadd.f32 %v2936_v56, %v2866_v12  ;;  %v3244_v12 = vld [vmem:[#allocation17 + $0x518] sm:$0xff]  ;;  %v3243_v56 = vld [vmem:[#allocation17 + $0x510] sm:$0xff] }
 0x574   : > { %3699 = vmatprep.mubr.f32.mxu0 %v5836_v62 }
 0x575   : > { %3700 = vmatmul.mubr.f32.vlgmr.msra.gmra.mxu0 %v5838_v14 }
 0x576   : > { %3778 = vmatpush1.msra.mxu0 %v3203_v15  ;;  %3841 = vmatprep.mubr.f32.mxu0 %v5836_v62  ;;  %v3236_v15 = vld [vmem:[#allocation17 + $0x4d8] sm:$0xff] }
 0x577   : > { %3779 = vmatprep.subr.mxu0 %v3196_v18  ;;  %v3235_v18 = vld [vmem:[#allocation17 + $0x4d0] sm:$0xff] }
 0x578   : > { %3780 = vmatpush1.msra.mxu0 %v3195_v49  ;;  %v2792_v49 = vrot.slane %v5830_v9, %v5767_v48 }
 0x579   : > { %3781 = vmatprep.subr.mxu0 %v3188_v53  ;;  %v3228_v53 = vld [vmem:[#allocation17 + $0x498] sm:$0xff] }
 0x57a   : > { %3782 = vmatpush1.msra.mxu0 %v3187_v19  ;;  %v2788_v19 = vrot.slane %v5830_v9, %v5764_v47  ;;  %v3459_v9 = vld [vmem:[#allocation17 + $0xbd0] sm:$0xff] }
 0x57b   : > { %3783 = vmatprep.subr.mxu0 %v3180_v20  ;;  %v3007_v20 = vpop.f32.mrf.mxu0 }
 0x57c   : > { %3784 = vmatpush1.msra.mxu0 %v3179_v21  ;;  %v3227_v21 = vld [vmem:[#allocation17 + $0x490] sm:$0xff] }
 0x57d   : > { %3785 = vmatprep.subr.mxu0 %v3172_v22  ;;  %v3220_v22 = vld [vmem:[#allocation17 + $0x458] sm:$0xff] }
 0x57e   : > { %3786 = vmatpush1.msra.mxu0 %v3171_v7 }
 0x57f   : > { %3787 = vmatprep.subr.mxu0 %v3164_v23  ;;  %v3219_v23 = vld [vmem:[#allocation17 + $0x450] sm:$0xff] }
 0x580   : > { %3788 = vmatpush1.msra.mxu0 %v3163_v24  ;;  %v3008_v24 = vadd.f32 %v3007_v20, %v2792_v49  ;;  %v3372_v49 = vld [vmem:[#allocation17 + $0x918] sm:$0xff]  ;;  %v3118_v20 = vld [vmem:[#allocation17 + $0x128] sm:$0xff] }
 0x581   : > { %3789 = vmatprep.subr.mxu0 %v3156_v28  ;;  %v3212_v28 = vld [vmem:[#allocation17 + $0x418] sm:$0xff] }
 0x582   : > { %3790 = vmatpush1.msra.mxu0 %v3155_v29  ;;  %v3006_v29 = vadd.f32 %v3005_v13, %v2788_v19  ;;  %v3380_v13 = vld [vmem:[#allocation17 + $0x958] sm:$0xff]  ;;  %v3371_v19 = vld [vmem:[#allocation17 + $0x910] sm:$0xff] }
 0x583   : > { %3791 = vmatprep.subr.mxu0 %v3148_v30 }
 0x584   : > { %3792 = vmatpush1.msra.mxu0 %v3147_v31  ;;  %v3211_v31 = vld [vmem:[#allocation17 + $0x410] sm:$0xff] }
 0x585   : > { %3793 = vmatprep.subr.mxu0 %v3140_v33 }
 0x586   : > { %3794 = vmatpush1.msra.mxu0 %v3139_v34 }
 0x587   : > { %3795 = vmatprep.subr.mxu0 %v3132_v36  ;;  %v3206_v36 = vld [vmem:[#allocation17 + $0x3e8] sm:$0xff] }
 0x588   : > { %3796 = vmatpush1.msra.mxu0 %v3131_v37  ;;  %v3452_v37 = vld [vmem:[#allocation17 + $0xb98] sm:$0xff] }
 0x589   : > { %3797 = vmatprep.subr.mxu0 %v3124_v38  ;;  %v3205_v38 = vld [vmem:[#allocation17 + $0x3e0] sm:$0xff] }
 0x58a   : > { %3798 = vmatpush1.msra.mxu0 %v3123_v40  ;;  %v3451_v40 = vld [vmem:[#allocation17 + $0xb90] sm:$0xff] }
 0x58b   : > { %3799 = vmatprep.subr.mxu0 %v3116_v44  ;;  %v3198_v44 = vld [vmem:[#allocation17 + $0x3a8] sm:$0xff] }
 0x58c   : > { %3800 = vmatpush1.msra.mxu0 %v3115_v46  ;;  %v3444_v46 = vld [vmem:[#allocation17 + $0xb58] sm:$0xff] }
 0x58d   : > { %3801 = vmatprep.subr.mxu0 %v3108_v32  ;;  %v3197_v32 = vld [vmem:[#allocation17 + $0x3a0] sm:$0xff] }
 0x58e   : > { %3802 = vmatpush1.msra.mxu0 %v3107_v16  ;;  %v3443_v16 = vld [vmem:[#allocation17 + $0xb50] sm:$0xff] }
 0x58f   : > { %3803 = vmatprep.subr.mxu0 %v3100_v27  ;;  %v3190_v27 = vld [vmem:[#allocation17 + $0x368] sm:$0xff] }
 0x590   : > { %3804 = vmatpush1.msra.mxu0 %v3099_v50  ;;  %v3436_v50 = vld [vmem:[#allocation17 + $0xb18] sm:$0xff] }
 0x591   : > { %3805 = vmatprep.subr.mxu0 %v3092_v51  ;;  %v3189_v51 = vld [vmem:[#allocation17 + $0x360] sm:$0xff] }
 0x592   : > { %3806 = vmatpush1.msra.mxu0 %v3091_v54  ;;  %v3435_v54 = vld [vmem:[#allocation17 + $0xb10] sm:$0xff] }
 0x593   : > { %3807 = vmatprep.subr.mxu0 %v3084_v55  ;;  %v3182_v55 = vld [vmem:[#allocation17 + $0x328] sm:$0xff] }
 0x594   : > { %3808 = vmatpush1.msra.mxu0 %v3083_v57  ;;  %v3428_v57 = vld [vmem:[#allocation17 + $0xad8] sm:$0xff] }
 0x595   : > { %3809 = vmatprep.subr.mxu0 %v3332_v58  ;;  %v3181_v58 = vld [vmem:[#allocation17 + $0x320] sm:$0xff] }
 0x596   : > { %3810 = vmatpush2.msra.mxu0 %v3331_v25  ;;  %v3427_v25 = vld [vmem:[#allocation17 + $0xad0] sm:$0xff] }
 0x597   : > { %3811 = vmatprep.subr.mxu0 %v3324_v59  ;;  %v3174_v59 = vld [vmem:[#allocation17 + $0x2e8] sm:$0xff] }
 0x598   : > { %3812 = vmatpush2.msra.mxu0 %v3323_v60  ;;  %v3420_v60 = vld [vmem:[#allocation17 + $0xa98] sm:$0xff] }
 0x599   : > { %3813 = vmatprep.subr.mxu0 %v3316_v61  ;;  %v3173_v61 = vld [vmem:[#allocation17 + $0x2e0] sm:$0xff] }
 0x59a   : > { %3814 = vmatpush2.msra.mxu0 %v3315_v63  ;;  %v3419_v63 = vld [vmem:[#allocation17 + $0xa90] sm:$0xff] }
 0x59b   : > { %3815 = vmatprep.subr.mxu0 %v3308_v0  ;;  %v3166_v0 = vld [vmem:[#allocation17 + $0x2a8] sm:$0xff] }
 0x59c   : > { %3816 = vmatpush2.msra.mxu0 %v3307_v1  ;;  %v3412_v1 = vld [vmem:[#allocation17 + $0xa58] sm:$0xff] }
 0x59d   : > { %3817 = vmatprep.subr.mxu0 %v3300_v3  ;;  %v3165_v3 = vld [vmem:[#allocation17 + $0x2a0] sm:$0xff] }
 0x59e   : > { %3818 = vmatpush2.msra.mxu0 %v3299_v2  ;;  %v3411_v2 = vld [vmem:[#allocation17 + $0xa50] sm:$0xff] }
 0x59f   : > { %3819 = vmatprep.subr.mxu0 %v3292_v26  ;;  %v3158_v26 = vld [vmem:[#allocation17 + $0x268] sm:$0xff] }
 0x5a0   : > { %3820 = vmatpush2.msra.mxu0 %v3291_v4  ;;  %v3404_v4 = vld [vmem:[#allocation17 + $0xa18] sm:$0xff] }
 0x5a1   : > { %3821 = vmatprep.subr.mxu0 %v3284_v42  ;;  %v3157_v42 = vld [vmem:[#allocation17 + $0x260] sm:$0xff] }
 0x5a2   : > { %3822 = vmatpush2.msra.mxu0 %v3283_v5  ;;  %v3403_v5 = vld [vmem:[#allocation17 + $0xa10] sm:$0xff] }
 0x5a3   : > { %3823 = vmatprep.subr.mxu0 %v3276_v45  ;;  %v3150_v45 = vld [vmem:[#allocation17 + $0x228] sm:$0xff] }
 0x5a4   : > { %3824 = vmatpush2.msra.mxu0 %v3275_v52  ;;  %v3396_v52 = vld [vmem:[#allocation17 + $0x9d8] sm:$0xff] }
 0x5a5   : > { %3825 = vmatprep.subr.mxu0 %v3268_v6  ;;  %v3149_v6 = vld [vmem:[#allocation17 + $0x220] sm:$0xff] }
 0x5a6   : > { %3826 = vmatpush2.msra.mxu0 %v3267_v8  ;;  %v3395_v8 = vld [vmem:[#allocation17 + $0x9d0] sm:$0xff] }
 0x5a7   : > { %3827 = vmatprep.subr.mxu0 %v3260_v10  ;;  %v3142_v10 = vld [vmem:[#allocation17 + $0x1e8] sm:$0xff] }
 0x5a8   : > { %3828 = vmatpush2.msra.mxu0 %v3259_v11  ;;  %v3388_v11 = vld [vmem:[#allocation17 + $0x998] sm:$0xff] }
 0x5a9   : > { %3829 = vmatprep.subr.mxu0 %v3252_v35  ;;  %v3141_v35 = vld [vmem:[#allocation17 + $0x1e0] sm:$0xff] }
 0x5aa   : > { %3830 = vmatpush2.msra.mxu0 %v3251_v39  ;;  %v3387_v39 = vld [vmem:[#allocation17 + $0x990] sm:$0xff] }
 0x5ab   : > { %3831 = vmatprep.subr.mxu0 %v3244_v12  ;;  %v3134_v12 = vld [vmem:[#allocation17 + $0x1a8] sm:$0xff] }
 0x5ac   : > { %3832 = vmatpush2.msra.mxu0 %v3243_v56  ;;  %v3133_v56 = vld [vmem:[#allocation17 + $0x1a0] sm:$0xff] }
 0x5ad   : > { %3833 = vmatprep.subr.mxu0 %v3236_v15  ;;  %v3379_v15 = vld [vmem:[#allocation17 + $0x950] sm:$0xff] }
 0x5ae   : > { %3834 = vmatpush2.msra.mxu0 %v3235_v18  ;;  %v3126_v18 = vld [vmem:[#allocation17 + $0x168] sm:$0xff] }
 0x5af   : > { %v3076_v7 = vpop.f32.mrf.mxu1  ;;  %3835 = vmatprep.subr.mxu0 %v3228_v53  ;;  %v3125_v53 = vld [vmem:[#allocation17 + $0x160] sm:$0xff] }
 0x5b0   : > { %3836 = vmatpush2.msra.mxu0 %v3227_v21  ;;  %v5849_v34 = vadd.f32 %v3076_v7, %v3006_v29  ;;  %v3364_v21 = vld [vmem:[#allocation17 + $0x8d8] sm:$0xff]  ;;  %v3363_v7 = vld [vmem:[#allocation17 + $0x8d0] sm:$0xff] }
 0x5b1   : > { %v3078_v30 = vpop.f32.mrf.mxu1  ;;  %3837 = vmatprep.subr.mxu0 %v3220_v22  ;;  %v3117_v22 = vld [vmem:[#allocation17 + $0x120] sm:$0xff]  ;;  %v3355_v29 = vld [vmem:[#allocation17 + $0x890] sm:$0xff] }
 0x5b2   : > { %v5847_v33 = vadd.f32 %v3078_v30, %v3008_v24  ;;  %3838 = vmatpush2.msra.mxu0 %v3219_v23  ;;  %v3110_v23 = vld [vmem:[#allocation17 + $0xe8] sm:$0xff]  ;;  %v3356_v24 = vld [vmem:[#allocation17 + $0x898] sm:$0xff] }
 0x5b3   : > { %3839 = vmatprep.subr.mxu0 %v3212_v28  ;;  %v3109_v28 = vld [vmem:[#allocation17 + $0xe0] sm:$0xff]  ;;  %v3102_v30 = vld [vmem:[#allocation17 + $0xa8] sm:$0xff] }
 0x5b4   : > { %3770 = vmatprep.mubr.f32.mxu1 %v5847_v33  ;;  %3840 = vmatpush2.msra.mxu0 %v3211_v31  ;;  %v3348_v31 = vld [vmem:[#allocation17 + $0x858] sm:$0xff] }
 0x5b5   : > { %3771 = vmatmul.mubr.f32.vlgmr.msra.gmra.mxu1 %v5849_v34  ;;  %3842 = vmatmul.mubr.f32.vlgmr.msra.gmra.mxu0 %v5838_v14 }
 0x5b6   : > { %3849 = vmatpush1.msra.mxu1 %v3459_v9  ;;  %3919 = vmatprep.subr.mxu0 %v3206_v36  ;;  %v3101_v9 = vld [vmem:[#allocation17 + $0xa0] sm:$0xff]  ;;  %v3347_v36 = vld [vmem:[#allocation17 + $0x850] sm:$0xff] }
 0x5b7   : > { %3850 = vmatprep.subr.mxu1 %v3452_v37  ;;  %3912 = vmatprep.mubr.f32.mxu1 %v5847_v33  ;;  %v3094_v37 = vld [vmem:[#allocation17 + $0x68] sm:$0xff] }
 0x5b8   : > { %3920 = vmatpush1.msra.mxu0 %v3205_v38  ;;  %3983 = vmatprep.mubr.f32.mxu0 %v5836_v62  ;;  %v3340_v38 = vld [vmem:[#allocation17 + $0x818] sm:$0xff] }
 0x5b9   : > { %3851 = vmatpush1.msra.mxu1 %v3451_v40  ;;  %3921 = vmatprep.subr.mxu0 %v3198_v44  ;;  %v3093_v40 = vld [vmem:[#allocation17 + $0x60] sm:$0xff]  ;;  %v3339_v44 = vld [vmem:[#allocation17 + $0x810] sm:$0xff] }
 0x5ba   : > { %3852 = vmatprep.subr.mxu1 %v3444_v46  ;;  %3922 = vmatpush1.msra.mxu0 %v3197_v32  ;;  %v3086_v46 = vld [vmem:[#allocation17 + $0x28] sm:$0xff]  ;;  %v3588_v32 = vld [vmem:[#allocation17 + $0xfd8] sm:$0xff] }
 0x5bb   : > { %3853 = vmatpush1.msra.mxu1 %v3443_v16  ;;  %3923 = vmatprep.subr.mxu0 %v3190_v27  ;;  %v3085_v16 = vld [vmem:[#allocation17 + $0x20] sm:$0xff]  ;;  %v3587_v27 = vld [vmem:[#allocation17 + $0xfd0] sm:$0xff] }
 0x5bc   : > { %3854 = vmatprep.subr.mxu1 %v3436_v50  ;;  %3924 = vmatpush1.msra.mxu0 %v3189_v51  ;;  %v3334_v50 = vld [vmem:[#allocation17 + $0x7e8] sm:$0xff]  ;;  %v3580_v51 = vld [vmem:[#allocation17 + $0xf98] sm:$0xff] }
 0x5bd   : > { %3855 = vmatpush1.msra.mxu1 %v3435_v54  ;;  %3925 = vmatprep.subr.mxu0 %v3182_v55  ;;  %v3333_v54 = vld [vmem:[#allocation17 + $0x7e0] sm:$0xff]  ;;  %v3579_v55 = vld [vmem:[#allocation17 + $0xf90] sm:$0xff] }
 0x5be   : > { %3856 = vmatprep.subr.mxu1 %v3428_v57  ;;  %3926 = vmatpush1.msra.mxu0 %v3181_v58  ;;  %v3326_v57 = vld [vmem:[#allocation17 + $0x7a8] sm:$0xff]  ;;  %v3572_v58 = vld [vmem:[#allocation17 + $0xf58] sm:$0xff] }
 0x5bf   : > { %3857 = vmatpush1.msra.mxu1 %v3427_v25  ;;  %3927 = vmatprep.subr.mxu0 %v3174_v59  ;;  %v3325_v25 = vld [vmem:[#allocation17 + $0x7a0] sm:$0xff]  ;;  %v3571_v59 = vld [vmem:[#allocation17 + $0xf50] sm:$0xff] }
 0x5c0   : > { %3858 = vmatprep.subr.mxu1 %v3420_v60  ;;  %3928 = vmatpush1.msra.mxu0 %v3173_v61  ;;  %v3318_v60 = vld [vmem:[#allocation17 + $0x768] sm:$0xff]  ;;  %v3564_v61 = vld [vmem:[#allocation17 + $0xf18] sm:$0xff] }
 0x5c1   : > { %3859 = vmatpush1.msra.mxu1 %v3419_v63  ;;  %3929 = vmatprep.subr.mxu0 %v3166_v0  ;;  %v3317_v63 = vld [vmem:[#allocation17 + $0x760] sm:$0xff]  ;;  %v3563_v0 = vld [vmem:[#allocation17 + $0xf10] sm:$0xff] }
 0x5c2   : > { %3860 = vmatprep.subr.mxu1 %v3412_v1  ;;  %3930 = vmatpush1.msra.mxu0 %v3165_v3  ;;  %v3310_v1 = vld [vmem:[#allocation17 + $0x728] sm:$0xff]  ;;  %v3556_v3 = vld [vmem:[#allocation17 + $0xed8] sm:$0xff] }
 0x5c3   : > { %3861 = vmatpush1.msra.mxu1 %v3411_v2  ;;  %3931 = vmatprep.subr.mxu0 %v3158_v26  ;;  %v3309_v2 = vld [vmem:[#allocation17 + $0x720] sm:$0xff]  ;;  %v3555_v26 = vld [vmem:[#allocation17 + $0xed0] sm:$0xff] }
 0x5c4   : > { %3862 = vmatprep.subr.mxu1 %v3404_v4  ;;  %3932 = vmatpush1.msra.mxu0 %v3157_v42  ;;  %v3302_v4 = vld [vmem:[#allocation17 + $0x6e8] sm:$0xff]  ;;  %v3548_v42 = vld [vmem:[#allocation17 + $0xe98] sm:$0xff] }
 0x5c5   : > { %3863 = vmatpush1.msra.mxu1 %v3403_v5  ;;  %3933 = vmatprep.subr.mxu0 %v3150_v45  ;;  %v3301_v5 = vld [vmem:[#allocation17 + $0x6e0] sm:$0xff]  ;;  %v3547_v45 = vld [vmem:[#allocation17 + $0xe90] sm:$0xff] }
 0x5c6   : > { %3864 = vmatprep.subr.mxu1 %v3396_v52  ;;  %3934 = vmatpush1.msra.mxu0 %v3149_v6  ;;  %v3294_v52 = vld [vmem:[#allocation17 + $0x6a8] sm:$0xff]  ;;  %v3540_v6 = vld [vmem:[#allocation17 + $0xe58] sm:$0xff] }
 0x5c7   : > { %3865 = vmatpush1.msra.mxu1 %v3395_v8  ;;  %3935 = vmatprep.subr.mxu0 %v3142_v10  ;;  %v3293_v8 = vld [vmem:[#allocation17 + $0x6a0] sm:$0xff]  ;;  %v3539_v10 = vld [vmem:[#allocation17 + $0xe50] sm:$0xff] }
 0x5c8   : > { %3866 = vmatprep.subr.mxu1 %v3388_v11  ;;  %3936 = vmatpush1.msra.mxu0 %v3141_v35  ;;  %v3286_v11 = vld [vmem:[#allocation17 + $0x668] sm:$0xff]  ;;  %v3532_v35 = vld [vmem:[#allocation17 + $0xe18] sm:$0xff] }
 0x5c9   : > { %3867 = vmatpush1.msra.mxu1 %v3387_v39  ;;  %3937 = vmatprep.subr.mxu0 %v3134_v12  ;;  %v3285_v39 = vld [vmem:[#allocation17 + $0x660] sm:$0xff]  ;;  %v3531_v12 = vld [vmem:[#allocation17 + $0xe10] sm:$0xff] }
 0x5ca   : > { %3868 = vmatprep.subr.mxu1 %v3380_v13  ;;  %3938 = vmatpush1.msra.mxu0 %v3133_v56  ;;  %v3278_v13 = vld [vmem:[#allocation17 + $0x628] sm:$0xff]  ;;  %v3524_v56 = vld [vmem:[#allocation17 + $0xdd8] sm:$0xff] }
 0x5cb   : > { %3869 = vmatpush1.msra.mxu1 %v3379_v15  ;;  %3939 = vmatprep.subr.mxu0 %v3126_v18  ;;  %v3277_v15 = vld [vmem:[#allocation17 + $0x620] sm:$0xff]  ;;  %v3523_v18 = vld [vmem:[#allocation17 + $0xdd0] sm:$0xff] }
 0x5cc   : > { %3870 = vmatprep.subr.mxu1 %v3372_v49  ;;  %3940 = vmatpush1.msra.mxu0 %v3125_v53  ;;  %v3270_v49 = vld [vmem:[#allocation17 + $0x5e8] sm:$0xff]  ;;  %v3516_v53 = vld [vmem:[#allocation17 + $0xd98] sm:$0xff] }
 0x5cd   : > { %3871 = vmatpush1.msra.mxu1 %v3371_v19  ;;  %3941 = vmatprep.subr.mxu0 %v3118_v20  ;;  %v3269_v19 = vld [vmem:[#allocation17 + $0x5e0] sm:$0xff]  ;;  %v3515_v20 = vld [vmem:[#allocation17 + $0xd90] sm:$0xff] }
 0x5ce   : > { %3872 = vmatprep.subr.mxu1 %v3364_v21  ;;  %3942 = vmatpush1.msra.mxu0 %v3117_v22  ;;  %v3262_v21 = vld [vmem:[#allocation17 + $0x5a8] sm:$0xff]  ;;  %v3508_v22 = vld [vmem:[#allocation17 + $0xd58] sm:$0xff] }
 0x5cf   : > { %3873 = vmatpush1.msra.mxu1 %v3363_v7  ;;  %3943 = vmatprep.subr.mxu0 %v3110_v23  ;;  %v3261_v7 = vld [vmem:[#allocation17 + $0x5a0] sm:$0xff]  ;;  %v3507_v23 = vld [vmem:[#allocation17 + $0xd50] sm:$0xff] }
 0x5d0   : > { %3874 = vmatprep.subr.mxu1 %v3356_v24  ;;  %3944 = vmatpush1.msra.mxu0 %v3109_v28  ;;  %v3254_v24 = vld [vmem:[#allocation17 + $0x568] sm:$0xff]  ;;  %v3500_v28 = vld [vmem:[#allocation17 + $0xd18] sm:$0xff] }
 0x5d1   : > { %3875 = vmatpush1.msra.mxu1 %v3355_v29  ;;  %3945 = vmatprep.subr.mxu0 %v3102_v30  ;;  %v3253_v29 = vld [vmem:[#allocation17 + $0x560] sm:$0xff]  ;;  %v3499_v30 = vld [vmem:[#allocation17 + $0xd10] sm:$0xff] }
 0x5d2   : > { %3876 = vmatprep.subr.mxu1 %v3348_v31  ;;  %3946 = vmatpush1.msra.mxu0 %v3101_v9  ;;  %v3246_v31 = vld [vmem:[#allocation17 + $0x528] sm:$0xff]  ;;  %v3492_v9 = vld [vmem:[#allocation17 + $0xcd8] sm:$0xff] }
 0x5d3   : > { %3877 = vmatpush1.msra.mxu1 %v3347_v36  ;;  %3947 = vmatprep.subr.mxu0 %v3094_v37  ;;  %v3245_v36 = vld [vmem:[#allocation17 + $0x520] sm:$0xff]  ;;  %v3491_v37 = vld [vmem:[#allocation17 + $0xcd0] sm:$0xff] }
 0x5d4   : > { %3878 = vmatprep.subr.mxu1 %v3340_v38  ;;  %3948 = vmatpush1.msra.mxu0 %v3093_v40  ;;  %v3238_v38 = vld [vmem:[#allocation17 + $0x4e8] sm:$0xff]  ;;  %v3484_v40 = vld [vmem:[#allocation17 + $0xc98] sm:$0xff] }
 0x5d5   : > { %3879 = vmatpush1.msra.mxu1 %v3339_v44  ;;  %3949 = vmatprep.subr.mxu0 %v3086_v46  ;;  %v3237_v44 = vld [vmem:[#allocation17 + $0x4e0] sm:$0xff]  ;;  %v3483_v46 = vld [vmem:[#allocation17 + $0xc90] sm:$0xff] }
 0x5d6   : > { %3880 = vmatprep.subr.mxu1 %v3588_v32  ;;  %3950 = vmatpush1.msra.mxu0 %v3085_v16  ;;  %v3230_v32 = vld [vmem:[#allocation17 + $0x4a8] sm:$0xff]  ;;  %v3476_v16 = vld [vmem:[#allocation17 + $0xc58] sm:$0xff] }
 0x5d7   : > { %3881 = vmatpush2.msra.mxu1 %v3587_v27  ;;  %3951 = vmatprep.subr.mxu0 %v3334_v50  ;;  %v3229_v27 = vld [vmem:[#allocation17 + $0x4a0] sm:$0xff]  ;;  %v3475_v50 = vld [vmem:[#allocation17 + $0xc50] sm:$0xff] }
 0x5d8   : > { %3882 = vmatprep.subr.mxu1 %v3580_v51  ;;  %3952 = vmatpush2.msra.mxu0 %v3333_v54  ;;  %v3222_v51 = vld [vmem:[#allocation17 + $0x468] sm:$0xff]  ;;  %v3468_v54 = vld [vmem:[#allocation17 + $0xc18] sm:$0xff] }
 0x5d9   : > { %3883 = vmatpush2.msra.mxu1 %v3579_v55  ;;  %3953 = vmatprep.subr.mxu0 %v3326_v57  ;;  %v3221_v55 = vld [vmem:[#allocation17 + $0x460] sm:$0xff]  ;;  %v3467_v57 = vld [vmem:[#allocation17 + $0xc10] sm:$0xff] }
 0x5da   : > { %3884 = vmatprep.subr.mxu1 %v3572_v58  ;;  %3954 = vmatpush2.msra.mxu0 %v3325_v25  ;;  %v3214_v58 = vld [vmem:[#allocation17 + $0x428] sm:$0xff]  ;;  %v3213_v25 = vld [vmem:[#allocation17 + $0x420] sm:$0xff] }
 0x5db   : > { %3885 = vmatpush2.msra.mxu1 %v3571_v59  ;;  %3955 = vmatprep.subr.mxu0 %v3318_v60  ;;  %v3462_v59 = vld [vmem:[#allocation17 + $0xbe8] sm:$0xff]  ;;  %v3461_v60 = vld [vmem:[#allocation17 + $0xbe0] sm:$0xff] }
 0x5dc   : > { %3886 = vmatprep.subr.mxu1 %v3564_v61  ;;  %3956 = vmatpush2.msra.mxu0 %v3317_v63  ;;  %v3208_v61 = vld [vmem:[#allocation17 + $0x3f8] sm:$0xff]  ;;  %v3454_v63 = vld [vmem:[#allocation17 + $0xba8] sm:$0xff] }
 0x5dd   : > { %3887 = vmatpush2.msra.mxu1 %v3563_v0  ;;  %3957 = vmatprep.subr.mxu0 %v3310_v1  ;;  %v3207_v0 = vld [vmem:[#allocation17 + $0x3f0] sm:$0xff]  ;;  %v3453_v1 = vld [vmem:[#allocation17 + $0xba0] sm:$0xff] }
 0x5de   : > { %3888 = vmatprep.subr.mxu1 %v3556_v3  ;;  %3958 = vmatpush2.msra.mxu0 %v3309_v2  ;;  %v3200_v3 = vld [vmem:[#allocation17 + $0x3b8] sm:$0xff]  ;;  %v3446_v2 = vld [vmem:[#allocation17 + $0xb68] sm:$0xff] }
 0x5df   : > { %3889 = vmatpush2.msra.mxu1 %v3555_v26  ;;  %3959 = vmatprep.subr.mxu0 %v3302_v4  ;;  %v3199_v26 = vld [vmem:[#allocation17 + $0x3b0] sm:$0xff]  ;;  %v3445_v4 = vld [vmem:[#allocation17 + $0xb60] sm:$0xff] }
 0x5e0   : > { %3890 = vmatprep.subr.mxu1 %v3548_v42  ;;  %3960 = vmatpush2.msra.mxu0 %v3301_v5  ;;  %v3192_v42 = vld [vmem:[#allocation17 + $0x378] sm:$0xff]  ;;  %v3438_v5 = vld [vmem:[#allocation17 + $0xb28] sm:$0xff] }
 0x5e1   : > { %3891 = vmatpush2.msra.mxu1 %v3547_v45  ;;  %3961 = vmatprep.subr.mxu0 %v3294_v52  ;;  %v3191_v45 = vld [vmem:[#allocation17 + $0x370] sm:$0xff]  ;;  %v3437_v52 = vld [vmem:[#allocation17 + $0xb20] sm:$0xff] }
 0x5e2   : > { %3892 = vmatprep.subr.mxu1 %v3540_v6  ;;  %3962 = vmatpush2.msra.mxu0 %v3293_v8  ;;  %v3184_v6 = vld [vmem:[#allocation17 + $0x338] sm:$0xff]  ;;  %v3430_v8 = vld [vmem:[#allocation17 + $0xae8] sm:$0xff] }
 0x5e3   : > { %3893 = vmatpush2.msra.mxu1 %v3539_v10  ;;  %3963 = vmatprep.subr.mxu0 %v3286_v11  ;;  %v3183_v10 = vld [vmem:[#allocation17 + $0x330] sm:$0xff]  ;;  %v3429_v11 = vld [vmem:[#allocation17 + $0xae0] sm:$0xff] }
 0x5e4   : > { %3894 = vmatprep.subr.mxu1 %v3532_v35  ;;  %3964 = vmatpush2.msra.mxu0 %v3285_v39  ;;  %v3176_v35 = vld [vmem:[#allocation17 + $0x2f8] sm:$0xff]  ;;  %v3175_v39 = vld [vmem:[#allocation17 + $0x2f0] sm:$0xff] }
 0x5e5   : > { %3895 = vmatpush2.msra.mxu1 %v3531_v12  ;;  %3965 = vmatprep.subr.mxu0 %v3278_v13  ;;  %v3421_v12 = vld [vmem:[#allocation17 + $0xaa0] sm:$0xff]  ;;  %v3168_v13 = vld [vmem:[#allocation17 + $0x2b8] sm:$0xff] }
 0x5e6   : > { %3896 = vmatprep.subr.mxu1 %v3524_v56  ;;  %3966 = vmatpush2.msra.mxu0 %v3277_v15  ;;  %v3414_v56 = vld [vmem:[#allocation17 + $0xa68] sm:$0xff]  ;;  %v3167_v15 = vld [vmem:[#allocation17 + $0x2b0] sm:$0xff] }
 0x5e7   : > { %3897 = vmatpush2.msra.mxu1 %v3523_v18  ;;  %3967 = vmatprep.subr.mxu0 %v3270_v49  ;;  %v3413_v18 = vld [vmem:[#allocation17 + $0xa60] sm:$0xff]  ;;  %v3160_v49 = vld [vmem:[#allocation17 + $0x278] sm:$0xff] }
 0x5e8   : > { %3898 = vmatprep.subr.mxu1 %v3516_v53  ;;  %3968 = vmatpush2.msra.mxu0 %v3269_v19  ;;  %v3406_v53 = vld [vmem:[#allocation17 + $0xa28] sm:$0xff]  ;;  %v3159_v19 = vld [vmem:[#allocation17 + $0x270] sm:$0xff] }
 0x5e9   : > { %3899 = vmatpush2.msra.mxu1 %v3515_v20  ;;  %3969 = vmatprep.subr.mxu0 %v3262_v21  ;;  %v3405_v20 = vld [vmem:[#allocation17 + $0xa20] sm:$0xff]  ;;  %v3152_v21 = vld [vmem:[#allocation17 + $0x238] sm:$0xff] }
 0x5ea   : > { %3900 = vmatprep.subr.mxu1 %v3508_v22  ;;  %3970 = vmatpush2.msra.mxu0 %v3261_v7  ;;  %v3398_v22 = vld [vmem:[#allocation17 + $0x9e8] sm:$0xff]  ;;  %v3151_v7 = vld [vmem:[#allocation17 + $0x230] sm:$0xff] }
 0x5eb   : > { %3901 = vmatpush2.msra.mxu1 %v3507_v23  ;;  %3971 = vmatprep.subr.mxu0 %v3254_v24  ;;  %v3397_v23 = vld [vmem:[#allocation17 + $0x9e0] sm:$0xff]  ;;  %v3144_v24 = vld [vmem:[#allocation17 + $0x1f8] sm:$0xff] }
 0x5ec   : > { %3902 = vmatprep.subr.mxu1 %v3500_v28  ;;  %3972 = vmatpush2.msra.mxu0 %v3253_v29  ;;  %v3390_v28 = vld [vmem:[#allocation17 + $0x9a8] sm:$0xff]  ;;  %v3143_v29 = vld [vmem:[#allocation17 + $0x1f0] sm:$0xff] }
 0x5ed   : > { %3903 = vmatpush2.msra.mxu1 %v3499_v30  ;;  %3973 = vmatprep.subr.mxu0 %v3246_v31  ;;  %v3389_v30 = vld [vmem:[#allocation17 + $0x9a0] sm:$0xff]  ;;  %v3136_v31 = vld [vmem:[#allocation17 + $0x1b8] sm:$0xff] }
 0x5ee   : > { %3904 = vmatprep.subr.mxu1 %v3492_v9  ;;  %3974 = vmatpush2.msra.mxu0 %v3245_v36  ;;  %v3382_v9 = vld [vmem:[#allocation17 + $0x968] sm:$0xff]  ;;  %v3135_v36 = vld [vmem:[#allocation17 + $0x1b0] sm:$0xff] }
 0x5ef   : > { %3905 = vmatpush2.msra.mxu1 %v3491_v37  ;;  %3975 = vmatprep.subr.mxu0 %v3238_v38  ;;  %v3381_v37 = vld [vmem:[#allocation17 + $0x960] sm:$0xff]  ;;  %v3128_v38 = vld [vmem:[#allocation17 + $0x178] sm:$0xff] }
 0x5f0   : > { %3906 = vmatprep.subr.mxu1 %v3484_v40  ;;  %3976 = vmatpush2.msra.mxu0 %v3237_v44  ;;  %v3374_v40 = vld [vmem:[#allocation17 + $0x928] sm:$0xff]  ;;  %v3127_v44 = vld [vmem:[#allocation17 + $0x170] sm:$0xff] }
 0x5f1   : > { %3907 = vmatpush2.msra.mxu1 %v3483_v46  ;;  %3977 = vmatprep.subr.mxu0 %v3230_v32  ;;  %v3373_v46 = vld [vmem:[#allocation17 + $0x920] sm:$0xff]  ;;  %v3120_v32 = vld [vmem:[#allocation17 + $0x138] sm:$0xff] }
 0x5f2   : > { %3908 = vmatprep.subr.mxu1 %v3476_v16  ;;  %3978 = vmatpush2.msra.mxu0 %v3229_v27  ;;  %v3366_v16 = vld [vmem:[#allocation17 + $0x8e8] sm:$0xff]  ;;  %v3119_v27 = vld [vmem:[#allocation17 + $0x130] sm:$0xff] }
 0x5f3   : > { %3909 = vmatpush2.msra.mxu1 %v3475_v50  ;;  %3979 = vmatprep.subr.mxu0 %v3222_v51  ;;  %v3365_v50 = vld [vmem:[#allocation17 + $0x8e0] sm:$0xff]  ;;  %v3112_v51 = vld [vmem:[#allocation17 + $0xf8] sm:$0xff] }
 0x5f4   : > { %3910 = vmatprep.subr.mxu1 %v3468_v54  ;;  %3980 = vmatpush2.msra.mxu0 %v3221_v55  ;;  %v3358_v54 = vld [vmem:[#allocation17 + $0x8a8] sm:$0xff]  ;;  %v3111_v55 = vld [vmem:[#allocation17 + $0xf0] sm:$0xff] }
 0x5f5   : > { %3911 = vmatpush2.msra.mxu1 %v3467_v57  ;;  %3981 = vmatprep.subr.mxu0 %v3214_v58  ;;  %v3357_v57 = vld [vmem:[#allocation17 + $0x8a0] sm:$0xff]  ;;  %v3104_v58 = vld [vmem:[#allocation17 + $0xb8] sm:$0xff] }
 0x5f6   : > { %3913 = vmatmul.mubr.f32.vlgmr.msra.gmra.mxu1 %v5849_v34  ;;  %3982 = vmatpush2.msra.mxu0 %v3213_v25  ;;  %v3350_v25 = vld [vmem:[#allocation17 + $0x868] sm:$0xff] }
 0x5f7   : > { %3990 = vmatprep.subr.mxu1 %v3462_v59  ;;  %3984 = vmatmul.mubr.f32.vlgmr.msra.gmra.mxu0 %v5838_v14  ;;  %v3103_v59 = vld [vmem:[#allocation17 + $0xb0] sm:$0xff] }
 0x5f8   : > { %3991 = vmatpush1.msra.mxu1 %v3461_v60  ;;  %4054 = vmatprep.mubr.f32.mxu1 %v5847_v33  ;;  %v3349_v60 = vld [vmem:[#allocation17 + $0x860] sm:$0xff] }
 0x5f9   : > { %4061 = vmatprep.subr.mxu0 %v3208_v61  ;;  %3992 = vmatprep.subr.mxu1 %v3454_v63  ;;  %v3096_v61 = vld [vmem:[#allocation17 + $0x78] sm:$0xff]  ;;  %v3342_v63 = vld [vmem:[#allocation17 + $0x828] sm:$0xff] }
 0x5fa   : > { %4062 = vmatpush1.msra.mxu0 %v3207_v0  ;;  %4125 = vmatprep.mubr.f32.mxu0 %v5836_v62  ;;  %v3422_v62 = vld [vmem:[#allocation17 + $0xaa8] sm:$0xff]  ;;  %v3095_v0 = vld [vmem:[#allocation17 + $0x70] sm:$0xff] }
 0x5fb   : > { %3993 = vmatpush1.msra.mxu1 %v3453_v1  ;;  %4063 = vmatprep.subr.mxu0 %v3200_v3  ;;  %v3341_v1 = vld [vmem:[#allocation17 + $0x820] sm:$0xff]  ;;  %v3088_v3 = vld [vmem:[#allocation17 + $0x38] sm:$0xff] }
 0x5fc   : > { %3994 = vmatprep.subr.mxu1 %v3446_v2  ;;  %4064 = vmatpush1.msra.mxu0 %v3199_v26  ;;  %v3590_v2 = vld [vmem:[#allocation17 + $0xfe8] sm:$0xff]  ;;  %v3087_v26 = vld [vmem:[#allocation17 + $0x30] sm:$0xff] }
 0x5fd   : > { %3995 = vmatpush1.msra.mxu1 %v3445_v4  ;;  %4065 = vmatprep.subr.mxu0 %v3192_v42  ;;  %v3589_v4 = vld [vmem:[#allocation17 + $0xfe0] sm:$0xff]  ;;  %v3336_v42 = vld [vmem:[#allocation17 + $0x7f8] sm:$0xff] }
 0x5fe   : > { %3996 = vmatprep.subr.mxu1 %v3438_v5  ;;  %4066 = vmatpush1.msra.mxu0 %v3191_v45  ;;  %v3582_v5 = vld [vmem:[#allocation17 + $0xfa8] sm:$0xff]  ;;  %v3335_v45 = vld [vmem:[#allocation17 + $0x7f0] sm:$0xff] }
 0x5ff   : > { %3997 = vmatpush1.msra.mxu1 %v3437_v52  ;;  %4067 = vmatprep.subr.mxu0 %v3184_v6  ;;  %v3581_v52 = vld [vmem:[#allocation17 + $0xfa0] sm:$0xff]  ;;  %v3328_v6 = vld [vmem:[#allocation17 + $0x7b8] sm:$0xff] }
 0x600   : > { %3998 = vmatprep.subr.mxu1 %v3430_v8  ;;  %4068 = vmatpush1.msra.mxu0 %v3183_v10  ;;  %v3574_v8 = vld [vmem:[#allocation17 + $0xf68] sm:$0xff]  ;;  %v3327_v10 = vld [vmem:[#allocation17 + $0x7b0] sm:$0xff] }
 0x601   : > { %3999 = vmatpush1.msra.mxu1 %v3429_v11  ;;  %4069 = vmatprep.subr.mxu0 %v3176_v35  ;;  %v3573_v11 = vld [vmem:[#allocation17 + $0xf60] sm:$0xff]  ;;  %v3320_v35 = vld [vmem:[#allocation17 + $0x778] sm:$0xff] }
 0x602   : > { %4000 = vmatprep.subr.mxu1 %v3422_v62  ;;  %4070 = vmatpush1.msra.mxu0 %v3175_v39  ;;  %v3566_v62 = vld [vmem:[#allocation17 + $0xf28] sm:$0xff]  ;;  %v3319_v39 = vld [vmem:[#allocation17 + $0x770] sm:$0xff] }
 0x603   : > { %4001 = vmatpush1.msra.mxu1 %v3421_v12  ;;  %4071 = vmatprep.subr.mxu0 %v3168_v13  ;;  %v3565_v12 = vld [vmem:[#allocation17 + $0xf20] sm:$0xff]  ;;  %v3312_v13 = vld [vmem:[#allocation17 + $0x738] sm:$0xff] }
 0x604   : > { %4002 = vmatprep.subr.mxu1 %v3414_v56  ;;  %4072 = vmatpush1.msra.mxu0 %v3167_v15  ;;  %v3558_v56 = vld [vmem:[#allocation17 + $0xee8] sm:$0xff]  ;;  %v3311_v15 = vld [vmem:[#allocation17 + $0x730] sm:$0xff] }
 0x605   : > { %4003 = vmatpush1.msra.mxu1 %v3413_v18  ;;  %4073 = vmatprep.subr.mxu0 %v3160_v49  ;;  %v3557_v18 = vld [vmem:[#allocation17 + $0xee0] sm:$0xff]  ;;  %v3304_v49 = vld [vmem:[#allocation17 + $0x6f8] sm:$0xff] }
 0x606   : > { %4004 = vmatprep.subr.mxu1 %v3406_v53  ;;  %4074 = vmatpush1.msra.mxu0 %v3159_v19  ;;  %v3550_v53 = vld [vmem:[#allocation17 + $0xea8] sm:$0xff]  ;;  %v3303_v19 = vld [vmem:[#allocation17 + $0x6f0] sm:$0xff] }
 0x607   : > { %4005 = vmatpush1.msra.mxu1 %v3405_v20  ;;  %4075 = vmatprep.subr.mxu0 %v3152_v21  ;;  %v3549_v20 = vld [vmem:[#allocation17 + $0xea0] sm:$0xff]  ;;  %v3296_v21 = vld [vmem:[#allocation17 + $0x6b8] sm:$0xff] }
 0x608   : > { %4006 = vmatprep.subr.mxu1 %v3398_v22  ;;  %4076 = vmatpush1.msra.mxu0 %v3151_v7  ;;  %v3542_v22 = vld [vmem:[#allocation17 + $0xe68] sm:$0xff]  ;;  %v3295_v7 = vld [vmem:[#allocation17 + $0x6b0] sm:$0xff] }
 0x609   : > { %4007 = vmatpush1.msra.mxu1 %v3397_v23  ;;  %4077 = vmatprep.subr.mxu0 %v3144_v24  ;;  %v3541_v23 = vld [vmem:[#allocation17 + $0xe60] sm:$0xff]  ;;  %v3288_v24 = vld [vmem:[#allocation17 + $0x678] sm:$0xff] }
 0x60a   : > { %4008 = vmatprep.subr.mxu1 %v3390_v28  ;;  %4078 = vmatpush1.msra.mxu0 %v3143_v29  ;;  %v3534_v28 = vld [vmem:[#allocation17 + $0xe28] sm:$0xff]  ;;  %v3287_v29 = vld [vmem:[#allocation17 + $0x670] sm:$0xff] }
 0x60b   : > { %4009 = vmatpush1.msra.mxu1 %v3389_v30  ;;  %4079 = vmatprep.subr.mxu0 %v3136_v31  ;;  %v3533_v30 = vld [vmem:[#allocation17 + $0xe20] sm:$0xff]  ;;  %v3280_v31 = vld [vmem:[#allocation17 + $0x638] sm:$0xff] }
 0x60c   : > { %4010 = vmatprep.subr.mxu1 %v3382_v9  ;;  %4080 = vmatpush1.msra.mxu0 %v3135_v36  ;;  %v3526_v9 = vld [vmem:[#allocation17 + $0xde8] sm:$0xff]  ;;  %v3279_v36 = vld [vmem:[#allocation17 + $0x630] sm:$0xff] }
 0x60d   : > { %4011 = vmatpush1.msra.mxu1 %v3381_v37  ;;  %4081 = vmatprep.subr.mxu0 %v3128_v38  ;;  %v3525_v37 = vld [vmem:[#allocation17 + $0xde0] sm:$0xff]  ;;  %v3272_v38 = vld [vmem:[#allocation17 + $0x5f8] sm:$0xff] }
 0x60e   : > { %4012 = vmatprep.subr.mxu1 %v3374_v40  ;;  %4082 = vmatpush1.msra.mxu0 %v3127_v44  ;;  %v3518_v40 = vld [vmem:[#allocation17 + $0xda8] sm:$0xff]  ;;  %v3271_v44 = vld [vmem:[#allocation17 + $0x5f0] sm:$0xff] }
 0x60f   : > { %4013 = vmatpush1.msra.mxu1 %v3373_v46  ;;  %4083 = vmatprep.subr.mxu0 %v3120_v32  ;;  %v3517_v46 = vld [vmem:[#allocation17 + $0xda0] sm:$0xff]  ;;  %v3264_v32 = vld [vmem:[#allocation17 + $0x5b8] sm:$0xff] }
 0x610   : > { %4014 = vmatprep.subr.mxu1 %v3366_v16  ;;  %4084 = vmatpush1.msra.mxu0 %v3119_v27  ;;  %v3510_v16 = vld [vmem:[#allocation17 + $0xd68] sm:$0xff]  ;;  %v3263_v27 = vld [vmem:[#allocation17 + $0x5b0] sm:$0xff] }
 0x611   : > { %4015 = vmatpush1.msra.mxu1 %v3365_v50  ;;  %4085 = vmatprep.subr.mxu0 %v3112_v51  ;;  %v3509_v50 = vld [vmem:[#allocation17 + $0xd60] sm:$0xff]  ;;  %v3256_v51 = vld [vmem:[#allocation17 + $0x578] sm:$0xff] }
 0x612   : > { %4016 = vmatprep.subr.mxu1 %v3358_v54  ;;  %4086 = vmatpush1.msra.mxu0 %v3111_v55  ;;  %v3502_v54 = vld [vmem:[#allocation17 + $0xd28] sm:$0xff]  ;;  %v3255_v55 = vld [vmem:[#allocation17 + $0x570] sm:$0xff] }
 0x613   : > { %4017 = vmatpush1.msra.mxu1 %v3357_v57  ;;  %4087 = vmatprep.subr.mxu0 %v3104_v58  ;;  %v3501_v57 = vld [vmem:[#allocation17 + $0xd20] sm:$0xff]  ;;  %v3248_v58 = vld [vmem:[#allocation17 + $0x538] sm:$0xff] }
 0x614   : > { %4018 = vmatprep.subr.mxu1 %v3350_v25  ;;  %4088 = vmatpush1.msra.mxu0 %v3103_v59  ;;  %v3494_v25 = vld [vmem:[#allocation17 + $0xce8] sm:$0xff]  ;;  %v3247_v59 = vld [vmem:[#allocation17 + $0x530] sm:$0xff] }
 0x615   : > { %4019 = vmatpush1.msra.mxu1 %v3349_v60  ;;  %4089 = vmatprep.subr.mxu0 %v3096_v61  ;;  %v3493_v60 = vld [vmem:[#allocation17 + $0xce0] sm:$0xff]  ;;  %v3240_v61 = vld [vmem:[#allocation17 + $0x4f8] sm:$0xff] }
 0x616   : > { %4020 = vmatprep.subr.mxu1 %v3342_v63  ;;  %4090 = vmatpush1.msra.mxu0 %v3095_v0  ;;  %v3486_v63 = vld [vmem:[#allocation17 + $0xca8] sm:$0xff]  ;;  %v3239_v0 = vld [vmem:[#allocation17 + $0x4f0] sm:$0xff] }
 0x617   : > { %4021 = vmatpush1.msra.mxu1 %v3341_v1  ;;  %4091 = vmatprep.subr.mxu0 %v3088_v3  ;;  %v3485_v1 = vld [vmem:[#allocation17 + $0xca0] sm:$0xff]  ;;  %v3232_v3 = vld [vmem:[#allocation17 + $0x4b8] sm:$0xff] }
 0x618   : > { %4022 = vmatprep.subr.mxu1 %v3590_v2  ;;  %4092 = vmatpush1.msra.mxu0 %v3087_v26  ;;  %v3478_v2 = vld [vmem:[#allocation17 + $0xc68] sm:$0xff]  ;;  %v3231_v26 = vld [vmem:[#allocation17 + $0x4b0] sm:$0xff] }
 0x619   : > { %4023 = vmatpush2.msra.mxu1 %v3589_v4  ;;  %4093 = vmatprep.subr.mxu0 %v3336_v42  ;;  %v3477_v4 = vld [vmem:[#allocation17 + $0xc60] sm:$0xff]  ;;  %v3224_v42 = vld [vmem:[#allocation17 + $0x478] sm:$0xff] }
 0x61a   : > { %4024 = vmatprep.subr.mxu1 %v3582_v5  ;;  %4094 = vmatpush2.msra.mxu0 %v3335_v45  ;;  %v3470_v5 = vld [vmem:[#allocation17 + $0xc28] sm:$0xff]  ;;  %v3223_v45 = vld [vmem:[#allocation17 + $0x470] sm:$0xff] }
 0x61b   : > { %4025 = vmatpush2.msra.mxu1 %v3581_v52  ;;  %4095 = vmatprep.subr.mxu0 %v3328_v6  ;;  %v3469_v52 = vld [vmem:[#allocation17 + $0xc20] sm:$0xff]  ;;  %v3216_v6 = vld [vmem:[#allocation17 + $0x438] sm:$0xff] }
 0x61c   : > { %4026 = vmatprep.subr.mxu1 %v3574_v8  ;;  %4096 = vmatpush2.msra.mxu0 %v3327_v10  ;;  %v3215_v8 = vld [vmem:[#allocation17 + $0x430] sm:$0xff]  ;;  %v3464_v10 = vld [vmem:[#allocation17 + $0xbf8] sm:$0xff] }
 0x61d   : > { %4027 = vmatpush2.msra.mxu1 %v3573_v11  ;;  %4097 = vmatprep.subr.mxu0 %v3320_v35  ;;  %v3463_v11 = vld [vmem:[#allocation17 + $0xbf0] sm:$0xff]  ;;  %v3456_v35 = vld [vmem:[#allocation17 + $0xbb8] sm:$0xff] }
 0x61e   : > { %4028 = vmatprep.subr.mxu1 %v3566_v62  ;;  %4098 = vmatpush2.msra.mxu0 %v3319_v39  ;;  %v4242_v62 = vld [vmem:[%s6283_s13 + $0xf8] sm:$0xff]  ;;  %v3455_v39 = vld [vmem:[#allocation17 + $0xbb0] sm:$0xff] }
 0x61f   : > { %4029 = vmatpush2.msra.mxu1 %v3565_v12  ;;  %4099 = vmatprep.subr.mxu0 %v3312_v13  ;;  %v4226_v12 = vld [vmem:[%s6283_s13 + $0x78] sm:$0xff]  ;;  %v3448_v13 = vld [vmem:[#allocation17 + $0xb78] sm:$0xff] }
 0x620   : > { %4030 = vmatprep.subr.mxu1 %v3558_v56  ;;  %4100 = vmatpush2.msra.mxu0 %v3311_v15  ;;  %v4241_v56 = vld [vmem:[%s6283_s13 + $0xf0] sm:$0xff]  ;;  %v3447_v15 = vld [vmem:[#allocation17 + $0xb70] sm:$0xff] }
 0x621   : > { %4031 = vmatpush2.msra.mxu1 %v3557_v18  ;;  %4101 = vmatprep.subr.mxu0 %v3304_v49  ;;  %v3440_v18 = vld [vmem:[#allocation17 + $0xb38] sm:$0xff] }
 0x622   : > { %4032 = vmatprep.subr.mxu1 %v3550_v53  ;;  %4102 = vmatpush2.msra.mxu0 %v3303_v19  ;;  %v4240_v49 = vld [vmem:[%s6283_s13 + $0xe8] sm:$0xff] }
 0x623   : > { %4033 = vmatpush2.msra.mxu1 %v3549_v20  ;;  %4103 = vmatprep.subr.mxu0 %v3296_v21  ;;  %v4224_v53 = vld [vmem:[%s6283_s13 + $0x68] sm:$0xff]  ;;  %v4239_v20 = vld [vmem:[%s6283_s13 + $0xe0] sm:$0xff] }
 0x624   : > { %4034 = vmatprep.subr.mxu1 %v3542_v22  ;;  %4104 = vmatpush2.msra.mxu0 %v3295_v7  ;;  %v3432_v19 = vld [vmem:[#allocation17 + $0xaf8] sm:$0xff]  ;;  %v3431_v21 = vld [vmem:[#allocation17 + $0xaf0] sm:$0xff] }
 0x625   : > { %4035 = vmatpush2.msra.mxu1 %v3541_v23  ;;  %4105 = vmatprep.subr.mxu0 %v3288_v24  ;;  %v4223_v22 = vld [vmem:[%s6283_s13 + $0x60] sm:$0xff]  ;;  %v3424_v7 = vld [vmem:[#allocation17 + $0xab8] sm:$0xff]  ;;  %v4238_v23 = vld [vmem:[%s6283_s13 + $0xd8] sm:$0xff] }
 0x626   : > { %4036 = vmatprep.subr.mxu1 %v3534_v28  ;;  %4106 = vmatpush2.msra.mxu0 %v3287_v29  ;;  %v3423_v24 = vld [vmem:[#allocation17 + $0xab0] sm:$0xff]  ;;  %v4222_v28 = vld [vmem:[%s6283_s13 + $0x58] sm:$0xff]  ;;  %v3416_v29 = vld [vmem:[#allocation17 + $0xa78] sm:$0xff] }
 0x627   : > { %4037 = vmatpush2.msra.mxu1 %v3533_v30  ;;  %4107 = vmatprep.subr.mxu0 %v3280_v31  ;;  %v4237_v30 = vld [vmem:[%s6283_s13 + $0xd0] sm:$0xff]  ;;  %v3415_v31 = vld [vmem:[#allocation17 + $0xa70] sm:$0xff] }
 0x628   : > { %4038 = vmatprep.subr.mxu1 %v3526_v9  ;;  %4108 = vmatpush2.msra.mxu0 %v3279_v36  ;;  %v4221_v9 = vld [vmem:[%s6283_s13 + $0x50] sm:$0xff] }
 0x629   : > { %4039 = vmatpush2.msra.mxu1 %v3525_v37  ;;  %4109 = vmatprep.subr.mxu0 %v3272_v38  ;;  %v3408_v36 = vld [vmem:[#allocation17 + $0xa38] sm:$0xff]  ;;  %v3407_v38 = vld [vmem:[#allocation17 + $0xa30] sm:$0xff] }
 0x62a   : > { %4040 = vmatprep.subr.mxu1 %v3518_v40  ;;  %4110 = vmatpush2.msra.mxu0 %v3271_v44  ;;  %v4236_v37 = vld [vmem:[%s6283_s13 + $0xc8] sm:$0xff] }
 0x62b   : > { %4041 = vmatpush2.msra.mxu1 %v3517_v46  ;;  %4111 = vmatprep.subr.mxu0 %v3264_v32  ;;  %v4220_v40 = vld [vmem:[%s6283_s13 + $0x48] sm:$0xff]  ;;  %v4235_v46 = vld [vmem:[%s6283_s13 + $0xc0] sm:$0xff] }
 0x62c   : > { %4042 = vmatprep.subr.mxu1 %v3510_v16  ;;  %4112 = vmatpush2.msra.mxu0 %v3263_v27  ;;  %v3400_v44 = vld [vmem:[#allocation17 + $0x9f8] sm:$0xff]  ;;  %v3399_v32 = vld [vmem:[#allocation17 + $0x9f0] sm:$0xff] }
 0x62d   : > { %4043 = vmatpush2.msra.mxu1 %v3509_v50  ;;  %4113 = vmatprep.subr.mxu0 %v3256_v51  ;;  %v4219_v16 = vld [vmem:[%s6283_s13 + $0x40] sm:$0xff]  ;;  %v3392_v27 = vld [vmem:[#allocation17 + $0x9b8] sm:$0xff]  ;;  %v4234_v50 = vld [vmem:[%s6283_s13 + $0xb8] sm:$0xff] }
 0x62e   : > { %4044 = vmatprep.subr.mxu1 %v3502_v54  ;;  %4114 = vmatpush2.msra.mxu0 %v3255_v55  ;;  %v3391_v51 = vld [vmem:[#allocation17 + $0x9b0] sm:$0xff]  ;;  %v4218_v54 = vld [vmem:[%s6283_s13 + $0x38] sm:$0xff]  ;;  %v3384_v55 = vld [vmem:[#allocation17 + $0x978] sm:$0xff] }
 0x62f   : > { %4045 = vmatpush2.msra.mxu1 %v3501_v57  ;;  %4115 = vmatprep.subr.mxu0 %v3248_v58  ;;  %v4233_v57 = vld [vmem:[%s6283_s13 + $0xb0] sm:$0xff]  ;;  %v3383_v58 = vld [vmem:[#allocation17 + $0x970] sm:$0xff] }
 0x630   : > { %4046 = vmatprep.subr.mxu1 %v3494_v25  ;;  %4116 = vmatpush2.msra.mxu0 %v3247_v59  ;;  %v4217_v25 = vld [vmem:[%s6283_s13 + $0x30] sm:$0xff] }
 0x631   : > { %4047 = vmatpush2.msra.mxu1 %v3493_v60  ;;  %4117 = vmatprep.subr.mxu0 %v3240_v61  ;;  %v3376_v59 = vld [vmem:[#allocation17 + $0x938] sm:$0xff]  ;;  %v3375_v61 = vld [vmem:[#allocation17 + $0x930] sm:$0xff] }
 0x632   : > { %4048 = vmatprep.subr.mxu1 %v3486_v63  ;;  %4118 = vmatpush2.msra.mxu0 %v3239_v0  ;;  %v4232_v60 = vld [vmem:[%s6283_s13 + $0xa8] sm:$0xff] }
 0x633   : > { %4049 = vmatpush2.msra.mxu1 %v3485_v1  ;;  %4119 = vmatprep.subr.mxu0 %v3232_v3  ;;  %v4216_v63 = vld [vmem:[%s6283_s13 + $0x28] sm:$0xff]  ;;  %v4231_v1 = vld [vmem:[%s6283_s13 + $0xa0] sm:$0xff] }
 0x634   : > { %4050 = vmatprep.subr.mxu1 %v3478_v2  ;;  %4120 = vmatpush2.msra.mxu0 %v3231_v26  ;;  %v3368_v0 = vld [vmem:[#allocation17 + $0x8f8] sm:$0xff]  ;;  %v3367_v3 = vld [vmem:[#allocation17 + $0x8f0] sm:$0xff] }
 0x635   : > { %4051 = vmatpush2.msra.mxu1 %v3477_v4  ;;  %4121 = vmatprep.subr.mxu0 %v3224_v42  ;;  %v4215_v2 = vld [vmem:[%s6283_s13 + $0x20] sm:$0xff]  ;;  %v3360_v26 = vld [vmem:[#allocation17 + $0x8b8] sm:$0xff]  ;;  %v4230_v4 = vld [vmem:[%s6283_s13 + $0x98] sm:$0xff] }
 0x636   : > { %4052 = vmatprep.subr.mxu1 %v3470_v5  ;;  %4122 = vmatpush2.msra.mxu0 %v3223_v45  ;;  %v3359_v42 = vld [vmem:[#allocation17 + $0x8b0] sm:$0xff]  ;;  %v4214_v5 = vld [vmem:[%s6283_s13 + $0x18] sm:$0xff]  ;;  %v3352_v45 = vld [vmem:[#allocation17 + $0x878] sm:$0xff] }
 0x637   : > { %4053 = vmatpush2.msra.mxu1 %v3469_v52  ;;  %4123 = vmatprep.subr.mxu0 %v3216_v6  ;;  %v4229_v52 = vld [vmem:[%s6283_s13 + $0x90] sm:$0xff]  ;;  %v3351_v6 = vld [vmem:[#allocation17 + $0x870] sm:$0xff] }
 0x638   : > { %4055 = vmatmul.mubr.f32.vlgmr.msra.gmra.mxu1 %v5849_v34  ;;  %4124 = vmatpush2.msra.mxu0 %v3215_v8  ;;  %v4213_v8 = vld [vmem:[%s6283_s13 + $0x10] sm:$0xff] }
 0x639   : > { %4132 = vmatprep.subr.mxu1 %v3464_v10  ;;  %4126 = vmatmul.mubr.f32.vlgmr.msra.gmra.mxu0 %v5838_v14  ;;  %v4225_v14 = vld [vmem:[%s6283_s13 + $0x70] sm:$0xff] }
 0x63a   : > { %4133 = vmatpush1.msra.mxu1 %v3463_v11  ;;  %4196 = vmatprep.mubr.f32.mxu1 %v5847_v33  ;;  %v3439_v33 = vld [vmem:[#allocation17 + $0xb30] sm:$0xff]  ;;  %v3344_v10 = vld [vmem:[#allocation17 + $0x838] sm:$0xff] }
 0x63b   : > { %4134 = vmatprep.subr.mxu1 %v3456_v35  ;;  %4822 = vmatprep.subr.mxu0 %v4242_v62  ;;  %v4228_v11 = vld [vmem:[%s6283_s13 + $0x88] sm:$0xff] }
 0x63c   : > { %4135 = vmatpush1.msra.mxu1 %v3455_v39  ;;  %4823 = vmatpush3.msra.mxu0 %v4226_v12  ;;  %v3343_v35 = vld [vmem:[#allocation17 + $0x830] sm:$0xff]  ;;  %v3592_v39 = vld [vmem:[#allocation17 + $0xff8] sm:$0xff] }
 0x63d   : > { %4136 = vmatprep.subr.mxu1 %v3448_v13  ;;  %4824 = vmatprep.subr.mxu0 %v4241_v56  ;;  %v4212_v62 = vld [vmem:[%s6283_s13 + $0x8] sm:$0xff]  ;;  %v4227_v12 = vld [vmem:[%s6283_s13 + $0x80] sm:$0xff] }
 0x63e   : > { %4137 = vmatpush1.msra.mxu1 %v3447_v15  ;;  %4825 = vmatpush3.msra.mxu0 %v4225_v14  ;;  %v3591_v13 = vld [vmem:[#allocation17 + $0xff0] sm:$0xff]  ;;  %v3584_v15 = vld [vmem:[#allocation17 + $0xfb8] sm:$0xff]  ;;  %v4306_v14 = vld [vmem:[%s6283_s13 + $0x2f8] sm:$0xff] }
 0x63f   : > { %4138 = vmatprep.subr.mxu1 %v3440_v18  ;;  %4826 = vmatprep.subr.mxu0 %v4240_v49  ;;  %v4211_v56 = vld [vmem:[%s6283_s13] sm:$0xff]  ;;  %v3576_v49 = vld [vmem:[#allocation17 + $0xf78] sm:$0xff] }
 0x640   : > { %4139 = vmatpush1.msra.mxu1 %v3439_v33  ;;  %4827 = vmatpush3.msra.mxu0 %v4224_v53  ;;  %v3583_v18 = vld [vmem:[#allocation17 + $0xfb0] sm:$0xff]  ;;  %v3568_v53 = vld [vmem:[#allocation17 + $0xf38] sm:$0xff] }
 0x641   : > { %4140 = vmatprep.subr.mxu1 %v3432_v19  ;;  %4828 = vmatprep.subr.mxu0 %v4239_v20  ;;  %v3575_v33 = vld [vmem:[#allocation17 + $0xf70] sm:$0xff]  ;;  %v3560_v20 = vld [vmem:[#allocation17 + $0xef8] sm:$0xff] }
 0x642   : > { %4141 = vmatpush1.msra.mxu1 %v3431_v21  ;;  %4829 = vmatpush3.msra.mxu0 %v4223_v22  ;;  %v3567_v19 = vld [vmem:[#allocation17 + $0xf30] sm:$0xff]  ;;  %v3552_v22 = vld [vmem:[#allocation17 + $0xeb8] sm:$0xff] }
 0x643   : > { %4142 = vmatprep.subr.mxu1 %v3424_v7  ;;  %4830 = vmatprep.subr.mxu0 %v4238_v23  ;;  %v3559_v21 = vld [vmem:[#allocation17 + $0xef0] sm:$0xff]  ;;  %v3544_v23 = vld [vmem:[#allocation17 + $0xe78] sm:$0xff] }
 0x644   : > { %4143 = vmatpush1.msra.mxu1 %v3423_v24  ;;  %4831 = vmatpush3.msra.mxu0 %v4222_v28  ;;  %v3551_v7 = vld [vmem:[#allocation17 + $0xeb0] sm:$0xff]  ;;  %v3536_v28 = vld [vmem:[#allocation17 + $0xe38] sm:$0xff] }
 0x645   : > { %4144 = vmatprep.subr.mxu1 %v3416_v29  ;;  %4832 = vmatprep.subr.mxu0 %v4237_v30  ;;  %v3543_v24 = vld [vmem:[#allocation17 + $0xe70] sm:$0xff]  ;;  %v3528_v30 = vld [vmem:[#allocation17 + $0xdf8] sm:$0xff] }
 0x646   : > { %4145 = vmatpush1.msra.mxu1 %v3415_v31  ;;  %4833 = vmatpush3.msra.mxu0 %v4221_v9  ;;  %v3535_v29 = vld [vmem:[#allocation17 + $0xe30] sm:$0xff]  ;;  %v3520_v9 = vld [vmem:[#allocation17 + $0xdb8] sm:$0xff] }
 0x647   : > { %4146 = vmatprep.subr.mxu1 %v3408_v36  ;;  %4834 = vmatprep.subr.mxu0 %v4236_v37  ;;  %v3527_v31 = vld [vmem:[#allocation17 + $0xdf0] sm:$0xff]  ;;  %v3512_v37 = vld [vmem:[#allocation17 + $0xd78] sm:$0xff] }
 0x648   : > { %4147 = vmatpush1.msra.mxu1 %v3407_v38  ;;  %4835 = vmatpush3.msra.mxu0 %v4220_v40  ;;  %v3519_v36 = vld [vmem:[#allocation17 + $0xdb0] sm:$0xff]  ;;  %v3504_v40 = vld [vmem:[#allocation17 + $0xd38] sm:$0xff] }
 0x649   : > { %4148 = vmatprep.subr.mxu1 %v3400_v44  ;;  %4836 = vmatprep.subr.mxu0 %v4235_v46  ;;  %v3511_v38 = vld [vmem:[#allocation17 + $0xd70] sm:$0xff]  ;;  %v5962_v46 = vld [vmem:[#allocation19] sm:$0xff] }
 0x64a   : > { %4149 = vmatpush1.msra.mxu1 %v3399_v32  ;;  %4837 = vmatpush3.msra.mxu0 %v4219_v16  ;;  %v3503_v44 = vld [vmem:[#allocation17 + $0xd30] sm:$0xff]  ;;  %v3496_v32 = vld [vmem:[#allocation17 + $0xcf8] sm:$0xff]  ;;  %v3701_v16 = vpop.f32.mrf.mxu0 }
 0x64b   : > { %4150 = vmatprep.subr.mxu1 %v3392_v27  ;;  %4838 = vmatprep.subr.mxu0 %v4234_v50  ;;  %v3495_v27 = vld [vmem:[#allocation17 + $0xcf0] sm:$0xff]  ;;  %v3488_v50 = vld [vmem:[#allocation17 + $0xcb8] sm:$0xff] }
 0x64c   : > { %4151 = vmatpush1.msra.mxu1 %v3391_v51  ;;  %4839 = vmatpush3.msra.mxu0 %v4218_v54  ;;  %v3598_v51 = vrot.slane %v5962_v46, %v5747_v41  ;;  %v3487_v54 = vld [vmem:[#allocation17 + $0xcb0] sm:$0xff]  ;;  %v4274_v41 = vld [vmem:[%s6283_s13 + $0x1f8] sm:$0xff] }
 0x64d   : > { %4152 = vmatprep.subr.mxu1 %v3384_v55  ;;  %4840 = vmatprep.subr.mxu0 %v4233_v57  ;;  %v3602_v55 = vrot.slane %v5962_v46, %v5752_v43  ;;  %v3480_v57 = vld [vmem:[#allocation17 + $0xc78] sm:$0xff] }
 0x64e   : > { %4153 = vmatpush1.msra.mxu1 %v3383_v58  ;;  %4841 = vmatpush3.msra.mxu0 %v4217_v25  ;;  %v3703_v58 = vpop.f32.mrf.mxu0  ;;  %v3479_v25 = vld [vmem:[#allocation17 + $0xc70] sm:$0xff] }
 0x64f   : > { %4154 = vmatprep.subr.mxu1 %v3376_v59  ;;  %4842 = vmatprep.subr.mxu0 %v4232_v60  ;;  %v3472_v59 = vld [vmem:[#allocation17 + $0xc38] sm:$0xff]  ;;  %v3702_v60 = vadd.f32 %v3701_v16, %v3598_v51  ;;  %v4247_v16 = vld [vmem:[%s6283_s13 + $0x120] sm:$0xff] }
 0x650   : > { %4155 = vmatpush1.msra.mxu1 %v3375_v61  ;;  %4843 = vmatpush3.msra.mxu0 %v4216_v63  ;;  %v3471_v61 = vld [vmem:[#allocation17 + $0xc30] sm:$0xff] }
 0x651   : > { %4156 = vmatprep.subr.mxu1 %v3368_v0  ;;  %4844 = vmatprep.subr.mxu0 %v4231_v1  ;;  %v3704_v0 = vadd.f32 %v3703_v58, %v3602_v55  ;;  %v4296_v51 = vld [vmem:[%s6283_s13 + $0x2a8] sm:$0xff]  ;;  %v4295_v58 = vld [vmem:[%s6283_s13 + $0x2a0] sm:$0xff] }
 0x652   : > { %4157 = vmatpush1.msra.mxu1 %v3367_v3  ;;  %4845 = vmatpush3.msra.mxu0 %v4215_v2  ;;  %v4258_v3 = vld [vmem:[%s6283_s13 + $0x178] sm:$0xff]  ;;  %v4280_v55 = vld [vmem:[%s6283_s13 + $0x228] sm:$0xff] }
 0x653   : > { %4158 = vmatprep.subr.mxu1 %v3360_v26  ;;  %4846 = vmatprep.subr.mxu0 %v4230_v4  ;;  %v4273_v26 = vld [vmem:[%s6283_s13 + $0x1f0] sm:$0xff] }
 0x654   : > { %4159 = vmatpush1.msra.mxu1 %v3359_v42  ;;  %4847 = vmatpush3.msra.mxu0 %v4214_v5  ;;  %v4257_v4 = vld [vmem:[%s6283_s13 + $0x170] sm:$0xff]  ;;  %v4272_v5 = vld [vmem:[%s6283_s13 + $0x1e8] sm:$0xff] }
 0x655   : > { %4160 = vmatprep.subr.mxu1 %v3352_v45  ;;  %4848 = vmatprep.subr.mxu0 %v4229_v52  ;;  %v4256_v52 = vld [vmem:[%s6283_s13 + $0x168] sm:$0xff] }
 0x656   : > { %4161 = vmatpush1.msra.mxu1 %v3351_v6  ;;  %4849 = vmatpush3.msra.mxu0 %v4213_v8  ;;  %v4271_v6 = vld [vmem:[%s6283_s13 + $0x1e0] sm:$0xff]  ;;  %v4305_v8 = vld [vmem:[%s6283_s13 + $0x2f0] sm:$0xff] }
 0x657   : > { %4162 = vmatprep.subr.mxu1 %v3344_v10  ;;  %4850 = vmatprep.subr.mxu0 %v4228_v11  ;;  %v4255_v10 = vld [vmem:[%s6283_s13 + $0x160] sm:$0xff]  ;;  %v4289_v11 = vld [vmem:[%s6283_s13 + $0x270] sm:$0xff] }
 0x658   : > { %4163 = vmatpush1.msra.mxu1 %v3343_v35  ;;  %4851 = vmatpush3.msra.mxu0 %v4212_v62  ;;  %v4270_v35 = vld [vmem:[%s6283_s13 + $0x1d8] sm:$0xff]  ;;  %v4304_v62 = vld [vmem:[%s6283_s13 + $0x2e8] sm:$0xff] }
 0x659   : > { %4164 = vmatprep.subr.mxu1 %v3592_v39  ;;  %4852 = vmatprep.subr.mxu0 %v4227_v12  ;;  %v4254_v39 = vld [vmem:[%s6283_s13 + $0x158] sm:$0xff]  ;;  %v4288_v12 = vld [vmem:[%s6283_s13 + $0x268] sm:$0xff] }
 0x65a   : > { %4165 = vmatpush2.msra.mxu1 %v3591_v13  ;;  %4853 = vmatpush3.msra.mxu0 %v4211_v56  ;;  %v4269_v13 = vld [vmem:[%s6283_s13 + $0x1d0] sm:$0xff]  ;;  %v4303_v56 = vld [vmem:[%s6283_s13 + $0x2e0] sm:$0xff] }
 0x65b   : > { %4166 = vmatprep.subr.mxu1 %v3584_v15  ;;  %4892 = vmatprep.subr.mxu0 %v4306_v14  ;;  %v4253_v15 = vld [vmem:[%s6283_s13 + $0x150] sm:$0xff]  ;;  %v4287_v14 = vld [vmem:[%s6283_s13 + $0x260] sm:$0xff] }
 0x65c   : > { %4167 = vmatpush2.msra.mxu1 %v3583_v18  ;;  %v4268_v18 = vld [vmem:[%s6283_s13 + $0x1c8] sm:$0xff] }
 0x65d   : > { %4168 = vmatprep.subr.mxu1 %v3576_v49  ;;  %v4302_v49 = vld [vmem:[%s6283_s13 + $0x2d8] sm:$0xff] }
 0x65e   : > { %4169 = vmatpush2.msra.mxu1 %v3575_v33  ;;  %v4252_v33 = vld [vmem:[%s6283_s13 + $0x148] sm:$0xff] }
 0x65f   : > { %4170 = vmatprep.subr.mxu1 %v3568_v53  ;;  %v4286_v53 = vld [vmem:[%s6283_s13 + $0x258] sm:$0xff] }
 0x660   : > { %4171 = vmatpush2.msra.mxu1 %v3567_v19  ;;  %v4267_v19 = vld [vmem:[%s6283_s13 + $0x1c0] sm:$0xff] }
 0x661   : > { %4172 = vmatprep.subr.mxu1 %v3560_v20  ;;  %v4301_v20 = vld [vmem:[%s6283_s13 + $0x2d0] sm:$0xff] }
 0x662   : > { %4173 = vmatpush2.msra.mxu1 %v3559_v21  ;;  %v4251_v21 = vld [vmem:[%s6283_s13 + $0x140] sm:$0xff] }
 0x663   : > { %4174 = vmatprep.subr.mxu1 %v3552_v22  ;;  %v4285_v22 = vld [vmem:[%s6283_s13 + $0x250] sm:$0xff] }
 0x664   : > { %4175 = vmatpush2.msra.mxu1 %v3551_v7  ;;  %v4266_v7 = vld [vmem:[%s6283_s13 + $0x1b8] sm:$0xff] }
 0x665   : > { %4176 = vmatprep.subr.mxu1 %v3544_v23  ;;  %v4300_v23 = vld [vmem:[%s6283_s13 + $0x2c8] sm:$0xff] }
 0x666   : > { %4177 = vmatpush2.msra.mxu1 %v3543_v24  ;;  %v4250_v24 = vld [vmem:[%s6283_s13 + $0x138] sm:$0xff] }
 0x667   : > { %4178 = vmatprep.subr.mxu1 %v3536_v28  ;;  %v4284_v28 = vld [vmem:[%s6283_s13 + $0x248] sm:$0xff] }
 0x668   : > { %4179 = vmatpush2.msra.mxu1 %v3535_v29  ;;  %v4265_v29 = vld [vmem:[%s6283_s13 + $0x1b0] sm:$0xff] }
 0x669   : > { %4180 = vmatprep.subr.mxu1 %v3528_v30  ;;  %v4299_v30 = vld [vmem:[%s6283_s13 + $0x2c0] sm:$0xff] }
 0x66a   : > { %4181 = vmatpush2.msra.mxu1 %v3527_v31  ;;  %v4249_v31 = vld [vmem:[%s6283_s13 + $0x130] sm:$0xff] }
 0x66b   : > { %4182 = vmatprep.subr.mxu1 %v3520_v9  ;;  %v4283_v9 = vld [vmem:[%s6283_s13 + $0x240] sm:$0xff] }
 0x66c   : > { %4183 = vmatpush2.msra.mxu1 %v3519_v36  ;;  %v4264_v36 = vld [vmem:[%s6283_s13 + $0x1a8] sm:$0xff] }
 0x66d   : > { %4184 = vmatprep.subr.mxu1 %v3512_v37  ;;  %v4298_v37 = vld [vmem:[%s6283_s13 + $0x2b8] sm:$0xff] }
 0x66e   : > { %4185 = vmatpush2.msra.mxu1 %v3511_v38  ;;  %v4248_v38 = vld [vmem:[%s6283_s13 + $0x128] sm:$0xff] }
 0x66f   : > { %4186 = vmatprep.subr.mxu1 %v3504_v40  ;;  %v4282_v40 = vld [vmem:[%s6283_s13 + $0x238] sm:$0xff] }
 0x670   : > { %4187 = vmatpush2.msra.mxu1 %v3503_v44  ;;  %v4263_v44 = vld [vmem:[%s6283_s13 + $0x1a0] sm:$0xff] }
 0x671   : > { %4188 = vmatprep.subr.mxu1 %v3496_v32  ;;  %v4297_v32 = vld [vmem:[%s6283_s13 + $0x2b0] sm:$0xff] }
 0x672   : > { %4189 = vmatpush2.msra.mxu1 %v3495_v27  ;;  %v4281_v27 = vld [vmem:[%s6283_s13 + $0x230] sm:$0xff] }
 0x673   : > { %4190 = vmatprep.subr.mxu1 %v3488_v50  ;;  %v4262_v50 = vld [vmem:[%s6283_s13 + $0x198] sm:$0xff] }
 0x674   : > { %4191 = vmatpush2.msra.mxu1 %v3487_v54  ;;  %v4246_v54 = vld [vmem:[%s6283_s13 + $0x118] sm:$0xff] }
 0x675   : > { %4192 = vmatprep.subr.mxu1 %v3480_v57  ;;  %v3772_v63 = vpop.f32.mrf.mxu1  ;;  %v4261_v57 = vld [vmem:[%s6283_s13 + $0x190] sm:$0xff] }
 0x676   : > { %4193 = vmatpush2.msra.mxu1 %v3479_v25  ;;  %v3773_v1 = vadd.f32 %v3772_v63, %v3702_v60  ;;  %v4245_v25 = vld [vmem:[%s6283_s13 + $0x110] sm:$0xff]  ;;  %v4260_v60 = vld [vmem:[%s6283_s13 + $0x188] sm:$0xff] }
 0x677   : > { %4194 = vmatprep.subr.mxu1 %v3472_v59  ;;  %v3774_v43 = vpop.f32.mrf.mxu1  ;;  %v4279_v59 = vld [vmem:[%s6283_s13 + $0x220] sm:$0xff]  ;;  %v4244_v63 = vld [vmem:[%s6283_s13 + $0x108] sm:$0xff] }
 0x678   : > { %4195 = vmatpush2.msra.mxu1 %v3471_v61  ;;  %v3775_v2 = vadd.f32 %v3774_v43, %v3704_v0  ;;  %v4203_v45 = vmax.f32 %v3773_v1, 0.0  ;;  %v4294_v61 = vld [vmem:[%s6283_s13 + $0x298] sm:$0xff]  ;;  %v4293_v1 = vld [vmem:[%s6283_s13 + $0x290] sm:$0xff]  ;;  %v4243_v43 = vld [vmem:[%s6283_s13 + $0x100] sm:$0xff] }
 0x679   : > { %4197 = vmatmul.mubr.f32.vlgmr.msra.gmra.mxu1 %v5849_v34  ;;  %4857 = vmatprep.subr.mxu1 %v4274_v41  ;;  %v4290_v34 = vld [vmem:[%s6283_s13 + $0x278] sm:$0xff]  ;;  %v4259_v41 = vld [vmem:[%s6283_s13 + $0x180] sm:$0xff] }
 0x67a   : > { %v4204_v42 = vmax.f32 %v3775_v2, 0.0  ;;  %4858 = vmatpush3.msra.mxu1 %v4258_v3  ;;  %v4278_v0 = vld [vmem:[%s6283_s13 + $0x218] sm:$0xff]  ;;  %v4277_v3 = vld [vmem:[%s6283_s13 + $0x210] sm:$0xff]  ;;  %v4292_v2 = vld [vmem:[%s6283_s13 + $0x288] sm:$0xff] }
 0x67b   : > { %4859 = vmatprep.subr.mxu1 %v4273_v26  ;;  %v4338_v26 = vld [vmem:[%s6283_s13 + $0x3f8] sm:$0xff] }
 0x67c   : > { %4410 = vmatprep.mubr.f32.mxu0 %v4204_v42  ;;  %4860 = vmatpush3.msra.mxu1 %v4257_v4  ;;  %v4276_v4 = vld [vmem:[%s6283_s13 + $0x208] sm:$0xff]  ;;  %v4291_v42 = vld [vmem:[%s6283_s13 + $0x280] sm:$0xff] }
 0x67d   : > { %4411 = vmatmul.mubr.f32.vlgmr.msra.gmra.mxu0 %v4203_v45  ;;  %4861 = vmatprep.subr.mxu1 %v4272_v5  ;;  %v4275_v5 = vld [vmem:[%s6283_s13 + $0x200] sm:$0xff]  ;;  %v3843_v45 = vpop.f32.mrf.mxu0 }
 0x67e   : > { %4862 = vmatpush3.msra.mxu1 %v4256_v52  ;;  %4893 = vmatpush3.msra.mxu0 %v4290_v34  ;;  %v3606_v52 = vrot.slane %v5962_v46, %v5764_v47  ;;  %v3610_v34 = vrot.slane %v5962_v46, %v5767_v48  ;;  %v4337_v47 = vld [vmem:[%s6283_s13 + $0x3f0] sm:$0xff] }
 0x67f   : > { %4863 = vmatprep.subr.mxu1 %v4271_v6  ;;  %4894 = vmatprep.subr.mxu0 %v4305_v8  ;;  %v3845_v6 = vpop.f32.mrf.mxu0  ;;  %v4321_v48 = vld [vmem:[%s6283_s13 + $0x370] sm:$0xff] }
 0x680   : > { %4864 = vmatpush3.msra.mxu1 %v4255_v10  ;;  %4895 = vmatpush3.msra.mxu0 %v4289_v11  ;;  %v3844_v8 = vadd.f32 %v3843_v45, %v3606_v52  ;;  %v3846_v11 = vadd.f32 %v3845_v6, %v3610_v34 }
 0x681   : > { %4865 = vmatprep.subr.mxu1 %v4270_v35  ;;  %4896 = vmatprep.subr.mxu0 %v4304_v62 }
 0x682   : > { %4866 = vmatpush3.msra.mxu1 %v4254_v39  ;;  %4897 = vmatpush3.msra.mxu0 %v4288_v12 }
 0x683   : > { %4867 = vmatprep.subr.mxu1 %v4269_v13  ;;  %4898 = vmatprep.subr.mxu0 %v4303_v56  ;;  %v4322_v56 = vld [vmem:[%s6283_s13 + $0x378] sm:$0xff] }
 0x684   : > { %4868 = vmatpush3.msra.mxu1 %v4253_v15  ;;  %4899 = vmatpush3.msra.mxu0 %v4287_v14  ;;  %v4336_v15 = vld [vmem:[%s6283_s13 + $0x3e8] sm:$0xff] }
 0x685   : > { %4869 = vmatprep.subr.mxu1 %v4268_v18  ;;  %4900 = vmatprep.subr.mxu0 %v4302_v49  ;;  %v4320_v14 = vld [vmem:[%s6283_s13 + $0x368] sm:$0xff]  ;;  %v4335_v18 = vld [vmem:[%s6283_s13 + $0x3e0] sm:$0xff] }
 0x686   : > { %4870 = vmatpush3.msra.mxu1 %v4252_v33  ;;  %4901 = vmatpush3.msra.mxu0 %v4286_v53  ;;  %v4319_v49 = vld [vmem:[%s6283_s13 + $0x360] sm:$0xff]  ;;  %v4334_v33 = vld [vmem:[%s6283_s13 + $0x3d8] sm:$0xff] }
 0x687   : > { %4871 = vmatprep.subr.mxu1 %v4267_v19  ;;  %4902 = vmatprep.subr.mxu0 %v4301_v20  ;;  %v4318_v53 = vld [vmem:[%s6283_s13 + $0x358] sm:$0xff]  ;;  %v4333_v19 = vld [vmem:[%s6283_s13 + $0x3d0] sm:$0xff] }
 0x688   : > { %4872 = vmatpush3.msra.mxu1 %v4251_v21  ;;  %4903 = vmatpush3.msra.mxu0 %v4285_v22  ;;  %v4317_v20 = vld [vmem:[%s6283_s13 + $0x350] sm:$0xff]  ;;  %v4332_v21 = vld [vmem:[%s6283_s13 + $0x3c8] sm:$0xff] }
 0x689   : > { %4873 = vmatprep.subr.mxu1 %v4266_v7  ;;  %4904 = vmatprep.subr.mxu0 %v4300_v23  ;;  %v4316_v22 = vld [vmem:[%s6283_s13 + $0x348] sm:$0xff]  ;;  %v4331_v7 = vld [vmem:[%s6283_s13 + $0x3c0] sm:$0xff] }
 0x68a   : > { %4874 = vmatpush3.msra.mxu1 %v4250_v24  ;;  %4905 = vmatpush3.msra.mxu0 %v4284_v28  ;;  %v4315_v23 = vld [vmem:[%s6283_s13 + $0x340] sm:$0xff]  ;;  %v4330_v24 = vld [vmem:[%s6283_s13 + $0x3b8] sm:$0xff] }
 0x68b   : > { %4875 = vmatprep.subr.mxu1 %v4265_v29  ;;  %4906 = vmatprep.subr.mxu0 %v4299_v30  ;;  %v4314_v28 = vld [vmem:[%s6283_s13 + $0x338] sm:$0xff]  ;;  %v4329_v29 = vld [vmem:[%s6283_s13 + $0x3b0] sm:$0xff] }
 0x68c   : > { %4876 = vmatpush3.msra.mxu1 %v4249_v31  ;;  %4907 = vmatpush3.msra.mxu0 %v4283_v9  ;;  %v4313_v30 = vld [vmem:[%s6283_s13 + $0x330] sm:$0xff]  ;;  %v4328_v31 = vld [vmem:[%s6283_s13 + $0x3a8] sm:$0xff] }
 0x68d   : > { %4877 = vmatprep.subr.mxu1 %v4264_v36  ;;  %4908 = vmatprep.subr.mxu0 %v4298_v37  ;;  %v4312_v9 = vld [vmem:[%s6283_s13 + $0x328] sm:$0xff]  ;;  %v4327_v36 = vld [vmem:[%s6283_s13 + $0x3a0] sm:$0xff] }
 0x68e   : > { %4878 = vmatpush3.msra.mxu1 %v4248_v38  ;;  %4909 = vmatpush3.msra.mxu0 %v4282_v40  ;;  %v4311_v37 = vld [vmem:[%s6283_s13 + $0x320] sm:$0xff]  ;;  %v4326_v38 = vld [vmem:[%s6283_s13 + $0x398] sm:$0xff] }
 0x68f   : > { %4879 = vmatprep.subr.mxu1 %v4263_v44  ;;  %4910 = vmatprep.subr.mxu0 %v4297_v32  ;;  %v4310_v40 = vld [vmem:[%s6283_s13 + $0x318] sm:$0xff]  ;;  %v4325_v44 = vld [vmem:[%s6283_s13 + $0x390] sm:$0xff] }
 0x690   : > { %4880 = vmatpush3.msra.mxu1 %v4247_v16  ;;  %4911 = vmatpush3.msra.mxu0 %v4281_v27  ;;  %v4309_v32 = vld [vmem:[%s6283_s13 + $0x310] sm:$0xff]  ;;  %v4324_v16 = vld [vmem:[%s6283_s13 + $0x388] sm:$0xff] }
 0x691   : > { %4881 = vmatprep.subr.mxu1 %v4262_v50  ;;  %4912 = vmatprep.subr.mxu0 %v4296_v51  ;;  %v4308_v27 = vld [vmem:[%s6283_s13 + $0x308] sm:$0xff]  ;;  %v4323_v50 = vld [vmem:[%s6283_s13 + $0x380] sm:$0xff] }
 0x692   : > { %4882 = vmatpush3.msra.mxu1 %v4246_v54  ;;  %4913 = vmatpush3.msra.mxu0 %v4280_v55  ;;  %v4307_v51 = vld [vmem:[%s6283_s13 + $0x300] sm:$0xff]  ;;  %v3613_v54 = vsub.s32 4, %v5732_v17  ;;  %v3617_v55 = vsub.s32 5, %v5732_v17 }
 0x693   : > { %4883 = vmatprep.subr.mxu1 %v4261_v57  ;;  %4914 = vmatprep.subr.mxu0 %v4295_v58 }
 0x694   : > { %4884 = vmatpush3.msra.mxu1 %v4245_v25  ;;  %4915 = vmatpush3.msra.mxu0 %v4279_v59  ;;  %v3614_v58 = vrot.slane %v5962_v46, %v3613_v54  ;;  %v3618_v25 = vrot.slane %v5962_v46, %v3617_v55 }
 0x695   : > { %4885 = vmatprep.subr.mxu1 %v4260_v60  ;;  %4916 = vmatprep.subr.mxu0 %v4294_v61 }
 0x696   : > { %4886 = vmatpush3.msra.mxu1 %v4244_v63  ;;  %4917 = vmatpush3.msra.mxu0 %v4278_v0 }
 0x697   : > { %4887 = vmatprep.subr.mxu1 %v4259_v41  ;;  %4918 = vmatprep.subr.mxu0 %v4293_v1 }
 0x698   : > { %4888 = vmatpush3.msra.mxu1 %v4243_v43  ;;  %4919 = vmatpush3.msra.mxu0 %v4277_v3 }
 0x699   : > { %4920 = vmatprep.subr.mxu0 %v4292_v2  ;;  %4927 = vmatprep.subr.mxu1 %v4338_v26  ;;  %v3621_v2 = vsub.s32 6, %v5732_v17  ;;  %v3625_v26 = vsub.s32 7, %v5732_v17 }
 0x69a   : > { %4921 = vmatpush3.msra.mxu0 %v4276_v4 }
 0x69b   : > { %4922 = vmatprep.subr.mxu0 %v4291_v42  ;;  %v3622_v42 = vrot.slane %v5962_v46, %v3621_v2 }
 0x69c   : > { %4923 = vmatpush3.msra.mxu0 %v4275_v5  ;;  %v3626_v5 = vrot.slane %v5962_v46, %v3625_v26 }
 0x6b6   : > { %v3914_v10 = vpop.f32.mrf.mxu1 }
 0x6b7   : > { %v3915_v35 = vadd.f32 %v3914_v10, %v3844_v8  ;;  %v3985_v57 = vpop.f32.mrf.mxu0 }
 0x6b8   : > { %v3916_v62 = vpop.f32.mrf.mxu1  ;;  %v3986_v60 = vadd.f32 %v3985_v57, %v3614_v58 }
 0x6b9   : > { %v3917_v39 = vadd.f32 %v3916_v62, %v3846_v11  ;;  %v4205_v13 = vmax.f32 %v3915_v35, 0.0  ;;  %v3987_v59 = vpop.f32.mrf.mxu0 }
 0x6ba   : > { %v3988_v63 = vadd.f32 %v3987_v59, %v3618_v25 }
 0x6bb   : > { %v4206_v12 = vmax.f32 %v3917_v39, 0.0 }
 0x6bd   : > { %4480 = vmatprep.mubr.f32.mxu1 %v4206_v12 }
 0x6be   : > { %4481 = vmatmul.mubr.f32.vlgmr.msra.gmra.mxu1 %v4205_v13 }
 0x6bf   : > { %4928 = vmatpush3.msra.mxu1 %v4322_v56 }
 0x6c0   : > { %4929 = vmatprep.subr.mxu1 %v4337_v47 }
 0x6c1   : > { %4930 = vmatpush3.msra.mxu1 %v4321_v48  ;;  %v4819_v48 = vld [vmem:[#allocation20] ss:$0 sm:$0xff] }
 0x6c2   : > { %4931 = vmatprep.subr.mxu1 %v4336_v15 }
 0x6c3   : > { %4932 = vmatpush3.msra.mxu1 %v4320_v14 }
 0x6c4   : > { %4933 = vmatprep.subr.mxu1 %v4335_v18 }
 0x6c5   : > { %4934 = vmatpush3.msra.mxu1 %v4319_v49 }
 0x6c6   : > { %4935 = vmatprep.subr.mxu1 %v4334_v33 }
 0x6c7   : > { %4936 = vmatpush3.msra.mxu1 %v4318_v53 }
 0x6c8   : > { %4937 = vmatprep.subr.mxu1 %v4333_v19 }
 0x6c9   : > { %4938 = vmatpush3.msra.mxu1 %v4317_v20 }
 0x6ca   : > { %4939 = vmatprep.subr.mxu1 %v4332_v21 }
 0x6cb   : > { %4940 = vmatpush3.msra.mxu1 %v4316_v22 }
 0x6cc   : > { %4941 = vmatprep.subr.mxu1 %v4331_v7 }
 0x6cd   : > { %4942 = vmatpush3.msra.mxu1 %v4315_v23 }
 0x6ce   : > { %4943 = vmatprep.subr.mxu1 %v4330_v24 }
 0x6cf   : > { %4944 = vmatpush3.msra.mxu1 %v4314_v28 }
 0x6d0   : > { %4945 = vmatprep.subr.mxu1 %v4329_v29 }
 0x6d1   : > { %4946 = vmatpush3.msra.mxu1 %v4313_v30 }
 0x6d2   : > { %4947 = vmatprep.subr.mxu1 %v4328_v31 }
 0x6d3   : > { %4948 = vmatpush3.msra.mxu1 %v4312_v9 }
 0x6d4   : > { %4949 = vmatprep.subr.mxu1 %v4327_v36 }
 0x6d5   : > { %4950 = vmatpush3.msra.mxu1 %v4311_v37 }
 0x6d6   : > { %4951 = vmatprep.subr.mxu1 %v4326_v38 }
 0x6d7   : > { %4952 = vmatpush3.msra.mxu1 %v4310_v40 }
 0x6d8   : > { %4953 = vmatprep.subr.mxu1 %v4325_v44 }
 0x6d9   : > { %4954 = vmatpush3.msra.mxu1 %v4309_v32 }
 0x6da   : > { %4955 = vmatprep.subr.mxu1 %v4324_v16 }
 0x6db   : > { %4956 = vmatpush3.msra.mxu1 %v4308_v27 }
 0x6dc   : > { %4957 = vmatprep.subr.mxu1 %v4323_v50 }
 0x6dd   : > { %4958 = vmatpush3.msra.mxu1 %v4307_v51 }
 0x6f8   : > { %v4056_v61 = vpop.f32.mrf.mxu1 }
 0x6f9   : > { %v4057_v0 = vadd.f32 %v4056_v61, %v3986_v60  ;;  %v4127_v4 = vpop.f32.mrf.mxu0 }
 0x6fa   : > { %v4058_v41 = vpop.f32.mrf.mxu1  ;;  %v4128_v52 = vadd.f32 %v4127_v4, %v3622_v42 }
 0x6fb   : > { %v4059_v1 = vadd.f32 %v4058_v41, %v3988_v63  ;;  %v4207_v3 = vmax.f32 %v4057_v0, 0.0  ;;  %v4129_v45 = vpop.f32.mrf.mxu0 }
 0x6fc   : > { %v4130_v6 = vadd.f32 %v4129_v45, %v3626_v5 }
 0x6fd   : > { %v4208_v43 = vmax.f32 %v4059_v1, 0.0 }
 0x6ff   : > { %4550 = vmatprep.mubr.f32.mxu0 %v4208_v43 }
 0x700   : > { %4551 = vmatmul.mubr.f32.vlgmr.msra.gmra.mxu0 %v4207_v3 }
 0x739   : > { %v4198_v34 = vpop.f32.mrf.mxu1 }
 0x73a   : > { %v4199_v8 = vadd.f32 %v4198_v34, %v4128_v52 }
 0x73b   : > { %v4200_v10 = vpop.f32.mrf.mxu1 }
 0x73c   : > { %v4201_v11 = vadd.f32 %v4200_v10, %v4130_v6  ;;  %v4209_v62 = vmax.f32 %v4199_v8, 0.0 }
 0x73d   : > { %v4854_v39 = vpop.f32.mrf.mxu0 }
 0x73e   : > { %v4210_v35 = vmax.f32 %v4201_v11, 0.0 }
 0x73f   : > { %v4855_v12 = vpop.f32.mrf.mxu0 }
 0x740   : > { %4620 = vmatprep.mubr.f32.mxu1 %v4210_v35  ;;  %v4856_v47 = vadd.f32 %v4855_v12, %v4854_v39 }
 0x741   : > { %4621 = vmatmul.mubr.f32.vlgmr.msra.gmra.mxu1 %v4209_v62 }
 0x742   : > { %v4413_v14 = vadd.f32 %v4856_v47, %v4819_v48 }
 0x77e   : > { %v4889_v13 = vpop.f32.mrf.mxu1 }
 0x780   : > { %v4890_v56 = vpop.f32.mrf.mxu1 }
 0x781   : > { %v4891_v15 = vadd.f32 %v4890_v56, %v4889_v13 }
 0x783   : > { %v4483_v33 = vadd.f32 %v4891_v15, %v4413_v14 }
 0x7c0   : > { %v4924_v17 = vpop.f32.mrf.mxu0 }
 0x7c2   : > { %v4925_v46 = vpop.f32.mrf.mxu0 }
 0x7c3   : > { %v4926_v18 = vadd.f32 %v4925_v46, %v4924_v17 }
 0x7c5   : > { %v4553_v19 = vadd.f32 %v4926_v18, %v4483_v33 }
 0x801   : > { %v4959_v49 = vpop.f32.mrf.mxu1 }
 0x803   : > { %v4960_v53 = vpop.f32.mrf.mxu1 }
 0x804   : > { %v4961_v20 = vadd.f32 %v4960_v53, %v4959_v49 }
 0x806   : > { %v4623_v21 = vadd.f32 %v4961_v20, %v4553_v19 }
 0x808   : > { %4627 = vst.msk [vmem:[%s5725_s26] sm:$0x3] %vm4626_vm2, %v4623_v21  ;;  %4628 = vst.msk [vmem:[#allocation2] sm:$0x3] %vm4626_vm2, %v4623_v21 }
 0x809 PF: > { %s32_s18 = sadd.s32 1, %s5444_s18  }
 0x80a   : > { %p29_p12 = scmp.ge.s32.totalorder %s32_s18, 5  }
 0x80c   :  { %31 = sbr.rel (!%p29_p12) target bundleno = 9 (0x9), region = 160 }
 0x811   :  { %4648 = vsyncpa [#allocation4], 1 }
 0x812   :  { %4650 = vsyncpa [#allocation4 + $0x1], 1 }
 0x813   :  { %4651 = vsyncpa [#allocation6], 1 }
 0x814   :  { %4652 = vsyncpa [#allocation9], 1 }
 0x815   :  { %4653 = vsyncpa [#allocation12], 1 }
 0x816   :  { %4654 = vsyncpa [#allocation15], 1 }
 0x817   :  { %4655 = vsyncpa [#allocation18], 1 }
 0x818   :  { %4656 = vsyncpa [#allocation21], 1 }

</bundles_post_ra>
